<compile_context>
chip_gen: v6e
topology: v6e:2x2x1
jax: 0.10.0
libtpu: 0.0.40
codegen_flags: <defaults>
</compile_context>

<pallas_src>
import jax
import jax.numpy as jnp
from jax.experimental import pallas as pl
from jax.experimental.pallas import tpu as pltpu

LANES = 128          # padded channel width (output channels of every layer)
FRAME = 32 * 32      # flattened 32x32 spatial frame (lane axis)

# Frame widths (lanes computed per layer), rounded up to lane-tile multiples.
# Validity: c1 valid outputs reach lane 27*32+27=891; pool1 values consumed by
# valid c3 taps reach lane 858; c3 valid outputs reach lane 2*9*32+2*9=594;
# pool2 values consumed by c5's taps reach lane 528; c5's only real output is
# lane 0.  Reads past a computed frame hit explicit zero lane-padding.
N_C1 = 896
N_P1 = 896
N_C3 = 640
N_P2 = 640
N_C5 = 128


# ----------------------------- fused Pallas kernel --------------------------

def _lenet5_fused_kernel(x_ref, w1_ref, b1_ref, w3_ref, b3_ref, w5_ref, b5_ref,
                         w6_ref, b6_ref, w7_ref, b7_ref, o_ref):
    """One batch element per grid step.

    x_ref : (1, 1, 1024)  flattened 32x32 image
    conv weights : bf16 (128, 25*cin_pad), biases f32 (128, 1)
    fc   weights : bf16 (128, 128),        biases f32 (1, 128)
    o_ref : (1, 1, 128)  log-probs, lanes >= 10 are zero padding
    """
    f32 = jnp.float32
    bf16 = jnp.bfloat16

    def pad_lanes(a, need):
        # zero-pad the lane axis so reads up to `need` lanes are in-bounds
        width = a.shape[1]
        if need <= width:
            return a
        pad = -(-(need - width) // LANES) * LANES
        return jnp.concatenate(
            [a, jnp.zeros((a.shape[0], pad), a.dtype)], axis=1)

    def conv5x5_relu(head, w_ref_, b_ref_, dil, n_out):
        # head: (cin_pad, W) f32 activations on the frame (valid samples on the
        # stride-`dil` grid).  Output: (128, n_out) f32 on the same frame.
        cin_pad = head.shape[0]
        assert w_ref_.shape == (LANES, 25 * cin_pad)
        max_shift = dil * (4 * 32 + 4)
        hp = pad_lanes(head, n_out + max_shift)
        pieces = [hp[:, dil * (di * 32 + dj): dil * (di * 32 + dj) + n_out]
                  for di in range(5) for dj in range(5)]
        # assemble im2col patch in f32 (proven layout), cast once to bf16 so
        # the matmul takes the native bf16 MXU path with f32 accumulation
        patch = jnp.concatenate(pieces, axis=0).astype(bf16)   # (25*cin_pad, n_out)
        y = jnp.dot(w_ref_[...], patch, preferred_element_type=f32)
        return jnp.maximum(y + b_ref_[...], 0.0)               # (128, n_out)

    def maxpool2x2(head, dil, n_out):
        # 2x2 / stride-2 pooling on the stride-`dil` grid (results stay at
        # their frame positions; the next conv doubles its tap dilation).
        hp = pad_lanes(head, n_out + dil * 33)
        t0 = hp[:, 0:n_out]
        t1 = hp[:, dil:dil + n_out]
        t2 = hp[:, dil * 32:dil * 32 + n_out]
        t3 = hp[:, dil * 33:dil * 33 + n_out]
        return jnp.maximum(jnp.maximum(t0, t1), jnp.maximum(t2, t3))

    # build the 8-sublane input head in VMEM (rows 1..7 hit zero weight cols)
    x = x_ref[0].astype(f32)                          # (1, 1024)
    head = jnp.broadcast_to(x, (8, FRAME))            # (8, 1024)

    y = conv5x5_relu(head, w1_ref, b1_ref, dil=1, n_out=N_C1)   # c1: 6@28x28
    y = maxpool2x2(y[:8, :], dil=1, n_out=N_P1)                 # s2: 6@14x14
    y = conv5x5_relu(y, w3_ref, b3_ref, dil=2, n_out=N_C3)      # c3: 16@10x10
    y = maxpool2x2(y[:16, :], dil=2, n_out=N_P2)                # s4: 16@5x5
    y = conv5x5_relu(y, w5_ref, b5_ref, dil=4, n_out=N_C5)      # c5: 120@1x1

    # embedding: channel c of the 1x1 c5 output sits at y[c, 0]; y is already a
    # single (128,128) tile, so one transpose yields it as a lane vector.
    emb = jnp.transpose(y)[0:1, :]                    # (1, 128); lanes>=120 == 0

    h = jnp.maximum(
        jnp.dot(emb.astype(bf16), w6_ref[...], preferred_element_type=f32)
        + b6_ref[...], 0.0)                           # f6 + relu : (1, 128)
    z = (jnp.dot(h.astype(bf16), w7_ref[...], preferred_element_type=f32)
         + b7_ref[...])                               # f7        : (1, 128)

    # log-softmax over the 10 real classes (padded lanes masked to -inf).
    lane = jax.lax.broadcasted_iota(jnp.int32, z.shape, 1)
    zm = jnp.where(lane < 10, z, -jnp.inf)
    m = jnp.max(zm, axis=-1, keepdims=True)
    lse = jnp.log(jnp.sum(jnp.exp(zm - m), axis=-1, keepdims=True))
    o_ref[0] = jnp.where(lane < 10, zm - m - lse, 0.0).astype(o_ref.dtype)


# --------------------------- one-time weight packing -------------------------

def _pack_conv(w, b, cin_pad):
    """(Cout, Cin, 5, 5) conv weight -> bf16 (128, 25*cin_pad) matrix whose
    column k = tap*cin_pad + ci matches the kernel's patch layout."""
    cout, cin, kh, kw = w.shape
    wt = jnp.transpose(w, (0, 2, 3, 1))                       # (cout, 5, 5, cin)
    wt = jnp.pad(wt, ((0, LANES - cout), (0, 0), (0, 0), (0, cin_pad - cin)))
    wt = wt.reshape(LANES, kh * kw * cin_pad).astype(jnp.bfloat16)
    bc = jnp.pad(b, (0, LANES - cout)).reshape(LANES, 1).astype(jnp.float32)
    return wt, bc


def _pack_fc(w, b):
    """(out, in) torch Linear weight -> zero-padded bf16 (128, 128) x@W layout."""
    out_d, in_d = w.shape
    wt = jnp.pad(w.T, ((0, LANES - in_d), (0, LANES - out_d))).astype(jnp.bfloat16)
    br = jnp.pad(b, (0, LANES - out_d)).reshape(1, LANES).astype(jnp.float32)
    return wt, br


def pack_params(raw):
    w1, b1 = _pack_conv(raw["c1_w"], raw["c1_b"], 8)
    w3, b3 = _pack_conv(raw["c3_w"], raw["c3_b"], 8)
    w5, b5 = _pack_conv(raw["c5_w"], raw["c5_b"], 16)
    w6, b6 = _pack_fc(raw["f6_w"], raw["f6_b"])
    w7, b7 = _pack_fc(raw["f7_w"], raw["f7_b"])
    return {"w1": w1, "b1": b1, "w3": w3, "b3": b3, "w5": w5, "b5": b5,
            "w6": w6, "b6": b6, "w7": w7, "b7": b7}


def init_params(key):
    # TODO(synk): the original module loads a trained .pth checkpoint; this is a
    #             deterministic synthetic init with identical shapes.
    ks = jax.random.split(key, 10)

    def u(k, shape, fan_in):
        bound = 1.0 / jnp.sqrt(jnp.float32(fan_in))
        return jax.random.uniform(k, shape, jnp.float32, -bound, bound)

    return {
        "c1_w": u(ks[0], (6, 1, 5, 5), 25),     "c1_b": u(ks[1], (6,), 25),
        "c3_w": u(ks[2], (16, 6, 5, 5), 150),   "c3_b": u(ks[3], (16,), 150),
        "c5_w": u(ks[4], (120, 16, 5, 5), 400), "c5_b": u(ks[5], (120,), 400),
        "f6_w": u(ks[6], (84, 120), 120),       "f6_b": u(ks[7], (84,), 120),
        "f7_w": u(ks[8], (10, 84), 84),         "f7_b": u(ks[9], (10,), 84),
    }


# --------------------------------- forward ----------------------------------

@jax.jit
def lenet5_forward(packed, img):
    """img: (B, 1, H, W) float32 -> log-probabilities (B, 10)."""
    B, _, H, W = img.shape
    # nearest-neighbour resize to 32x32 (== F.interpolate default), one gather
    hi = (jnp.arange(32) * H) // 32
    wi = (jnp.arange(32) * W) // 32
    x = img[:, 0]                                   # (B, H, W)
    x = x[:, hi[:, None], wi[None, :]]              # (B, 32, 32)
    x = x.reshape(B, 1, FRAME)                      # no 8x replication in HBM

    out = pl.pallas_call(
        _lenet5_fused_kernel,
        out_shape=jax.ShapeDtypeStruct((B, 1, LANES), jnp.float32),
        grid=(B,),
        in_specs=[
            pl.BlockSpec((1, 1, FRAME), lambda b: (b, 0, 0)),   # image frame
            pl.BlockSpec((LANES, 200), lambda b: (0, 0)),       # w1 (bf16)
            pl.BlockSpec((LANES, 1),   lambda b: (0, 0)),       # b1
            pl.BlockSpec((LANES, 200), lambda b: (0, 0)),       # w3 (bf16)
            pl.BlockSpec((LANES, 1),   lambda b: (0, 0)),       # b3
            pl.BlockSpec((LANES, 400), lambda b: (0, 0)),       # w5 (bf16)
            pl.BlockSpec((LANES, 1),   lambda b: (0, 0)),       # b5
            pl.BlockSpec((LANES, LANES), lambda b: (0, 0)),     # w6 (bf16)
            pl.BlockSpec((1, LANES),   lambda b: (0, 0)),       # b6
            pl.BlockSpec((LANES, LANES), lambda b: (0, 0)),     # w7 (bf16)
            pl.BlockSpec((1, LANES),   lambda b: (0, 0)),       # b7
        ],
        out_specs=pl.BlockSpec((1, 1, LANES), lambda b: (b, 0, 0)),
        compiler_params=pltpu.CompilerParams(
            dimension_semantics=("parallel",),
            vmem_limit_bytes=32 * 1024 * 1024),
    )(x, packed["w1"], packed["b1"], packed["w3"], packed["b3"],
      packed["w5"], packed["b5"], packed["w6"], packed["b6"],
      packed["w7"], packed["b7"])
    return out[:, 0, :10]


# ------------------------------ pure-JAX reference ---------------------------

def _reference_forward(raw, img):
    B, _, H, W = img.shape
    hi = (jnp.arange(32) * H) // 32
    wi = (jnp.arange(32) * W) // 32
    x = img[:, :, hi, :][:, :, :, wi]

    def conv(x, w, b):
        y = jax.lax.conv_general_dilated(
            x, w, (1, 1), "VALID",
            dimension_numbers=("NCHW", "OIHW", "NCHW"))
        return jax.nn.relu(y + b[None, :, None, None])

    def pool(x):
        return jax.lax.reduce_window(x, -jnp.inf, jax.lax.max,
                                     (1, 1, 2, 2), (1, 1, 2, 2), "VALID")

    x = pool(conv(x, raw["c1_w"], raw["c1_b"]))
    x = pool(conv(x, raw["c3_w"], raw["c3_b"]))
    x = conv(x, raw["c5_w"], raw["c5_b"]).reshape(B, -1)
    x = jax.nn.relu(x @ raw["f6_w"].T + raw["f6_b"])
    z = x @ raw["f7_w"].T + raw["f7_b"]
    return jax.nn.log_softmax(z, axis=-1)


if __name__ == "__main__":
    key = jax.random.PRNGKey(0)
    pkey, xkey = jax.random.split(key)
    raw = init_params(pkey)
    packed = pack_params(raw)
    img = jax.random.normal(xkey, (2, 1, 16, 16), dtype=jnp.float32)

    out = jax.block_until_ready(lenet5_forward(packed, img))

    assert out.shape == (2, 10)
    # log-softmax rows must (approximately) sum to 1 in prob space
    assert bool(jnp.all(jnp.abs(jnp.sum(jnp.exp(out), axis=-1) - 1.0) < 1e-4))
    # cross-check against a pure-JAX f32 reference of the same network
    ref = _reference_forward(raw, img)
    assert bool(jnp.allclose(out, ref, atol=5e-2, rtol=5e-2))
    print("KERNEL_OK")
</pallas_src>

<mosaic_0001>
module attributes {stable_mosaic.version = 11 : i64} {
  func.func @_lenet5_fused_kernel(%arg0: i32, %arg1: memref<1x1x1024xf32, #tpu.memory_space<vmem>>, %arg2: memref<128x200xbf16, #tpu.memory_space<vmem>>, %arg3: memref<128x1xf32, #tpu.memory_space<vmem>>, %arg4: memref<128x200xbf16, #tpu.memory_space<vmem>>, %arg5: memref<128x1xf32, #tpu.memory_space<vmem>>, %arg6: memref<128x400xbf16, #tpu.memory_space<vmem>>, %arg7: memref<128x1xf32, #tpu.memory_space<vmem>>, %arg8: memref<128x128xbf16, #tpu.memory_space<vmem>>, %arg9: memref<1x128xf32, #tpu.memory_space<vmem>>, %arg10: memref<128x128xbf16, #tpu.memory_space<vmem>>, %arg11: memref<1x128xf32, #tpu.memory_space<vmem>>, %arg12: memref<1x1x128xf32, #tpu.memory_space<vmem>>) attributes {dimension_semantics = [#tpu.dimension_semantics<parallel>], iteration_bounds = array<i64: 2>, scalar_prefetch = 0 : i64, scratch_operands = 0 : i64, tpu.core_type = #tpu.core_type<tc>, window_params = [{transform_indices = @transform_0, window_bounds = array<i64: 1, 1, 1024>}, {pipeline_mode = #tpu.pipeline_mode<synchronous>, transform_indices = @transform_1, window_bounds = array<i64: 128, 200>}, {pipeline_mode = #tpu.pipeline_mode<synchronous>, transform_indices = @transform_2, window_bounds = array<i64: 128, 1>}, {pipeline_mode = #tpu.pipeline_mode<synchronous>, transform_indices = @transform_3, window_bounds = array<i64: 128, 200>}, {pipeline_mode = #tpu.pipeline_mode<synchronous>, transform_indices = @transform_4, window_bounds = array<i64: 128, 1>}, {pipeline_mode = #tpu.pipeline_mode<synchronous>, transform_indices = @transform_5, window_bounds = array<i64: 128, 400>}, {pipeline_mode = #tpu.pipeline_mode<synchronous>, transform_indices = @transform_6, window_bounds = array<i64: 128, 1>}, {pipeline_mode = #tpu.pipeline_mode<synchronous>, transform_indices = @transform_7, window_bounds = array<i64: 128, 128>}, {pipeline_mode = #tpu.pipeline_mode<synchronous>, transform_indices = @transform_8, window_bounds = array<i64: 1, 128>}, {pipeline_mode = #tpu.pipeline_mode<synchronous>, transform_indices = @transform_9, window_bounds = array<i64: 128, 128>}, {pipeline_mode = #tpu.pipeline_mode<synchronous>, transform_indices = @transform_10, window_bounds = array<i64: 1, 128>}, {transform_indices = @transform_11, window_bounds = array<i64: 1, 1, 128>}]} {
    %c0 = arith.constant 0 : index
    %c0_0 = arith.constant 0 : index
    %c0_1 = arith.constant 0 : index
    %0 = vector.load %arg1[%c0, %c0_0, %c0_1] : memref<1x1x1024xf32, #tpu.memory_space<vmem>>, vector<1x1x1024xf32>
    %1 = vector.shape_cast %0 : vector<1x1x1024xf32> to vector<1x1024xf32>
    %2 = vector.shape_cast %1 : vector<1x1024xf32> to vector<1x1024xf32>
    %3 = vector.broadcast %2 : vector<1x1024xf32> to vector<8x1024xf32>
    %cst = arith.constant 0.000000e+00 : f32
    %4 = vector.broadcast %cst : f32 to vector<8x128xf32>
    %5 = tpu.concatenate %3, %4 in 1 : vector<8x1024xf32>, vector<8x128xf32> -> vector<8x1152xf32>
    %6 = vector.extract_strided_slice %5 {offsets = [0, 0], sizes = [8, 896], strides = [1, 1]} : vector<8x1152xf32> to vector<8x896xf32>
    %7 = vector.extract_strided_slice %5 {offsets = [0, 1], sizes = [8, 896], strides = [1, 1]} : vector<8x1152xf32> to vector<8x896xf32>
    %8 = vector.extract_strided_slice %5 {offsets = [0, 2], sizes = [8, 896], strides = [1, 1]} : vector<8x1152xf32> to vector<8x896xf32>
    %9 = vector.extract_strided_slice %5 {offsets = [0, 3], sizes = [8, 896], strides = [1, 1]} : vector<8x1152xf32> to vector<8x896xf32>
    %10 = vector.extract_strided_slice %5 {offsets = [0, 4], sizes = [8, 896], strides = [1, 1]} : vector<8x1152xf32> to vector<8x896xf32>
    %11 = vector.extract_strided_slice %5 {offsets = [0, 32], sizes = [8, 896], strides = [1, 1]} : vector<8x1152xf32> to vector<8x896xf32>
    %12 = vector.extract_strided_slice %5 {offsets = [0, 33], sizes = [8, 896], strides = [1, 1]} : vector<8x1152xf32> to vector<8x896xf32>
    %13 = vector.extract_strided_slice %5 {offsets = [0, 34], sizes = [8, 896], strides = [1, 1]} : vector<8x1152xf32> to vector<8x896xf32>
    %14 = vector.extract_strided_slice %5 {offsets = [0, 35], sizes = [8, 896], strides = [1, 1]} : vector<8x1152xf32> to vector<8x896xf32>
    %15 = vector.extract_strided_slice %5 {offsets = [0, 36], sizes = [8, 896], strides = [1, 1]} : vector<8x1152xf32> to vector<8x896xf32>
    %16 = vector.extract_strided_slice %5 {offsets = [0, 64], sizes = [8, 896], strides = [1, 1]} : vector<8x1152xf32> to vector<8x896xf32>
    %17 = vector.extract_strided_slice %5 {offsets = [0, 65], sizes = [8, 896], strides = [1, 1]} : vector<8x1152xf32> to vector<8x896xf32>
    %18 = vector.extract_strided_slice %5 {offsets = [0, 66], sizes = [8, 896], strides = [1, 1]} : vector<8x1152xf32> to vector<8x896xf32>
    %19 = vector.extract_strided_slice %5 {offsets = [0, 67], sizes = [8, 896], strides = [1, 1]} : vector<8x1152xf32> to vector<8x896xf32>
    %20 = vector.extract_strided_slice %5 {offsets = [0, 68], sizes = [8, 896], strides = [1, 1]} : vector<8x1152xf32> to vector<8x896xf32>
    %21 = vector.extract_strided_slice %5 {offsets = [0, 96], sizes = [8, 896], strides = [1, 1]} : vector<8x1152xf32> to vector<8x896xf32>
    %22 = vector.extract_strided_slice %5 {offsets = [0, 97], sizes = [8, 896], strides = [1, 1]} : vector<8x1152xf32> to vector<8x896xf32>
    %23 = vector.extract_strided_slice %5 {offsets = [0, 98], sizes = [8, 896], strides = [1, 1]} : vector<8x1152xf32> to vector<8x896xf32>
    %24 = vector.extract_strided_slice %5 {offsets = [0, 99], sizes = [8, 896], strides = [1, 1]} : vector<8x1152xf32> to vector<8x896xf32>
    %25 = vector.extract_strided_slice %5 {offsets = [0, 100], sizes = [8, 896], strides = [1, 1]} : vector<8x1152xf32> to vector<8x896xf32>
    %26 = vector.extract_strided_slice %5 {offsets = [0, 128], sizes = [8, 896], strides = [1, 1]} : vector<8x1152xf32> to vector<8x896xf32>
    %27 = vector.extract_strided_slice %5 {offsets = [0, 129], sizes = [8, 896], strides = [1, 1]} : vector<8x1152xf32> to vector<8x896xf32>
    %28 = vector.extract_strided_slice %5 {offsets = [0, 130], sizes = [8, 896], strides = [1, 1]} : vector<8x1152xf32> to vector<8x896xf32>
    %29 = vector.extract_strided_slice %5 {offsets = [0, 131], sizes = [8, 896], strides = [1, 1]} : vector<8x1152xf32> to vector<8x896xf32>
    %30 = vector.extract_strided_slice %5 {offsets = [0, 132], sizes = [8, 896], strides = [1, 1]} : vector<8x1152xf32> to vector<8x896xf32>
    %31 = tpu.concatenate %6, %7, %8, %9, %10, %11, %12, %13, %14, %15, %16, %17, %18, %19, %20, %21 in 0 : vector<8x896xf32>, vector<8x896xf32>, vector<8x896xf32>, vector<8x896xf32>, vector<8x896xf32>, vector<8x896xf32>, vector<8x896xf32>, vector<8x896xf32>, vector<8x896xf32>, vector<8x896xf32>, vector<8x896xf32>, vector<8x896xf32>, vector<8x896xf32>, vector<8x896xf32>, vector<8x896xf32>, vector<8x896xf32> -> vector<128x896xf32>
    %32 = tpu.concatenate %22, %23, %24, %25, %26, %27, %28, %29, %30 in 0 : vector<8x896xf32>, vector<8x896xf32>, vector<8x896xf32>, vector<8x896xf32>, vector<8x896xf32>, vector<8x896xf32>, vector<8x896xf32>, vector<8x896xf32>, vector<8x896xf32> -> vector<72x896xf32>
    %33 = tpu.concatenate %31, %32 in 0 : vector<128x896xf32>, vector<72x896xf32> -> vector<200x896xf32>
    %34 = arith.truncf %33 : vector<200x896xf32> to vector<200x896xbf16>
    %c0_2 = arith.constant 0 : index
    %c0_3 = arith.constant 0 : index
    %35 = vector.load %arg2[%c0_2, %c0_3] : memref<128x200xbf16, #tpu.memory_space<vmem>>, vector<128x200xbf16>
    %cst_4 = arith.constant dense<0.000000e+00> : vector<128x896xf32>
    %36 = tpu.matmul %35, %34, %cst_4 {dimension_numbers = #tpu.dot_dimension_numbers<[1], [0], [0], [1], [0, 0, 1, 1], [], []>} : vector<128x200xbf16>, vector<200x896xbf16>, vector<128x896xf32> -> vector<128x896xf32>
    %c0_5 = arith.constant 0 : index
    %c0_6 = arith.constant 0 : index
    %37 = vector.load %arg3[%c0_5, %c0_6] : memref<128x1xf32, #tpu.memory_space<vmem>>, vector<128x1xf32>
    %38 = vector.broadcast %37 : vector<128x1xf32> to vector<128x896xf32>
    %39 = arith.addf %36, %38 : vector<128x896xf32>
    %cst_7 = arith.constant 0.000000e+00 : f32
    %40 = vector.broadcast %cst_7 : f32 to vector<128x896xf32>
    %41 = arith.maximumf %39, %40 : vector<128x896xf32>
    %42 = vector.extract_strided_slice %41 {offsets = [0, 0], sizes = [8, 896], strides = [1, 1]} : vector<128x896xf32> to vector<8x896xf32>
    %cst_8 = arith.constant 0.000000e+00 : f32
    %43 = vector.broadcast %cst_8 : f32 to vector<8x128xf32>
    %44 = tpu.concatenate %42, %43 in 1 : vector<8x896xf32>, vector<8x128xf32> -> vector<8x1024xf32>
    %45 = vector.extract_strided_slice %44 {offsets = [0, 0], sizes = [8, 896], strides = [1, 1]} : vector<8x1024xf32> to vector<8x896xf32>
    %46 = vector.extract_strided_slice %44 {offsets = [0, 1], sizes = [8, 896], strides = [1, 1]} : vector<8x1024xf32> to vector<8x896xf32>
    %47 = vector.extract_strided_slice %44 {offsets = [0, 32], sizes = [8, 896], strides = [1, 1]} : vector<8x1024xf32> to vector<8x896xf32>
    %48 = vector.extract_strided_slice %44 {offsets = [0, 33], sizes = [8, 896], strides = [1, 1]} : vector<8x1024xf32> to vector<8x896xf32>
    %49 = arith.maximumf %45, %46 : vector<8x896xf32>
    %50 = arith.maximumf %47, %48 : vector<8x896xf32>
    %51 = arith.maximumf %49, %50 : vector<8x896xf32>
    %cst_9 = arith.constant 0.000000e+00 : f32
    %52 = vector.broadcast %cst_9 : f32 to vector<8x128xf32>
    %53 = tpu.concatenate %51, %52 in 1 : vector<8x896xf32>, vector<8x128xf32> -> vector<8x1024xf32>
    %54 = vector.extract_strided_slice %53 {offsets = [0, 0], sizes = [8, 640], strides = [1, 1]} : vector<8x1024xf32> to vector<8x640xf32>
    %55 = vector.extract_strided_slice %53 {offsets = [0, 2], sizes = [8, 640], strides = [1, 1]} : vector<8x1024xf32> to vector<8x640xf32>
    %56 = vector.extract_strided_slice %53 {offsets = [0, 4], sizes = [8, 640], strides = [1, 1]} : vector<8x1024xf32> to vector<8x640xf32>
    %57 = vector.extract_strided_slice %53 {offsets = [0, 6], sizes = [8, 640], strides = [1, 1]} : vector<8x1024xf32> to vector<8x640xf32>
    %58 = vector.extract_strided_slice %53 {offsets = [0, 8], sizes = [8, 640], strides = [1, 1]} : vector<8x1024xf32> to vector<8x640xf32>
    %59 = vector.extract_strided_slice %53 {offsets = [0, 64], sizes = [8, 640], strides = [1, 1]} : vector<8x1024xf32> to vector<8x640xf32>
    %60 = vector.extract_strided_slice %53 {offsets = [0, 66], sizes = [8, 640], strides = [1, 1]} : vector<8x1024xf32> to vector<8x640xf32>
    %61 = vector.extract_strided_slice %53 {offsets = [0, 68], sizes = [8, 640], strides = [1, 1]} : vector<8x1024xf32> to vector<8x640xf32>
    %62 = vector.extract_strided_slice %53 {offsets = [0, 70], sizes = [8, 640], strides = [1, 1]} : vector<8x1024xf32> to vector<8x640xf32>
    %63 = vector.extract_strided_slice %53 {offsets = [0, 72], sizes = [8, 640], strides = [1, 1]} : vector<8x1024xf32> to vector<8x640xf32>
    %64 = vector.extract_strided_slice %53 {offsets = [0, 128], sizes = [8, 640], strides = [1, 1]} : vector<8x1024xf32> to vector<8x640xf32>
    %65 = vector.extract_strided_slice %53 {offsets = [0, 130], sizes = [8, 640], strides = [1, 1]} : vector<8x1024xf32> to vector<8x640xf32>
    %66 = vector.extract_strided_slice %53 {offsets = [0, 132], sizes = [8, 640], strides = [1, 1]} : vector<8x1024xf32> to vector<8x640xf32>
    %67 = vector.extract_strided_slice %53 {offsets = [0, 134], sizes = [8, 640], strides = [1, 1]} : vector<8x1024xf32> to vector<8x640xf32>
    %68 = vector.extract_strided_slice %53 {offsets = [0, 136], sizes = [8, 640], strides = [1, 1]} : vector<8x1024xf32> to vector<8x640xf32>
    %69 = vector.extract_strided_slice %53 {offsets = [0, 192], sizes = [8, 640], strides = [1, 1]} : vector<8x1024xf32> to vector<8x640xf32>
    %70 = vector.extract_strided_slice %53 {offsets = [0, 194], sizes = [8, 640], strides = [1, 1]} : vector<8x1024xf32> to vector<8x640xf32>
    %71 = vector.extract_strided_slice %53 {offsets = [0, 196], sizes = [8, 640], strides = [1, 1]} : vector<8x1024xf32> to vector<8x640xf32>
    %72 = vector.extract_strided_slice %53 {offsets = [0, 198], sizes = [8, 640], strides = [1, 1]} : vector<8x1024xf32> to vector<8x640xf32>
    %73 = vector.extract_strided_slice %53 {offsets = [0, 200], sizes = [8, 640], strides = [1, 1]} : vector<8x1024xf32> to vector<8x640xf32>
    %74 = vector.extract_strided_slice %53 {offsets = [0, 256], sizes = [8, 640], strides = [1, 1]} : vector<8x1024xf32> to vector<8x640xf32>
    %75 = vector.extract_strided_slice %53 {offsets = [0, 258], sizes = [8, 640], strides = [1, 1]} : vector<8x1024xf32> to vector<8x640xf32>
    %76 = vector.extract_strided_slice %53 {offsets = [0, 260], sizes = [8, 640], strides = [1, 1]} : vector<8x1024xf32> to vector<8x640xf32>
    %77 = vector.extract_strided_slice %53 {offsets = [0, 262], sizes = [8, 640], strides = [1, 1]} : vector<8x1024xf32> to vector<8x640xf32>
    %78 = vector.extract_strided_slice %53 {offsets = [0, 264], sizes = [8, 640], strides = [1, 1]} : vector<8x1024xf32> to vector<8x640xf32>
    %79 = tpu.concatenate %54, %55, %56, %57, %58, %59, %60, %61, %62, %63, %64, %65, %66, %67, %68, %69 in 0 : vector<8x640xf32>, vector<8x640xf32>, vector<8x640xf32>, vector<8x640xf32>, vector<8x640xf32>, vector<8x640xf32>, vector<8x640xf32>, vector<8x640xf32>, vector<8x640xf32>, vector<8x640xf32>, vector<8x640xf32>, vector<8x640xf32>, vector<8x640xf32>, vector<8x640xf32>, vector<8x640xf32>, vector<8x640xf32> -> vector<128x640xf32>
    %80 = tpu.concatenate %70, %71, %72, %73, %74, %75, %76, %77, %78 in 0 : vector<8x640xf32>, vector<8x640xf32>, vector<8x640xf32>, vector<8x640xf32>, vector<8x640xf32>, vector<8x640xf32>, vector<8x640xf32>, vector<8x640xf32>, vector<8x640xf32> -> vector<72x640xf32>
    %81 = tpu.concatenate %79, %80 in 0 : vector<128x640xf32>, vector<72x640xf32> -> vector<200x640xf32>
    %82 = arith.truncf %81 : vector<200x640xf32> to vector<200x640xbf16>
    %c0_10 = arith.constant 0 : index
    %c0_11 = arith.constant 0 : index
    %83 = vector.load %arg4[%c0_10, %c0_11] : memref<128x200xbf16, #tpu.memory_space<vmem>>, vector<128x200xbf16>
    %cst_12 = arith.constant dense<0.000000e+00> : vector<128x640xf32>
    %84 = tpu.matmul %83, %82, %cst_12 {dimension_numbers = #tpu.dot_dimension_numbers<[1], [0], [0], [1], [0, 0, 1, 1], [], []>} : vector<128x200xbf16>, vector<200x640xbf16>, vector<128x640xf32> -> vector<128x640xf32>
    %c0_13 = arith.constant 0 : index
    %c0_14 = arith.constant 0 : index
    %85 = vector.load %arg5[%c0_13, %c0_14] : memref<128x1xf32, #tpu.memory_space<vmem>>, vector<128x1xf32>
    %86 = vector.broadcast %85 : vector<128x1xf32> to vector<128x640xf32>
    %87 = arith.addf %84, %86 : vector<128x640xf32>
    %cst_15 = arith.constant 0.000000e+00 : f32
    %88 = vector.broadcast %cst_15 : f32 to vector<128x640xf32>
    %89 = arith.maximumf %87, %88 : vector<128x640xf32>
    %90 = vector.extract_strided_slice %89 {offsets = [0, 0], sizes = [16, 640], strides = [1, 1]} : vector<128x640xf32> to vector<16x640xf32>
    %cst_16 = arith.constant 0.000000e+00 : f32
    %91 = vector.broadcast %cst_16 : f32 to vector<16x128xf32>
    %92 = tpu.concatenate %90, %91 in 1 : vector<16x640xf32>, vector<16x128xf32> -> vector<16x768xf32>
    %93 = vector.extract_strided_slice %92 {offsets = [0, 0], sizes = [16, 640], strides = [1, 1]} : vector<16x768xf32> to vector<16x640xf32>
    %94 = vector.extract_strided_slice %92 {offsets = [0, 2], sizes = [16, 640], strides = [1, 1]} : vector<16x768xf32> to vector<16x640xf32>
    %95 = vector.extract_strided_slice %92 {offsets = [0, 64], sizes = [16, 640], strides = [1, 1]} : vector<16x768xf32> to vector<16x640xf32>
    %96 = vector.extract_strided_slice %92 {offsets = [0, 66], sizes = [16, 640], strides = [1, 1]} : vector<16x768xf32> to vector<16x640xf32>
    %97 = arith.maximumf %93, %94 : vector<16x640xf32>
    %98 = arith.maximumf %95, %96 : vector<16x640xf32>
    %99 = arith.maximumf %97, %98 : vector<16x640xf32>
    %cst_17 = arith.constant 0.000000e+00 : f32
    %100 = vector.broadcast %cst_17 : f32 to vector<16x128xf32>
    %101 = tpu.concatenate %99, %100 in 1 : vector<16x640xf32>, vector<16x128xf32> -> vector<16x768xf32>
    %102 = vector.extract_strided_slice %101 {offsets = [0, 0], sizes = [16, 128], strides = [1, 1]} : vector<16x768xf32> to vector<16x128xf32>
    %103 = vector.extract_strided_slice %101 {offsets = [0, 4], sizes = [16, 128], strides = [1, 1]} : vector<16x768xf32> to vector<16x128xf32>
    %104 = vector.extract_strided_slice %101 {offsets = [0, 8], sizes = [16, 128], strides = [1, 1]} : vector<16x768xf32> to vector<16x128xf32>
    %105 = vector.extract_strided_slice %101 {offsets = [0, 12], sizes = [16, 128], strides = [1, 1]} : vector<16x768xf32> to vector<16x128xf32>
    %106 = vector.extract_strided_slice %101 {offsets = [0, 16], sizes = [16, 128], strides = [1, 1]} : vector<16x768xf32> to vector<16x128xf32>
    %107 = vector.extract_strided_slice %101 {offsets = [0, 128], sizes = [16, 128], strides = [1, 1]} : vector<16x768xf32> to vector<16x128xf32>
    %108 = vector.extract_strided_slice %101 {offsets = [0, 132], sizes = [16, 128], strides = [1, 1]} : vector<16x768xf32> to vector<16x128xf32>
    %109 = vector.extract_strided_slice %101 {offsets = [0, 136], sizes = [16, 128], strides = [1, 1]} : vector<16x768xf32> to vector<16x128xf32>
    %110 = vector.extract_strided_slice %101 {offsets = [0, 140], sizes = [16, 128], strides = [1, 1]} : vector<16x768xf32> to vector<16x128xf32>
    %111 = vector.extract_strided_slice %101 {offsets = [0, 144], sizes = [16, 128], strides = [1, 1]} : vector<16x768xf32> to vector<16x128xf32>
    %112 = vector.extract_strided_slice %101 {offsets = [0, 256], sizes = [16, 128], strides = [1, 1]} : vector<16x768xf32> to vector<16x128xf32>
    %113 = vector.extract_strided_slice %101 {offsets = [0, 260], sizes = [16, 128], strides = [1, 1]} : vector<16x768xf32> to vector<16x128xf32>
    %114 = vector.extract_strided_slice %101 {offsets = [0, 264], sizes = [16, 128], strides = [1, 1]} : vector<16x768xf32> to vector<16x128xf32>
    %115 = vector.extract_strided_slice %101 {offsets = [0, 268], sizes = [16, 128], strides = [1, 1]} : vector<16x768xf32> to vector<16x128xf32>
    %116 = vector.extract_strided_slice %101 {offsets = [0, 272], sizes = [16, 128], strides = [1, 1]} : vector<16x768xf32> to vector<16x128xf32>
    %117 = vector.extract_strided_slice %101 {offsets = [0, 384], sizes = [16, 128], strides = [1, 1]} : vector<16x768xf32> to vector<16x128xf32>
    %118 = vector.extract_strided_slice %101 {offsets = [0, 388], sizes = [16, 128], strides = [1, 1]} : vector<16x768xf32> to vector<16x128xf32>
    %119 = vector.extract_strided_slice %101 {offsets = [0, 392], sizes = [16, 128], strides = [1, 1]} : vector<16x768xf32> to vector<16x128xf32>
    %120 = vector.extract_strided_slice %101 {offsets = [0, 396], sizes = [16, 128], strides = [1, 1]} : vector<16x768xf32> to vector<16x128xf32>
    %121 = vector.extract_strided_slice %101 {offsets = [0, 400], sizes = [16, 128], strides = [1, 1]} : vector<16x768xf32> to vector<16x128xf32>
    %122 = vector.extract_strided_slice %101 {offsets = [0, 512], sizes = [16, 128], strides = [1, 1]} : vector<16x768xf32> to vector<16x128xf32>
    %123 = vector.extract_strided_slice %101 {offsets = [0, 516], sizes = [16, 128], strides = [1, 1]} : vector<16x768xf32> to vector<16x128xf32>
    %124 = vector.extract_strided_slice %101 {offsets = [0, 520], sizes = [16, 128], strides = [1, 1]} : vector<16x768xf32> to vector<16x128xf32>
    %125 = vector.extract_strided_slice %101 {offsets = [0, 524], sizes = [16, 128], strides = [1, 1]} : vector<16x768xf32> to vector<16x128xf32>
    %126 = vector.extract_strided_slice %101 {offsets = [0, 528], sizes = [16, 128], strides = [1, 1]} : vector<16x768xf32> to vector<16x128xf32>
    %127 = tpu.concatenate %102, %103, %104, %105, %106, %107, %108, %109, %110, %111, %112, %113, %114, %115, %116, %117 in 0 : vector<16x128xf32>, vector<16x128xf32>, vector<16x128xf32>, vector<16x128xf32>, vector<16x128xf32>, vector<16x128xf32>, vector<16x128xf32>, vector<16x128xf32>, vector<16x128xf32>, vector<16x128xf32>, vector<16x128xf32>, vector<16x128xf32>, vector<16x128xf32>, vector<16x128xf32>, vector<16x128xf32>, vector<16x128xf32> -> vector<256x128xf32>
    %128 = tpu.concatenate %118, %119, %120, %121, %122, %123, %124, %125, %126 in 0 : vector<16x128xf32>, vector<16x128xf32>, vector<16x128xf32>, vector<16x128xf32>, vector<16x128xf32>, vector<16x128xf32>, vector<16x128xf32>, vector<16x128xf32>, vector<16x128xf32> -> vector<144x128xf32>
    %129 = tpu.concatenate %127, %128 in 0 : vector<256x128xf32>, vector<144x128xf32> -> vector<400x128xf32>
    %130 = arith.truncf %129 : vector<400x128xf32> to vector<400x128xbf16>
    %c0_18 = arith.constant 0 : index
    %c0_19 = arith.constant 0 : index
    %131 = vector.load %arg6[%c0_18, %c0_19] : memref<128x400xbf16, #tpu.memory_space<vmem>>, vector<128x400xbf16>
    %cst_20 = arith.constant dense<0.000000e+00> : vector<128x128xf32>
    %132 = tpu.matmul %131, %130, %cst_20 {dimension_numbers = #tpu.dot_dimension_numbers<[1], [0], [0], [1], [0, 0, 1, 1], [], []>} : vector<128x400xbf16>, vector<400x128xbf16>, vector<128x128xf32> -> vector<128x128xf32>
    %c0_21 = arith.constant 0 : index
    %c0_22 = arith.constant 0 : index
    %133 = vector.load %arg7[%c0_21, %c0_22] : memref<128x1xf32, #tpu.memory_space<vmem>>, vector<128x1xf32>
    %134 = vector.broadcast %133 : vector<128x1xf32> to vector<128x128xf32>
    %135 = arith.addf %132, %134 : vector<128x128xf32>
    %cst_23 = arith.constant 0.000000e+00 : f32
    %136 = vector.broadcast %cst_23 : f32 to vector<128x128xf32>
    %137 = arith.maximumf %135, %136 : vector<128x128xf32>
    %138 = tpu.transpose %137, [1, 0] : vector<128x128xf32> -> vector<128x128xf32>
    %139 = vector.extract_strided_slice %138 {offsets = [0, 0], sizes = [1, 128], strides = [1, 1]} : vector<128x128xf32> to vector<1x128xf32>
    %140 = arith.truncf %139 : vector<1x128xf32> to vector<1x128xbf16>
    %c0_24 = arith.constant 0 : index
    %c0_25 = arith.constant 0 : index
    %141 = vector.load %arg8[%c0_24, %c0_25] : memref<128x128xbf16, #tpu.memory_space<vmem>>, vector<128x128xbf16>
    %cst_26 = arith.constant dense<0.000000e+00> : vector<1x128xf32>
    %142 = tpu.matmul %140, %141, %cst_26 {dimension_numbers = #tpu.dot_dimension_numbers<[1], [0], [0], [1], [0, 0, 1, 1], [], []>} : vector<1x128xbf16>, vector<128x128xbf16>, vector<1x128xf32> -> vector<1x128xf32>
    %c0_27 = arith.constant 0 : index
    %c0_28 = arith.constant 0 : index
    %143 = vector.load %arg9[%c0_27, %c0_28] : memref<1x128xf32, #tpu.memory_space<vmem>>, vector<1x128xf32>
    %144 = arith.addf %142, %143 : vector<1x128xf32>
    %cst_29 = arith.constant 0.000000e+00 : f32
    %145 = vector.broadcast %cst_29 : f32 to vector<1x128xf32>
    %146 = arith.maximumf %144, %145 : vector<1x128xf32>
    %147 = arith.truncf %146 : vector<1x128xf32> to vector<1x128xbf16>
    %c0_30 = arith.constant 0 : index
    %c0_31 = arith.constant 0 : index
    %148 = vector.load %arg10[%c0_30, %c0_31] : memref<128x128xbf16, #tpu.memory_space<vmem>>, vector<128x128xbf16>
    %cst_32 = arith.constant dense<0.000000e+00> : vector<1x128xf32>
    %149 = tpu.matmul %147, %148, %cst_32 {dimension_numbers = #tpu.dot_dimension_numbers<[1], [0], [0], [1], [0, 0, 1, 1], [], []>} : vector<1x128xbf16>, vector<128x128xbf16>, vector<1x128xf32> -> vector<1x128xf32>
    %c0_33 = arith.constant 0 : index
    %c0_34 = arith.constant 0 : index
    %150 = vector.load %arg11[%c0_33, %c0_34] : memref<1x128xf32, #tpu.memory_space<vmem>>, vector<1x128xf32>
    %151 = arith.addf %149, %150 : vector<1x128xf32>
    %152 = tpu.iota {dimensions = array<i32: 1>} : vector<1x128xi32>
    %c10_i32 = arith.constant 10 : i32
    %153 = vector.broadcast %c10_i32 : i32 to vector<1x128xi32>
    %154 = arith.cmpi slt, %152, %153 : vector<1x128xi32>
    %cst_35 = arith.constant 0xFF800000 : f32
    %155 = vector.broadcast %cst_35 : f32 to vector<1x128xf32>
    %156 = arith.select %154, %151, %155 : vector<1x128xi1>, vector<1x128xf32>
    %cst_36 = arith.constant dense<0xFF800000> : vector<1xf32>
    %157 = vector.multi_reduction <maximumf>, %156, %cst_36 [1] : vector<1x128xf32> to vector<1xf32>
    %158 = vector.shape_cast %157 : vector<1xf32> to vector<1x1xf32>
    %159 = vector.broadcast %158 : vector<1x1xf32> to vector<1x128xf32>
    %160 = arith.subf %156, %159 : vector<1x128xf32>
    %161 = math.exp %160 : vector<1x128xf32>
    %cst_37 = arith.constant dense<0.000000e+00> : vector<1xf32>
    %162 = vector.multi_reduction <add>, %161, %cst_37 [1] : vector<1x128xf32> to vector<1xf32>
    %163 = vector.shape_cast %162 : vector<1xf32> to vector<1x1xf32>
    %164 = math.log %163 : vector<1x1xf32>
    %c10_i32_38 = arith.constant 10 : i32
    %165 = vector.broadcast %c10_i32_38 : i32 to vector<1x128xi32>
    %166 = arith.cmpi slt, %152, %165 : vector<1x128xi32>
    %167 = vector.broadcast %158 : vector<1x1xf32> to vector<1x128xf32>
    %168 = arith.subf %156, %167 : vector<1x128xf32>
    %169 = vector.broadcast %164 : vector<1x1xf32> to vector<1x128xf32>
    %170 = arith.subf %168, %169 : vector<1x128xf32>
    %cst_39 = arith.constant 0.000000e+00 : f32
    %171 = vector.broadcast %cst_39 : f32 to vector<1x128xf32>
    %172 = arith.select %166, %170, %171 : vector<1x128xi1>, vector<1x128xf32>
    %c0_40 = arith.constant 0 : index
    %c0_41 = arith.constant 0 : index
    %c0_42 = arith.constant 0 : index
    %173 = vector.load %arg12[%c0_40, %c0_41, %c0_42] : memref<1x1x128xf32, #tpu.memory_space<vmem>>, vector<1x1x128xf32>
    %174 = vector.shape_cast %173 : vector<1x1x128xf32> to vector<1x128xf32>
    %175 = vector.shape_cast %172 : vector<1x128xf32> to vector<1x1x128xf32>
    tpu.vector_store %arg12[%c0_40, %c0_41, %c0_42], %175 {strides = array<i32>} : memref<1x1x128xf32, #tpu.memory_space<vmem>>, vector<1x1x128xf32>,
    return
  }
  func.func @transform_0(%arg0: i32) -> (i32, i32, i32) {
    %c0_i32 = arith.constant 0 : i32
    %c0_i32_0 = arith.constant 0 : i32
    %c0_i32_1 = arith.constant 0 : i32
    return %arg0, %c0_i32, %c0_i32_0 : i32, i32, i32
  }
  func.func @transform_1(%arg0: i32) -> (i32, i32) {
    %c0_i32 = arith.constant 0 : i32
    %c0_i32_0 = arith.constant 0 : i32
    %c0_i32_1 = arith.constant 0 : i32
    return %c0_i32, %c0_i32_0 : i32, i32
  }
  func.func @transform_2(%arg0: i32) -> (i32, i32) {
    %c0_i32 = arith.constant 0 : i32
    %c0_i32_0 = arith.constant 0 : i32
    %c0_i32_1 = arith.constant 0 : i32
    return %c0_i32, %c0_i32_0 : i32, i32
  }
  func.func @transform_3(%arg0: i32) -> (i32, i32) {
    %c0_i32 = arith.constant 0 : i32
    %c0_i32_0 = arith.constant 0 : i32
    %c0_i32_1 = arith.constant 0 : i32
    return %c0_i32, %c0_i32_0 : i32, i32
  }
  func.func @transform_4(%arg0: i32) -> (i32, i32) {
    %c0_i32 = arith.constant 0 : i32
    %c0_i32_0 = arith.constant 0 : i32
    %c0_i32_1 = arith.constant 0 : i32
    return %c0_i32, %c0_i32_0 : i32, i32
  }
  func.func @transform_5(%arg0: i32) -> (i32, i32) {
    %c0_i32 = arith.constant 0 : i32
    %c0_i32_0 = arith.constant 0 : i32
    %c0_i32_1 = arith.constant 0 : i32
    return %c0_i32, %c0_i32_0 : i32, i32
  }
  func.func @transform_6(%arg0: i32) -> (i32, i32) {
    %c0_i32 = arith.constant 0 : i32
    %c0_i32_0 = arith.constant 0 : i32
    %c0_i32_1 = arith.constant 0 : i32
    return %c0_i32, %c0_i32_0 : i32, i32
  }
  func.func @transform_7(%arg0: i32) -> (i32, i32) {
    %c0_i32 = arith.constant 0 : i32
    %c0_i32_0 = arith.constant 0 : i32
    %c0_i32_1 = arith.constant 0 : i32
    return %c0_i32, %c0_i32_0 : i32, i32
  }
  func.func @transform_8(%arg0: i32) -> (i32, i32) {
    %c0_i32 = arith.constant 0 : i32
    %c0_i32_0 = arith.constant 0 : i32
    %c0_i32_1 = arith.constant 0 : i32
    return %c0_i32, %c0_i32_0 : i32, i32
  }
  func.func @transform_9(%arg0: i32) -> (i32, i32) {
    %c0_i32 = arith.constant 0 : i32
    %c0_i32_0 = arith.constant 0 : i32
    %c0_i32_1 = arith.constant 0 : i32
    return %c0_i32, %c0_i32_0 : i32, i32
  }
  func.func @transform_10(%arg0: i32) -> (i32, i32) {
    %c0_i32 = arith.constant 0 : i32
    %c0_i32_0 = arith.constant 0 : i32
    %c0_i32_1 = arith.constant 0 : i32
    return %c0_i32, %c0_i32_0 : i32, i32
  }
  func.func @transform_11(%arg0: i32) -> (i32, i32, i32) {
    %c0_i32 = arith.constant 0 : i32
    %c0_i32_0 = arith.constant 0 : i32
    %c0_i32_1 = arith.constant 0 : i32
    return %arg0, %c0_i32, %c0_i32_0 : i32, i32, i32
  }
}

</mosaic_0001>

<bundles_post_ra>
// kernel: lenet5_forward.1
= control target key start
LH: loop header
LB: loop body
LE: loop exit
PB: predicated region body
PF: predicated region fallthrough
CT: control target
= control target key end

     0   :  { %s8282_s0 = inlined_call_operand.vmem [shape: f32[2,1,1024], index: 0, kind: input, shape index: {}]   ;;  %s8283_s1 = inlined_call_operand.vmem [shape: bf16[128,200], index: 1, kind: input, shape index: {}]   ;;  %s8284_s2 = inlined_call_operand.vmem [shape: f32[128,1], index: 2, kind: input, shape index: {}]   ;;  %s8285_s3 = inlined_call_operand.vmem [shape: bf16[128,200], index: 3, kind: input, shape index: {}]   ;;  %s8286_s4 = inlined_call_operand.vmem [shape: f32[128,1], index: 4, kind: input, shape index: {}]   ;;  %s8287_s5 = inlined_call_operand.vmem [shape: bf16[128,400], index: 5, kind: input, shape index: {}]   ;;  %s8288_s6 = inlined_call_operand.vmem [shape: f32[128,1], index: 6, kind: input, shape index: {}]   ;;  %s8289_s7 = inlined_call_operand.vmem [shape: bf16[128,128], index: 7, kind: input, shape index: {}]   ;;  %s8290_s8 = inlined_call_operand.vmem [shape: f32[1,128], index: 8, kind: input, shape index: {}]   ;;  %s8291_s9 = inlined_call_operand.vmem [shape: bf16[128,128], index: 9, kind: input, shape index: {}]   ;;  %s8292_s10 = inlined_call_operand.vmem [shape: f32[1,128], index: 10, kind: input, shape index: {}]   ;;  %s8293_s11 = inlined_call_operand.hbm [shape: f32[2,1,128], index: 11, kind: output, shape index: {}]  }
   0x1   :  { %8359 = sst [smem:[#allocation16_spill]] %s8282_s0 }
   0x2   :  { %16 = vsyncpa [#allocation3], 0 }
   0x3   :  { %18 = vsyncpa [#allocation3 + $0x1], 0  ;;  %s5705_s17 = smov 0   ;;  %s5707_s18 = smov 0  }
   0x4   :  { %s5709_s19 = smov 0   ;;  %s5711_s20 = smov 0  }
   0x5 LB: > { %s5726_s21 = sadd.s32 4294967295, %s5614_s20   ;;  %s4129_s22 = sadd.s32 4294967294, %s5614_s20   ;;  %s5614_s20 = sphi %s5711_s20, %s8469_s20   ;;  %s5610_s19 = sphi %s5709_s19, %s8468_s19   ;;  %s5606_s18 = sphi %s5707_s18, %s8467_s18   ;;  %s5602_s17 = sphi %s5705_s17, %s8466_s17  }
   0x6   : > { %s5730_s23 = sadd.s32 1, %s5614_s20   ;;  %s267_s24 = sadd.s32 1, %s5610_s19 }
   0x7   : > { %s264_s25 = ssub.s32 %s5614_s20, %s5730_s23  ;;  %p277_p0 = scmp.ne.s32.totalorder %s5610_s19, %s5606_s18 }
   0x8   : > { %p265_p1 = scmp.eq.s32.totalorder %s264_s25, 0  ;;  %p278_p2 = scmp.eq.s32.totalorder %s5726_s21, 1 }
   0x9   : > { %p283_p3 = scmp.ne.s32.totalorder %s5606_s18, %s5602_s17  ;;  %p284_p4 = scmp.eq.s32.totalorder %s4129_s22, 1 }
   0xa   : > { %s5741_s26 = scalar_select %p265_p1, %s5610_s19, %s267_s24  }
   0xb   : > { %p5743_p5 = por %p278_p2, %p277_p0  ;;  %p5747_p6 = por %p284_p4, %p283_p3 }
   0xc   : > { %p4132_p7 = scmp.ge.s32.totalorder %s5614_s20, 1  ;;  %p339_p8 = scmp.lt.s32.totalorder %s5614_s20, 3 }
   0xe   : > { %p340_p9 = pnand %p4132_p7, %p339_p8 }
  0x10   : > { %343 = sbr.rel (%p340_p9) target bundleno = 3209 (0xc89), region = 64 }
  0x15   : > { %p377_p10 = scmp.lt.s32.totalorder %s5726_s21, 1  ;;  %v8305_v0 = vlaneseq  ;;  %s8362_s0 = sld [smem:[#allocation16_spill]]  ;;  %v8313_v27 = vmov 0.0   ;;  %vm656_vm0 = vcmask 760832   ;;  %vm594_vm1 = vcmask 777216  }
  0x16   : > { %s5616_s15 = smov 93   ;;  %s5617_s16 = smov 95   ;;  %vm625_vm2 = vcmask 769024   ;;  %vm902_vm3 = vcmask 793600   ;;  %vm563_vm4 = vcmask 785408   ;;  %vm470_vm5 = vcmask 1031168  }
  0x17   : > { %s378_s29 = scalar_select %p377_p10, %s5726_s21, 1  ;;  %v385_v1 = vshrl.u32 %v8305_v0, 7  ;;  %vm501_vm6 = vcmask 1022976   ;;  %vm439_vm7 = vcmask 1039360   ;;  %vm842_vm8 = vcmask 490496  }
  0x18   : > { %s5618_s22 = smov 94   ;;  %s8330_s24 = smov 96   ;;  %vm873_vm9 = vcmask 261120   ;;  %vm780_vm10 = vcmask 506880   ;;  %vm811_vm11 = vcmask 498688   ;;  %vm1453_vm12 = vcmask 588800  }
  0x19   : > { %s4133_s30 = sshll.u32 %s378_s29, 3  ;;  %v390_v2 = vsub.s32 1, %v385_v1  ;;  %v394_v3 = vsub.s32 2, %v385_v1  ;;  %v386_v4 = vsub.s32 0, %v385_v1  ;;  %v406_v5 = vsub.s32 5, %v385_v1  ;;  %s5620_s25 = smov 97  }
  0x1a   : > { %v398_v6 = vsub.s32 3, %v385_v1  ;;  %v402_v7 = vsub.s32 4, %v385_v1  ;;  %v414_v8 = vsub.s32 7, %v385_v1  ;;  %v410_v20 = vsub.s32 6, %v385_v1  ;;  %s8328_s29 = smov 126   ;;  %s8294_s12 = smov 127  }
  0x1b   : > { %s380_s14 = scalar_lea.vmem %s8362_s0, %s4133_s30  ;;  %s8296_s30 = smov 125   ;;  %vm718_vm13 = vcmask 523264   ;;  %vm8332_vm14 = vcmask 515072   ;;  %vm687_vm15 = vcmask 752640  }
  0x1c   : > { %v382_v9 = vld [vmem:[%s380_s14] sm:$0xff]  ;;  %s8297_s13 = smov 60   ;;  %s8299_s14 = smov 32  }
  0x1d   : > { %v5759_v10 = vrot.slane %v382_v9, %v390_v2  ;;  %v5761_v11 = vrot.slane %v382_v9, %v394_v3  ;;  %v5763_v12 = vrot.slane %v382_v9, %v386_v4  ;;  %v5765_v13 = vrot.slane %v382_v9, %v406_v5  ;;  %s8443_s0 = smov 120  }
  0x1e   : > { %v5767_v14 = vrot.slane %v382_v9, %v398_v6  ;;  %v5769_v15 = vrot.slane %v382_v9, %v402_v7  ;;  %v5771_v16 = vrot.slane %v382_v9, %v414_v8  ;;  %v5798_v21 = vrot.slane %v382_v9, %v410_v20 }
  0x1f   : > { %8363 = vst [vmem:[#allocation5_spill] sm:$0xff] %v5765_v13  ;;  %v5775_v17 = vpack.i.bf16 %v5761_v11, %v5759_v10  ;;  %v4485_v18 = vpack.i.bf16 %v5763_v12, %v5765_v13 }
  0x20   : > { %8364 = vst [vmem:[#allocation6_spill] sm:$0xff] %v5769_v15  ;;  %v4480_v19 = vpack.i.bf16 %v5769_v15, %v5767_v14  ;;  %8365 = vst [vmem:[#allocation7_spill] sm:$0xff] %v5798_v21  ;;  %v5804_v22 = vpack.i.bf16 %v5798_v21, %v5765_v13  ;;  %v4555_v23 = vpack.i.bf16 %v5763_v12, %v5767_v14 }
  0x21   : > { %4476 = vrot.lane.b32.xlu0 %v5775_v17, %s5616_s15  ;;  %4486 = vrot.lane.b32.xlu1 %v4485_v18, %s5616_s15  ;;  %v4570_v24 = vpack.i.bf16 %v5765_v13, %v5769_v15  ;;  %v4605_v25 = vpack.i.bf16 %v5767_v14, %v5763_v12  ;;  %v5868_v26 = vpack.i.bf16 %v5771_v16, %v5798_v21 }
  0x25   : > { %4481 = vrot.lane.b32.xlu0 %v4480_v19, %s5616_s15  ;;  %4491 = vrot.lane.b32.xlu1 %v5775_v17, %s5617_s16 }
  0x29   : > { %4496 = vrot.lane.b32.xlu0 %v4480_v19, %s5617_s16  ;;  %4501 = vrot.lane.b32.xlu1 %v5775_v17, %s5618_s22 }
  0x2d   : > { %4506 = vrot.lane.b32.xlu0 %v4480_v19, %s5618_s22  ;;  %4511 = vrot.lane.b32.xlu1 %v4485_v18, %s5617_s16 }
  0x31   : > { %4516 = vrot.lane.b32.xlu0 %v4485_v18, %s5618_s22  ;;  %4521 = vrot.lane.b32.xlu1 %v5775_v17, %s8330_s24 }
  0x35   : > { %4526 = vrot.lane.b32.xlu0 %v4480_v19, %s8330_s24  ;;  %4531 = vrot.lane.b32.xlu1 %v5775_v17, %s5620_s25 }
  0x39   : > { %4536 = vrot.lane.b32.xlu0 %v4480_v19, %s5620_s25  ;;  %4541 = vrot.lane.b32.xlu1 %v4485_v18, %s8330_s24 }
  0x3d   : > { %4546 = vrot.lane.b32.xlu0 %v5804_v22, %s5620_s25  ;;  %4551 = vrot.lane.b32.xlu1 %v5775_v17, %s8328_s29 }
  0x41   : > { %4556 = vrot.lane.b32.xlu0 %v4555_v23, %s8328_s29  ;;  %4561 = vrot.lane.b32.xlu1 %v5775_v17, %s8296_s30 }
  0x45   : > { %4566 = vrot.lane.b32.xlu0 %v4555_v23, %s8296_s30  ;;  %4571 = vrot.lane.b32.xlu1 %v4570_v24, %s8328_s29 }
  0x49   : > { %4576 = vrot.lane.b32.xlu0 %v4570_v24, %s8296_s30  ;;  %4581 = vrot.lane.b32.xlu1 %v5775_v17, %s8294_s12  ;;  %s8303_s30 = smov 61  }
  0x4d   : > { %4586 = vrot.lane.b32.xlu0 %v4555_v23, %s8294_s12  ;;  %4591 = vrot.lane.b32.xlu1 %v4570_v24, %s8294_s12  ;;  %s8301_s12 = smov 62  }
  0x51   : > { %4596 = vrot.lane.b32.xlu0 %v5775_v17, %s8297_s13  ;;  %4601 = vrot.lane.b32.xlu1 %v5775_v17, %s8299_s14 }
  0x55   : > { %4606 = vrot.lane.b32.xlu0 %v4605_v25, %s8297_s13  ;;  %4611 = vrot.lane.b32.xlu1 %v4605_v25, %s8299_s14 }
  0x59   : > { %834 = vrot.lane.b32.xlu0 %v5769_v15, %s8297_s13  ;;  %865 = vrot.lane.b32.xlu1 %v5769_v15, %s8299_s14  ;;  %s8336_s13 = smov 64   ;;  %s5629_s14 = smov 63  }
  0x5d   : > { %4616 = vrot.lane.b32.xlu0 %v5775_v17, %s8301_s12  ;;  %4621 = vrot.lane.b32.xlu1 %v5775_v17, %s8303_s30 }
  0x61   : > { %4626 = vrot.lane.b32.xlu0 %v4605_v25, %s8301_s12  ;;  %4631 = vrot.lane.b32.xlu1 %v4605_v25, %s8303_s30 }
  0x65   : > { %772 = vrot.lane.b32.xlu0 %v5769_v15, %s8301_s12  ;;  %803 = vrot.lane.b32.xlu1 %v5769_v15, %s8303_s30  ;;  %s5630_s12 = smov 92   ;;  %s8334_s30 = smov 124  }
  0x69   : > { %4636 = vrot.lane.b32.xlu0 %v5775_v17, %s8336_s13  ;;  %4641 = vrot.lane.b32.xlu1 %v5775_v17, %s5629_s14 }
  0x6d   : > { %4646 = vrot.lane.b32.xlu0 %v4605_v25, %s8336_s13  ;;  %4651 = vrot.lane.b32.xlu1 %v4605_v25, %s5629_s14 }
  0x71   : > { %710 = vrot.lane.b32.xlu0 %v5769_v15, %s8336_s13  ;;  %741 = vrot.lane.b32.xlu1 %v5769_v15, %s5629_s14 }
  0x75   : > { %4656 = vrot.lane.b32.xlu0 %v5775_v17, %s5630_s12  ;;  %4661 = vrot.lane.b32.xlu1 %v4605_v25, %s5630_s12 }
  0x79   : > { %679 = vrot.lane.b32.xlu0 %v5769_v15, %s5630_s12  ;;  %4666 = vrot.lane.b32.xlu1 %v5775_v17, %s8334_s30 }
  0x7d   : > { %4671 = vrot.lane.b32.xlu0 %v4605_v25, %s8334_s30  ;;  %524 = vrot.lane.b32.xlu1 %v5769_v15, %s8334_s30 }
  0x81   : > { %4681 = vrot.lane.b32.xlu0 %v5868_v26, %s5617_s16  ;;  %4676 = vrot.lane.b32.xlu1 %v5868_v26, %s5616_s15 }
  0x85   : > { %919 = vrot.lane.b32.xlu1 %v8313_v27, %s5616_s15  ;;  %s5633_s15 = smov 31  }
  0x89   : > { %4686 = vrot.lane.b32.xlu1 %v5868_v26, %s5618_s22 }
  0x93   : > { %v4477_v28 = vpop.permute.xlu0 %4476  ;;  %v5878_v29 = vpop.permute.xlu1 %4486 }
  0x94   : > { %v4479_v30 = vunpack.i.h.bf16 %v4477_v28  ;;  %v5880_v31 = vunpack.i.l.bf16 %v4477_v28  ;;  %v8312_v33 = vunpack.i.l.bf16 %v5878_v29 }
  0x96   : > { %v5884_v32 = vsel %vm656_vm0, %v5880_v31, %v4479_v30 }
  0x97   : > { %v4482_v34 = vpop.permute.xlu0 %4481  ;;  %v4492_v35 = vpop.permute.xlu1 %4491  ;;  %v4690_v36 = vpack.i.bf16 %v5884_v32, %v5880_v31 }
  0x98   : > { %v4484_v37 = vunpack.i.h.bf16 %v4482_v34  ;;  %v4483_v38 = vunpack.i.l.bf16 %v4482_v34  ;;  %v4494_v39 = vunpack.i.h.bf16 %v4492_v35  ;;  %v4493_v40 = vunpack.i.l.bf16 %v4492_v35 }
  0x99   : > { %4691 = vrot.lane.b32.xlu0 %v4690_v36, %s5633_s15 }
  0x9a   : > { %v5891_v41 = vsel %vm656_vm0, %v4479_v30, %v4483_v38  ;;  %v5894_v42 = vsel %vm656_vm0, %v4483_v38, %v4484_v37  ;;  %v5897_v43 = vsel %vm594_vm1, %v4493_v40, %v4494_v39  ;;  %v5902_v44 = vsel %vm656_vm0, %v4484_v37, %v8312_v33 }
  0x9b   : > { %8366 = vst [vmem:[#allocation8_spill] sm:$0xff] %v5902_v44  ;;  %v4497_v45 = vpop.permute.xlu0 %4496  ;;  %v4502_v46 = vpop.permute.xlu1 %4501  ;;  %v4695_v47 = vpack.i.bf16 %v5894_v42, %v5891_v41  ;;  %v4700_v48 = vpack.i.bf16 %v5897_v43, %v5902_v44 }
  0x9c   : > { %v4498_v49 = vunpack.i.l.bf16 %v4497_v45  ;;  %v4504_v50 = vunpack.i.h.bf16 %v4502_v46  ;;  %v4503_v51 = vunpack.i.l.bf16 %v4502_v46  ;;  %v4499_v52 = vunpack.i.h.bf16 %v4497_v45 }
  0x9d   : > { %4696 = vrot.lane.b32.xlu1 %v4695_v47, %s5633_s15  ;;  %4701 = vrot.lane.b32.xlu0 %v4700_v48, %s5633_s15 }
  0x9e   : > { %v5911_v53 = vsel %vm594_vm1, %v4494_v39, %v4498_v49  ;;  %v5914_v54 = vsel %vm625_vm2, %v4503_v51, %v4504_v50  ;;  %v5925_v62 = vsel %vm594_vm1, %v4498_v49, %v4499_v52 }
  0x9f   : > { %v4507_v55 = vpop.permute.xlu0 %4506  ;;  %v5916_v56 = vpop.permute.xlu1 %4511  ;;  %v4705_v57 = vpack.i.bf16 %v5914_v54, %v5911_v53  ;;  %v4715_v28 = vpack.i.bf16 %v5925_v62, %v4503_v51 }
  0xa0   : > { %v4509_v59 = vunpack.i.h.bf16 %v4507_v55  ;;  %v4508_v60 = vunpack.i.l.bf16 %v4507_v55  ;;  %v8309_v61 = vunpack.i.l.bf16 %v5916_v56  ;;  %v4514_v63 = vunpack.i.h.bf16 %v5916_v56 }
  0xa1   : > { %4706 = vrot.lane.b32.xlu1 %v4705_v57, %s5633_s15 }
  0xa2   : > { %v5931_v1 = vsel %vm594_vm1, %v4499_v52, %v8309_v61  ;;  %v5934_v2 = vsel %vm625_vm2, %v4508_v60, %v4509_v59  ;;  %v5937_v3 = vsel %vm625_vm2, %v4504_v50, %v4508_v60  ;;  %v5958_v20 = vsel %vm594_vm1, %v4514_v63, %v4493_v40 }
  0xa3   : > { %8367 = vst [vmem:[#allocation9_spill] sm:$0xff] %v5931_v1  ;;  %v5939_v4 = vpop.permute.xlu0 %4516  ;;  %v4522_v5 = vpop.permute.xlu1 %4521  ;;  %v4720_v6 = vpack.i.bf16 %v5934_v2, %v5931_v1  ;;  %v4710_v7 = vpack.i.bf16 %v4493_v40, %v5937_v3 }
  0xa4   : > { %v4519_v17 = vunpack.i.h.bf16 %v5939_v4  ;;  %v8308_v18 = vunpack.i.l.bf16 %v5939_v4  ;;  %v4524_v35 = vunpack.i.h.bf16 %v4522_v5  ;;  %v5969_v39 = vunpack.i.l.bf16 %v4522_v5 }
  0xa5   : > { %4721 = vrot.lane.b32.xlu1 %v4720_v6, %s5633_s15  ;;  %4711 = vrot.lane.b32.xlu0 %v4710_v7, %s5633_s15 }
  0xa6   : > { %v5955_v19 = vsel %vm625_vm2, %v4509_v59, %v8308_v18  ;;  %v5961_v23 = vsel %vm625_vm2, %v4519_v17, %v4503_v51  ;;  %v5983_v55 = vsel %vm563_vm4, %v5969_v39, %v4524_v35 }
  0xa7   : > { %8368 = vst [vmem:[#allocation10_spill] sm:$0xff] %v5955_v19  ;;  %v4527_v24 = vpop.permute.xlu0 %4526  ;;  %v4532_v25 = vpop.permute.xlu1 %4531 }
  0xa8   : > { %v4528_v36 = vunpack.i.l.bf16 %v4527_v24  ;;  %v4534_v37 = vunpack.i.h.bf16 %v4532_v25  ;;  %v4533_v38 = vunpack.i.l.bf16 %v4532_v25  ;;  %v4529_v52 = vunpack.i.h.bf16 %v4527_v24 }
  0xa9   : > { %4716 = vrot.lane.b32.xlu0 %v4715_v28, %s5633_s15 }
  0xaa   : > { %v5972_v40 = vsel %vm563_vm4, %v4524_v35, %v4528_v36  ;;  %v903_v45 = vsel %vm902_vm3, %v4533_v38, %v4534_v37  ;;  %v5994_v25 = vsel %vm563_vm4, %v4528_v36, %v4529_v52 }
  0xab   : > { %v4537_v46 = vpop.permute.xlu0 %4536  ;;  %v5975_v47 = vpop.permute.xlu1 %4541  ;;  %v4735_v48 = vpack.i.bf16 %v4533_v38, %v5972_v40  ;;  %v4725_v49 = vpack.i.bf16 %v903_v45, %v5955_v19 }
  0xac   : > { %v4539_v50 = vunpack.i.h.bf16 %v4537_v46  ;;  %v4538_v51 = vunpack.i.l.bf16 %v4537_v46  ;;  %v8306_v24 = vunpack.i.l.bf16 %v5975_v47 }
  0xad   : > { %4736 = vrot.lane.b32.xlu1 %v4735_v48, %s5633_s15  ;;  %4726 = vrot.lane.b32.xlu0 %v4725_v49, %s5633_s15 }
  0xae   : > { %v904_v57 = vsel %vm902_vm3, %v4534_v37, %v4538_v51  ;;  %v905_v17 = vsel %vm902_vm3, %v4538_v51, %v4539_v50  ;;  %v6009_v36 = vsel %vm563_vm4, %v4529_v52, %v8306_v24 }
  0xaf   : > { %v5986_v59 = vpop.permute.xlu0 %4546  ;;  %v4552_v60 = vpop.permute.xlu1 %4551  ;;  %v4730_v63 = vpack.i.bf16 %v5983_v55, %v904_v57  ;;  %v4740_v45 = vpack.i.bf16 %v905_v17, %v5969_v39  ;;  %8369 = vst [vmem:[#allocation11_spill] sm:$0xff] %v6009_v36 }
  0xb0   : > { %v8307_v5 = vunpack.i.l.bf16 %v5986_v59  ;;  %v4554_v6 = vunpack.i.h.bf16 %v4552_v60  ;;  %v4553_v7 = vunpack.i.l.bf16 %v4552_v60 }
  0xb1   : > { %4731 = vrot.lane.b32.xlu0 %v4730_v63, %s5633_s15 }
  0xb2   : > { %v906_v28 = vsel %vm902_vm3, %v4539_v50, %v8307_v5  ;;  %v6002_v51 = vsel %vm470_vm5, %v4553_v7, %v4554_v6 }
  0xb3   : > { %v4557_v35 = vpop.permute.xlu0 %4556  ;;  %v4562_v37 = vpop.permute.xlu1 %4561  ;;  %v4745_v38 = vpack.i.bf16 %v5994_v25, %v906_v28  ;;  %v4750_v60 = vpack.i.bf16 %v6002_v51, %v6009_v36 }
  0xb4   : > { %v4558_v46 = vunpack.i.l.bf16 %v4557_v35  ;;  %v4564_v48 = vunpack.i.h.bf16 %v4562_v37  ;;  %v4563_v49 = vunpack.i.l.bf16 %v4562_v37  ;;  %v4559_v52 = vunpack.i.h.bf16 %v4557_v35 }
  0xb5   : > { %4746 = vrot.lane.b32.xlu1 %v4745_v38, %s5633_s15  ;;  %4741 = vrot.lane.b32.xlu0 %v4740_v45, %s5633_s15 }
  0xb6   : > { %v6016_v17 = vsel %vm470_vm5, %v4554_v6, %v4558_v46  ;;  %v6019_v28 = vsel %vm501_vm6, %v4563_v49, %v4564_v48  ;;  %v6041_v35 = vsel %vm470_vm5, %v4559_v52, %v4553_v7 }
  0xb7   : > { %v4567_v50 = vpop.permute.xlu0 %4566  ;;  %v6011_v57 = vpop.permute.xlu1 %4571  ;;  %v4755_v6 = vpack.i.bf16 %v6019_v28, %v6016_v17 }
  0xb8   : > { %v4568_v63 = vunpack.i.l.bf16 %v4567_v50  ;;  %v8311_v37 = vunpack.i.h.bf16 %v6011_v57  ;;  %v4569_v38 = vunpack.i.h.bf16 %v4567_v50  ;;  %v4573_v30 = vunpack.i.l.bf16 %v6011_v57 }
  0xb9   : > { %913 = vrot.lane.b32.xlu1 %v8313_v27, %s5617_s16  ;;  %4751 = vrot.lane.b32.xlu0 %v4750_v60, %s5633_s15  ;;  %s8377_s16 = smov 60  }
  0xba   : > { %v6035_v18 = vsel %vm501_vm6, %v4564_v48, %v4568_v63  ;;  %v6051_v60 = vsel %vm470_vm5, %v4573_v30, %v8311_v37  ;;  %v6062_v52 = vsel %vm470_vm5, %v4558_v46, %v4573_v30 }
  0xbb   : > { %v6025_v45 = vpop.permute.xlu0 %4576  ;;  %v6027_v0 = vpop.permute.xlu1 %4581  ;;  %8371 = vst [vmem:[#allocation13_spill] sm:$0xff] %v6051_v60 }
  0xbc   : > { %v8310_v24 = vunpack.i.h.bf16 %v6025_v45  ;;  %v4578_v5 = vunpack.i.l.bf16 %v6025_v45  ;;  %v4584_v37 = vunpack.i.h.bf16 %v6027_v0  ;;  %v4583_v33 = vunpack.i.l.bf16 %v6027_v0 }
  0xbd   : > { %4756 = vrot.lane.b32.xlu1 %v4755_v6, %s5633_s15  ;;  %916 = vrot.lane.b32.xlu0 %v8313_v27, %s5618_s22  ;;  %v4760_v6 = vpack.i.bf16 %v6041_v35, %v6035_v18  ;;  %s8378_s22 = smov 127  }
  0xbe   : > { %v6046_v50 = vsel %vm501_vm6, %v4578_v5, %v8310_v24  ;;  %v6065_v24 = vsel %vm501_vm6, %v4569_v38, %v4563_v49  ;;  %v6075_v30 = vsel %vm501_vm6, %v4568_v63, %v4578_v5  ;;  %v6084_v58 = vsel %vm439_vm7, %v4583_v33, %v4584_v37 }
  0xbf   : > { %8370 = vst [vmem:[#allocation12_spill] sm:$0xff] %v6046_v50  ;;  %v6053_v48 = vpop.permute.xlu0 %4586  ;;  %v6055_v61 = vpop.permute.xlu1 %4591  ;;  %v4770_v7 = vpack.i.bf16 %v6062_v52, %v6065_v24  ;;  %v4780_v0 = vpack.i.bf16 %v5759_v10, %v6046_v50  ;;  %v4785_v50 = vpack.i.bf16 %v6084_v58, %v5761_v11 }
  0xc1   : > { %4766 = vrot.lane.b32.xlu1 %v5868_v26, %s8330_s24  ;;  %4761 = vrot.lane.b32.xlu0 %v4760_v6, %s5633_s15  ;;  %v4588_v6 = vunpack.i.l.bf16 %v6053_v48 }
  0xc3   : > { %v4597_v9 = vpop.permute.xlu0 %4596  ;;  %v4602_v34 = vpop.permute.xlu1 %4601  ;;  %v6095_v21 = vsel %vm439_vm7, %v4584_v37, %v4588_v6 }
  0xc4   : > { %v4599_v46 = vunpack.i.h.bf16 %v4597_v9  ;;  %v4598_v49 = vunpack.i.l.bf16 %v4597_v9  ;;  %v4604_v38 = vunpack.i.h.bf16 %v4602_v34  ;;  %v4603_v8 = vunpack.i.l.bf16 %v4602_v34 }
  0xc5   : > { %4771 = vrot.lane.b32.xlu1 %v4770_v7, %s5633_s15  ;;  %900 = vrot.lane.b32.xlu0 %v5771_v16, %s5620_s25  ;;  %v4775_v34 = vpack.i.bf16 %v6075_v30, %v6051_v60  ;;  %s8374_s25 = smov 125  }
  0xc6   : > { %v844_v5 = vsel %vm842_vm8, %v4598_v49, %v4599_v46  ;;  %v875_v63 = vsel %vm873_vm9, %v4603_v8, %v4604_v38 }
  0xc7   : > { %v4607_v9 = vpop.permute.xlu0 %4606  ;;  %v4612_v27 = vpop.permute.xlu1 %4611  ;;  %v1243_v36 = vpack.c.bf16 %v875_v63, %v844_v5 }
  0xc8   : > { %v4609_v7 = vunpack.i.h.bf16 %v4607_v9  ;;  %v4608_v1 = vunpack.i.l.bf16 %v4607_v9  ;;  %v4614_v19 = vunpack.i.h.bf16 %v4612_v27  ;;  %v4613_v44 = vunpack.i.l.bf16 %v4612_v27 }
  0xc9   : > { %4781 = vrot.lane.b32.xlu1 %v4780_v0, %s5633_s15  ;;  %4776 = vrot.lane.b32.xlu0 %v4775_v34, %s5633_s15  ;;  %v4589_v27 = vunpack.i.h.bf16 %v6053_v48 }
  0xca   : > { %1500 = vmatprep.subr.bf16.mxu0 %v1243_v36  ;;  %v843_v13 = vsel %vm842_vm8, %v4608_v1, %v4598_v49  ;;  %v874_v60 = vsel %vm873_vm9, %v4613_v44, %v4603_v8  ;;  %v845_v5 = vsel %vm842_vm8, %v4599_v46, %v4609_v7  ;;  %v876_v63 = vsel %vm873_vm9, %v4604_v38, %v4614_v19 }
  0xcb   : > { %v6102_v0 = vpop.permute.xlu0 %834  ;;  %v6104_v9 = vpop.permute.xlu1 %865  ;;  %v1242_v34 = vpack.c.bf16 %v874_v60, %v843_v13  ;;  %v1244_v1 = vpack.c.bf16 %v876_v63, %v845_v5  ;;  %v8373_v44 = vmov 0.0   ;;  %v4790_v8 = vpack.i.bf16 %v5763_v12, %v6095_v21 }
  0xcc   : > { %8372 = vst [vmem:[#allocation14_spill] sm:$0xff] %v6104_v9  ;;  %v846_v37 = vsel %vm842_vm8, %v4609_v7, %v6102_v0  ;;  %v877_v36 = vsel %vm873_vm9, %v4614_v19, %v6104_v9  ;;  %v4593_v46 = vunpack.i.l.bf16 %v6055_v61  ;;  %v6117_v49 = vsel %vm439_vm7, %v4589_v27, %v4583_v33 }
  0xcd   : > { %4786 = vrot.lane.b32.xlu1 %v4785_v50, %s5633_s15  ;;  %910 = vrot.lane.b32.xlu0 %v8373_v44, %s8330_s24  ;;  %v1245_v48 = vpack.c.bf16 %v877_v36, %v846_v37  ;;  %v4805_v37 = vpack.i.bf16 %v5767_v14, %v6117_v49  ;;  %s8381_s24 = smov 61  }
  0xce   : > { %1501 = vmatpush1.bf16.msra.mxu0 %v1242_v34  ;;  %v6128_v36 = vsel %vm439_vm7, %v4588_v6, %v4593_v46 }
  0xcf   : > { %v4617_v13 = vpop.permute.xlu0 %4616  ;;  %v4622_v60 = vpop.permute.xlu1 %4621  ;;  %1583 = vmatprep.subr.bf16.mxu1 %v1245_v48 }
  0xd0   : > { %v4619_v19 = vunpack.i.h.bf16 %v4617_v13  ;;  %v4618_v50 = vunpack.i.l.bf16 %v4617_v13  ;;  %v4624_v38 = vunpack.i.h.bf16 %v4622_v60  ;;  %v4623_v7 = vunpack.i.l.bf16 %v4622_v60  ;;  %1584 = vmatpush1.bf16.msra.mxu1 %v1244_v1 }
  0xd1   : > { %4796 = vrot.lane.b32.xlu1 %v5868_v26, %s8328_s29  ;;  %4791 = vrot.lane.b32.xlu0 %v4790_v8, %s5633_s15  ;;  %v5437_v8 = vld [vmem:[%s8283_s1 + $0x4] ss:$8 sps:$4 sm:$0xff]   ;;  %s8380_s29 = smov 62  }
  0xd2   : > { %v782_v5 = vsel %vm780_vm10, %v4618_v50, %v4619_v19  ;;  %v813_v63 = vsel %vm811_vm11, %v4623_v7, %v4624_v38  ;;  %4160 = vmatprep.mubr.msk.bf16.mxu1 %vm1453_vm12, %v5437_v8  ;;  %4151 = vmatprep.mubr.msk.bf16.mxu0 %vm1453_vm12, %v5437_v8 }
  0xd3   : > { %v4627_v27 = vpop.permute.xlu0 %4626  ;;  %v4632_v34 = vpop.permute.xlu1 %4631  ;;  %v1236_v1 = vpack.c.bf16 %v813_v63, %v782_v5 }
  0xd4   : > { %v4629_v48 = vunpack.i.h.bf16 %v4627_v27  ;;  %v4628_v13 = vunpack.i.l.bf16 %v4627_v27  ;;  %v4634_v60 = vunpack.i.h.bf16 %v4632_v34  ;;  %v4633_v44 = vunpack.i.l.bf16 %v4632_v34 }
  0xd5   : > { %4806 = vrot.lane.b32.xlu1 %v4805_v37, %s5633_s15  ;;  %4801 = vrot.lane.b32.xlu0 %v5868_v26, %s8374_s25  ;;  %v4810_v37 = vpack.i.bf16 %v6128_v36, %v5769_v15  ;;  %s8379_s25 = smov 32   ;;  %v5634_v15 = vmov 0  }
  0xd6   : > { %1502 = vmatprep.subr.bf16.mxu0 %v1236_v1  ;;  %v781_v33 = vsel %vm780_vm10, %v4628_v13, %v4618_v50  ;;  %v812_v6 = vsel %vm811_vm11, %v4633_v44, %v4623_v7  ;;  %v783_v5 = vsel %vm780_vm10, %v4619_v19, %v4629_v48  ;;  %v814_v63 = vsel %vm811_vm11, %v4624_v38, %v4634_v60 }
  0xd7   : > { %v6140_v27 = vpop.permute.xlu0 %772  ;;  %v6142_v34 = vpop.permute.xlu1 %803  ;;  %v1235_v9 = vpack.c.bf16 %v812_v6, %v781_v33  ;;  %v8375_v19 = vunpack.i.h.bf16 %v6055_v61  ;;  %v1237_v7 = vpack.c.bf16 %v814_v63, %v783_v5  ;;  %4925 = vset.pattern.permute.xlu1 %v5634_v15  ;;  %5231 = vset.pattern.permute.xlu0 %v5634_v15 }
  0xd8   : > { %v784_v50 = vsel %vm780_vm10, %v4629_v48, %v6140_v27  ;;  %v815_v44 = vsel %vm811_vm11, %v4634_v60, %v6142_v34 }
  0xd9   : > { %v6155_v38 = vsel %vm439_vm7, %v4593_v46, %v8375_v19  ;;  %4811 = vrot.lane.b32.xlu0 %v4810_v37, %s5633_s15  ;;  %v1238_v33 = vpack.c.bf16 %v815_v44, %v784_v50  ;;  %1503 = vmatpush1.bf16.msra.mxu0 %v1235_v9 }
  0xda   : > { %8376 = vst [vmem:[#allocation15_spill] sm:$0xff] %v6155_v38  ;;  %946 = vrot.lane.b32.xlu1 %v6155_v38, %s5633_s15 }
  0xdb   : > { %v4637_v1 = vpop.permute.xlu0 %4636  ;;  %v4642_v13 = vpop.permute.xlu1 %4641  ;;  %1585 = vmatprep.subr.bf16.mxu1 %v1238_v33 }
  0xdc   : > { %v4639_v48 = vunpack.i.h.bf16 %v4637_v1  ;;  %v4638_v60 = vunpack.i.l.bf16 %v4637_v1  ;;  %v4644_v8 = vunpack.i.h.bf16 %v4642_v13  ;;  %v4643_v6 = vunpack.i.l.bf16 %v4642_v13  ;;  %1586 = vmatpush1.bf16.msra.mxu1 %v1237_v7 }
  0xdd   : > { %4816 = vrot.lane.b32.xlu0 %v5868_v26, %s8378_s22 }
  0xde   : > { %4821 = vrot.lane.b32.xlu1 %v5804_v22, %s8377_s16  ;;  %v720_v46 = vsel %vm718_vm13, %v4638_v60, %v4639_v48  ;;  %v751_v9 = vsel %vm8332_vm14, %v4643_v6, %v4644_v8 }
  0xdf   : > { %v4647_v5 = vpop.permute.xlu0 %4646  ;;  %v4652_v63 = vpop.permute.xlu1 %4651  ;;  %v1229_v37 = vpack.c.bf16 %v751_v9, %v720_v46 }
  0xe0   : > { %v4649_v50 = vunpack.i.h.bf16 %v4647_v5  ;;  %v4648_v44 = vunpack.i.l.bf16 %v4647_v5  ;;  %v4654_v19 = vunpack.i.h.bf16 %v4652_v63  ;;  %v4653_v33 = vunpack.i.l.bf16 %v4652_v63 }
  0xe1   : > { %4826 = vrot.lane.b32.xlu0 %v5804_v22, %s8379_s25  ;;  %1504 = vmatprep.subr.bf16.mxu0 %v1229_v37 }
  0xe2   : > { %840 = vrot.lane.b32.xlu1 %v5771_v16, %s8377_s16  ;;  %v719_v26 = vsel %vm718_vm13, %v4648_v44, %v4638_v60  ;;  %v750_v7 = vsel %vm8332_vm14, %v4653_v33, %v4643_v6  ;;  %v721_v1 = vsel %vm718_vm13, %v4639_v48, %v4649_v50  ;;  %v752_v13 = vsel %vm8332_vm14, %v4644_v8, %v4654_v19 }
  0xe3   : > { %v6174_v46 = vpop.permute.xlu0 %710  ;;  %v6176_v9 = vpop.permute.xlu1 %741  ;;  %v1228_v5 = vpack.c.bf16 %v750_v7, %v719_v26  ;;  %v1230_v37 = vpack.c.bf16 %v752_v13, %v721_v1  ;;  %v4489_v60 = vunpack.i.h.bf16 %v5878_v29 }
  0xe4   : > { %v722_v63 = vsel %vm718_vm13, %v4649_v50, %v6174_v46  ;;  %v753_v38 = vsel %vm8332_vm14, %v4654_v19, %v6176_v9  ;;  %vm8333_vm14 = vcmask 1014784  }
  0xe5   : > { %871 = vrot.lane.b32.xlu0 %v5771_v16, %s8379_s25  ;;  %v1231_v48 = vpack.c.bf16 %v753_v38, %v722_v63  ;;  %1505 = vmatpush1.bf16.msra.mxu0 %v1228_v5  ;;  %v657_v26 = vsel %vm656_vm0, %v4489_v60, %v5880_v31  ;;  %v4544_v60 = vunpack.i.h.bf16 %v5975_v47  ;;  %s8416_s25 = smov 124  }
  0xe6   : > { %4831 = vrot.lane.b32.xlu1 %v5804_v22, %s8380_s29 }
  0xe7   : > { %v4657_v8 = vpop.permute.xlu0 %4656  ;;  %v4662_v6 = vpop.permute.xlu1 %4661  ;;  %1587 = vmatprep.subr.bf16.mxu1 %v1231_v48 }
  0xe8   : > { %v4659_v50 = vunpack.i.h.bf16 %v4657_v8  ;;  %v4658_v44 = vunpack.i.l.bf16 %v4657_v8  ;;  %v4664_v19 = vunpack.i.h.bf16 %v4662_v6  ;;  %v4663_v33 = vunpack.i.l.bf16 %v4662_v6  ;;  %1588 = vmatpush1.bf16.msra.mxu1 %v1230_v37 }
  0xe9   : > { %4836 = vrot.lane.b32.xlu0 %v5804_v22, %s8381_s24 }
  0xea   : > { %778 = vrot.lane.b32.xlu1 %v5771_v16, %s8380_s29  ;;  %v689_v38 = vsel %vm687_vm15, %v4658_v44, %v4659_v50  ;;  %v688_v7 = vsel %vm687_vm15, %v4663_v33, %v4658_v44  ;;  %v690_v37 = vsel %vm687_vm15, %v4659_v50, %v4664_v19  ;;  %v8382_v33 = vpack.c.bf16 %v5914_v54, %v5897_v43 }
  0xeb   : > { %v6197_v1 = vpop.permute.xlu0 %679  ;;  %v4667_v13 = vpop.permute.xlu1 %4666  ;;  %v1222_v5 = vpack.c.bf16 %v689_v38, %v5884_v32  ;;  %v1221_v63 = vpack.c.bf16 %v688_v7, %v657_v26  ;;  %v1223_v32 = vpack.c.bf16 %v690_v37, %v5891_v41  ;;  %v8383_v26 = vpack.c.bf16 %v5934_v2, %v5925_v62 }
  0xec   : > { %v691_v48 = vsel %vm687_vm15, %v4664_v19, %v6197_v1  ;;  %v4669_v8 = vunpack.i.h.bf16 %v4667_v13  ;;  %v4668_v6 = vunpack.i.l.bf16 %v4667_v13  ;;  %v8384_v43 = vpack.c.bf16 %v5961_v23, %v5958_v20 }
  0xed   : > { %1506 = vmatprep.subr.bf16.mxu0 %v1222_v5  ;;  %v1224_v31 = vpack.c.bf16 %v691_v48, %v5894_v42  ;;  %809 = vrot.lane.b32.xlu0 %v5771_v16, %s8381_s24  ;;  %v564_v62 = vsel %vm563_vm4, %v4544_v60, %v5969_v39  ;;  %v8385_v48 = vpack.c.bf16 %v5937_v3, %v5911_v53  ;;  %v8388_v60 = vunpack.i.l.bf16 %v5939_v4  ;;  %s8413_s24 = smov 96  }
  0xee   : > { %4841 = vrot.lane.b32.xlu1 %v5804_v22, %s8336_s13  ;;  %1507 = vmatpush1.bf16.msra.mxu0 %v1221_v63  ;;  %v534_v50 = vsel %vm8333_vm14, %v4668_v6, %v4669_v8  ;;  %v1201_v20 = vpack.c.bf16 %v6019_v28, %v6002_v51  ;;  %v1203_v53 = vpack.c.bf16 %v6075_v30, %v6062_v52 }
  0xef   : > { %v4672_v44 = vpop.permute.xlu0 %4671  ;;  %v6211_v19 = vpop.permute.xlu1 %524  ;;  %1508 = vmatprep.subr.bf16.mxu0 %v8382_v33  ;;  %1589 = vmatprep.subr.bf16.mxu1 %v1224_v31  ;;  %v1208_v41 = vpack.c.bf16 %v5983_v55, %v534_v50  ;;  %v1194_v28 = vpack.c.bf16 %v6084_v58, %v5759_v10 }
  0xf0   : > { %v4674_v38 = vunpack.i.h.bf16 %v4672_v44  ;;  %v4673_v42 = vunpack.i.l.bf16 %v4672_v44  ;;  %1590 = vmatpush1.bf16.msra.mxu1 %v1223_v32 }
  0xf1   : > { %1591 = vmatprep.subr.bf16.mxu1 %v8383_v26  ;;  %4846 = vrot.lane.b32.xlu0 %v5804_v22, %s5629_s14 }
  0xf2   : > { %716 = vrot.lane.b32.xlu1 %v5771_v16, %s8336_s13  ;;  %v536_v7 = vsel %vm8333_vm14, %v4674_v38, %v6211_v19  ;;  %1509 = vmatpush1.bf16.msra.mxu0 %v8384_v43  ;;  %v533_v54 = vsel %vm8333_vm14, %v4673_v42, %v4668_v6  ;;  %v535_v5 = vsel %vm8333_vm14, %v4669_v8, %v4674_v38  ;;  %v8386_v8 = vunpack.i.l.bf16 %v5878_v29  ;;  %s8417_s13 = smov 126  }
  0xf3   : > { %v4677_v2 = vpop.permute.xlu1 %4676  ;;  %1510 = vmatprep.subr.bf16.mxu0 %v1208_v41  ;;  %v1210_v13 = vpack.c.bf16 %v5994_v25, %v536_v7  ;;  %v1207_v55 = vpack.c.bf16 %v564_v62, %v533_v54  ;;  %v1209_v23 = vpack.c.bf16 %v5972_v40, %v535_v5  ;;  %v6244_v39 = vpop.permute.xlu0 %4681  ;;  %v1200_v40 = vpack.c.bf16 %v6065_v24, %v6041_v35 }
  0xf4   : > { %v4679_v63 = vunpack.i.h.bf16 %v4677_v2  ;;  %v4678_v37 = vunpack.i.l.bf16 %v4677_v2  ;;  %1592 = vmatpush1.bf16.msra.mxu1 %v8385_v48  ;;  %v4684_v3 = vunpack.i.h.bf16 %v6244_v39  ;;  %v4683_v52 = vunpack.i.l.bf16 %v6244_v39 }
  0xf5   : > { %1593 = vmatprep.subr.bf16.mxu1 %v1210_v13  ;;  %747 = vrot.lane.b32.xlu0 %v5771_v16, %s5629_s14  ;;  %v1202_v29 = vpack.c.bf16 %v6035_v18, %v6016_v17  ;;  %v1196_v24 = vpack.c.bf16 %v6128_v36, %v5767_v14  ;;  %v1193_v18 = vpack.c.bf16 %v6117_v49, %v5763_v12  ;;  %v8387_v36 = vunpack.i.l.bf16 %v5916_v56  ;;  %s5636_s14 = smov 66  }
  0xf6   : > { %4851 = vrot.lane.b32.xlu1 %v5804_v22, %s5630_s12  ;;  %1511 = vmatpush1.bf16.msra.mxu0 %v1207_v55  ;;  %v6252_v6 = vsel %vm656_vm0, %v8386_v8, %v4678_v37  ;;  %v6255_v51 = vsel %vm656_vm0, %v4678_v37, %v4679_v63  ;;  %v6277_v10 = vsel %vm594_vm1, %v4683_v52, %v4684_v3  ;;  %vm1478_vm14 = vcmask 1043456  }
  0xf7   : > { %v920_v25 = vpop.permute.xlu1 %919  ;;  %1512 = vmatprep.subr.bf16.mxu0 %v1201_v20  ;;  %v1195_v14 = vpack.c.bf16 %v6095_v21, %v5761_v11  ;;  %v6290_v31 = vsel %vm594_vm1, %v8387_v36, %v4683_v52 }
  0xf8   : > { %1594 = vmatpush1.bf16.msra.mxu1 %v1209_v23  ;;  %v921_v17 = vsel %vm656_vm0, %v4679_v63, %v920_v25  ;;  %vm1066_vm0 = vcmask 252928  }
  0xf9   : > { %1595 = vmatprep.subr.bf16.mxu1 %v1203_v53  ;;  %685 = vrot.lane.b32.xlu0 %v5771_v16, %s5630_s12  ;;  %v4865_v4 = vpack.i.bf16 %v6290_v31, %v921_v17  ;;  %s8415_s12 = smov 64  }
  0xfa   : > { %4856 = vrot.lane.b32.xlu1 %v5804_v22, %s8334_s30  ;;  %1513 = vmatpush1.bf16.msra.mxu0 %v1200_v40  ;;  %v4860_v22 = vpack.i.bf16 %v6255_v51, %v6252_v6 }
  0xfb   : > { %v6268_v30 = vpop.permute.xlu1 %4686  ;;  %1514 = vmatprep.subr.bf16.mxu0 %v1194_v28 }
  0xfc   : > { %v4689_v58 = vunpack.i.h.bf16 %v6268_v30  ;;  %v4688_v35 = vunpack.i.l.bf16 %v6268_v30  ;;  %1596 = vmatpush1.bf16.msra.mxu1 %v1202_v29 }
  0xfd   : > { %1597 = vmatprep.subr.bf16.mxu1 %v1196_v24  ;;  %530 = vrot.lane.b32.xlu0 %v5771_v16, %s8334_s30  ;;  %s5637_s30 = smov 122  }
  0xfe   : > { %4861 = vrot.lane.b32.xlu1 %v4860_v22, %s5633_s15  ;;  %v6295_v32 = vsel %vm625_vm2, %v8388_v60, %v4688_v35  ;;  %1515 = vmatpush1.bf16.msra.mxu0 %v1193_v18  ;;  %v6302_v12 = vsel %vm625_vm2, %v4688_v35, %v4689_v58 }
  0xff   : > { %v4870_v11 = vpack.i.bf16 %v6295_v32, %v6277_v10  ;;  %v1220_v21 = vpack.c.bf16 %v6302_v12, %v6277_v10  ;;  %v1219_v56 = vpack.c.bf16 %v6295_v32, %v6290_v31  ;;  %v8404_v32 = vld [vmem:[#allocation10_spill] sm:$0xff] }
 0x100   : > { %1598 = vmatpush1.bf16.msra.mxu1 %v1195_v14 }
 0x101   : > { %4866 = vrot.lane.b32.xlu0 %v4865_v4, %s5633_s15 }
 0x102   : > { %4871 = vrot.lane.b32.xlu1 %v4870_v11, %s5633_s15 }
 0x10b   : > { %v4692_v49 = vpop.permute.xlu0 %4691 }
 0x10c   : > { %v4694_v50 = vunpack.i.h.bf16 %v4692_v49  ;;  %v4693_v44 = vunpack.i.l.bf16 %v4692_v49 }
 0x10e   : > { %v1123_v33 = vsel %vm1066_vm0, %v4693_v44, %v4694_v50 }
 0x10f   : > { %v4697_v38 = vpop.permute.xlu1 %4696  ;;  %v6314_v42 = vpop.permute.xlu0 %4701  ;;  %v1277_v43 = vpack.c.bf16 %v1123_v33, %v1123_v33 }
 0x110   : > { %v4699_v26 = vunpack.i.h.bf16 %v4697_v38  ;;  %v4698_v41 = vunpack.i.l.bf16 %v4697_v38  ;;  %v4703_v7 = vunpack.i.l.bf16 %v6314_v42  ;;  %v4704_v25 = vunpack.i.h.bf16 %v6314_v42 }
 0x111   : > { %v1480_v37 = vsel %vm1478_vm14, %v1277_v43, 0 }
 0x112   : > { %v1124_v54 = vsel %vm1066_vm0, %v4694_v50, %v4698_v41  ;;  %v1126_v62 = vsel %vm1066_vm0, %v4699_v26, %v4703_v7  ;;  %v1125_v2 = vsel %vm1066_vm0, %v4698_v41, %v4699_v26 }
 0x113   : > { %v4707_v13 = vpop.permute.xlu1 %4706  ;;  %v1278_v55 = vpack.c.bf16 %v1124_v54, %v1124_v54  ;;  %v1280_v5 = vpack.c.bf16 %v1126_v62, %v1126_v62  ;;  %v1279_v63 = vpack.c.bf16 %v1125_v2, %v1125_v2 }
 0x114   : > { %v4708_v20 = vunpack.i.l.bf16 %v4707_v13  ;;  %v4709_v53 = vunpack.i.h.bf16 %v4707_v13 }
 0x115   : > { %4150 = vmatprep.subr.msk.bf16.mxu0 %vm1478_vm14, %v1278_v55  ;;  %4159 = vmatprep.subr.msk.bf16.mxu1 %vm1478_vm14, %v1280_v5  ;;  %v1486_v48 = vsel %vm1478_vm14, %v1279_v63, 0 }
 0x116   : > { %1523 = vmatpush2.bf16.msra.mxu0 %v1480_v37  ;;  %1606 = vmatpush2.bf16.msra.mxu1 %v1486_v48  ;;  %v1110_v28 = vsel %vm1066_vm0, %v4704_v25, %v4708_v20 }
 0x117   : > { %v4712_v23 = vpop.permute.xlu0 %4711  ;;  %v6329_v29 = vpop.permute.xlu1 %4721 }
 0x118   : > { %v4713_v8 = vunpack.i.l.bf16 %v4712_v23  ;;  %v4714_v40 = vunpack.i.h.bf16 %v4712_v23  ;;  %v4724_v17 = vunpack.i.h.bf16 %v6329_v29  ;;  %v4723_v4 = vunpack.i.l.bf16 %v6329_v29 }
 0x11a   : > { %v1117_v52 = vsel %vm1066_vm0, %v4709_v53, %v4713_v8  ;;  %v1109_v14 = vsel %vm1066_vm0, %v4714_v40, %v4704_v25  ;;  %v1118_v26 = vsel %vm1066_vm0, %v4713_v8, %v4724_v17 }
 0x11b   : > { %v4717_v24 = vpop.permute.xlu0 %4716  ;;  %v1271_v22 = vpack.c.bf16 %v1117_v52, %v1110_v28 }
 0x11c   : > { %v4719_v35 = vunpack.i.h.bf16 %v4717_v24  ;;  %v4718_v18 = vunpack.i.l.bf16 %v4717_v24 }
 0x11d   : > { %1524 = vmatprep.subr.bf16.mxu0 %v1271_v22 }
 0x11e   : > { %v1116_v36 = vsel %vm1066_vm0, %v4718_v18, %v4709_v53  ;;  %v1111_v50 = vsel %vm1066_vm0, %v4708_v20, %v4719_v35  ;;  %v1112_v33 = vsel %vm1066_vm0, %v4719_v35, %v4723_v4  ;;  %v4549_v18 = vunpack.i.h.bf16 %v5986_v59 }
 0x11f   : > { %v6334_v60 = vpop.permute.xlu0 %4726  ;;  %v1270_v11 = vpack.c.bf16 %v1116_v36, %v1109_v14  ;;  %v4737_v44 = vpop.permute.xlu1 %4736  ;;  %v1272_v54 = vpack.c.bf16 %v1118_v26, %v1111_v50  ;;  %v8389_v26 = vunpack.i.l.bf16 %v5986_v59 }
 0x120   : > { %v4728_v49 = vunpack.i.l.bf16 %v6334_v60  ;;  %v4738_v62 = vunpack.i.l.bf16 %v4737_v44  ;;  %v4729_v2 = vunpack.i.h.bf16 %v6334_v60  ;;  %v4739_v5 = vunpack.i.h.bf16 %v4737_v44 }
 0x121   : > { %1525 = vmatpush2.bf16.msra.mxu0 %v1270_v11 }
 0x122   : > { %v1119_v38 = vsel %vm1066_vm0, %v4724_v17, %v4728_v49  ;;  %v1095_v28 = vsel %vm1066_vm0, %v4739_v5, %v4729_v2 }
 0x123   : > { %v4732_v41 = vpop.permute.xlu0 %4731  ;;  %v1273_v43 = vpack.c.bf16 %v1119_v38, %v1112_v33 }
 0x124   : > { %v4734_v13 = vunpack.i.h.bf16 %v4732_v41  ;;  %v4733_v55 = vunpack.i.l.bf16 %v4732_v41  ;;  %v907_v41 = vsel %vm902_vm3, %v8389_v26, %v4549_v18 }
 0x125   : > { %1607 = vmatprep.subr.bf16.mxu1 %v1273_v43 }
 0x126   : > { %1608 = vmatpush2.bf16.msra.mxu1 %v1272_v54  ;;  %v1096_v63 = vsel %vm1066_vm0, %v4729_v2, %v4733_v55  ;;  %v1103_v37 = vsel %vm1066_vm0, %v4734_v13, %v4738_v62 }
 0x127   : > { %v6349_v48 = vpop.permute.xlu1 %4746  ;;  %v4742_v20 = vpop.permute.xlu0 %4741  ;;  %v1264_v23 = vpack.c.bf16 %v1103_v37, %v1096_v63 }
 0x128   : > { %v4743_v25 = vunpack.i.l.bf16 %v4742_v20  ;;  %v4749_v53 = vunpack.i.h.bf16 %v6349_v48  ;;  %v4744_v8 = vunpack.i.h.bf16 %v4742_v20  ;;  %v4748_v40 = vunpack.i.l.bf16 %v6349_v48 }
 0x129   : > { %1526 = vmatprep.subr.bf16.mxu0 %v1264_v23 }
 0x12a   : > { %v1102_v52 = vsel %vm1066_vm0, %v4743_v25, %v4734_v13  ;;  %v1097_v11 = vsel %vm1066_vm0, %v4733_v55, %v4744_v8  ;;  %v1104_v50 = vsel %vm1066_vm0, %v4738_v62, %v4749_v53  ;;  %v1098_v44 = vsel %vm1066_vm0, %v4744_v8, %v4748_v40 }
 0x12b   : > { %v914_v24 = vpop.permute.xlu1 %913  ;;  %v6355_v22 = vpop.permute.xlu0 %4751  ;;  %v1263_v35 = vpack.c.bf16 %v1102_v52, %v1095_v28  ;;  %v1265_v54 = vpack.c.bf16 %v1104_v50, %v1097_v11 }
 0x12c   : > { %v915_v17 = vsel %vm594_vm1, %v4684_v3, %v914_v24  ;;  %v4753_v14 = vunpack.i.l.bf16 %v6355_v22  ;;  %v4754_v13 = vunpack.i.h.bf16 %v6355_v22  ;;  %v8390_v24 = vunpack.i.l.bf16 %v5975_v47 }
 0x12d   : > { %v4875_v36 = vpack.i.bf16 %v915_v17, %v6302_v12  ;;  %1527 = vmatpush2.bf16.msra.mxu0 %v1263_v35  ;;  %vm8397_vm1 = vcmask 515072  }
 0x12e   : > { %v1105_v33 = vsel %vm1066_vm0, %v4749_v53, %v4753_v14 }
 0x12f   : > { %v4757_v39 = vpop.permute.xlu1 %4756  ;;  %4876 = vrot.lane.b32.xlu0 %v4875_v36, %s5633_s15  ;;  %v917_v3 = vpop.permute.xlu0 %916  ;;  %v1266_v38 = vpack.c.bf16 %v1105_v33, %v1098_v44 }
 0x130   : > { %v918_v43 = vsel %vm625_vm2, %v4689_v58, %v917_v3  ;;  %v4758_v2 = vunpack.i.l.bf16 %v4757_v39  ;;  %v4759_v63 = vunpack.i.h.bf16 %v4757_v39  ;;  %vm8398_vm2 = vmmov %vm8397_vm1 }
 0x131   : > { %v4880_v62 = vpack.i.bf16 %v907_v41, %v918_v43  ;;  %1609 = vmatprep.subr.bf16.mxu1 %v1266_v38 }
 0x132   : > { %1610 = vmatpush2.bf16.msra.mxu1 %v1265_v54  ;;  %v1082_v58 = vsel %vm1066_vm0, %v4754_v13, %v4758_v2 }
 0x133   : > { %v4767_v55 = vpop.permute.xlu1 %4766  ;;  %4881 = vrot.lane.b32.xlu1 %v4880_v62, %s5633_s15  ;;  %v4762_v5 = vpop.permute.xlu0 %4761 }
 0x134   : > { %v4769_v37 = vunpack.i.h.bf16 %v4767_v55  ;;  %v4768_v59 = vunpack.i.l.bf16 %v4767_v55  ;;  %v4763_v20 = vunpack.i.l.bf16 %v4762_v5  ;;  %v4764_v23 = vunpack.i.h.bf16 %v4762_v5 }
 0x136   : > { %v6381_v30 = vsel %vm563_vm4, %v4768_v59, %v4769_v37  ;;  %v1089_v25 = vsel %vm1066_vm0, %v4759_v63, %v4763_v20  ;;  %v6388_v35 = vsel %vm563_vm4, %v8390_v24, %v4768_v59  ;;  %v1081_v44 = vsel %vm1066_vm0, %v4764_v23, %v4754_v13 }
 0x137   : > { %v4772_v53 = vpop.permute.xlu1 %4771  ;;  %v901_v8 = vpop.permute.xlu0 %900  ;;  %v1257_v28 = vpack.c.bf16 %v1089_v25, %v1082_v58 }
 0x138   : > { %v4773_v52 = vunpack.i.l.bf16 %v4772_v53  ;;  %v908_v17 = vsel %vm902_vm3, %v4549_v18, %v901_v8  ;;  %v4890_v36 = vpack.i.bf16 %v901_v8, %v6381_v30  ;;  %v4774_v50 = vunpack.i.h.bf16 %v4772_v53  ;;  %vm8399_vm3 = vmmov %vm8397_vm1 }
 0x139   : > { %v4885_v11 = vpack.i.bf16 %v6388_v35, %v908_v17  ;;  %1528 = vmatprep.subr.bf16.mxu0 %v1257_v28 }
 0x13a   : > { %4891 = vrot.lane.b32.xlu1 %v4890_v36, %s5633_s15  ;;  %v1088_v33 = vsel %vm1066_vm0, %v4773_v52, %v4759_v63  ;;  %v1083_v54 = vsel %vm1066_vm0, %v4758_v2, %v4774_v50 }
 0x13b   : > { %v6396_v39 = vpop.permute.xlu1 %4781  ;;  %4886 = vrot.lane.b32.xlu0 %v4885_v11, %s5633_s15  ;;  %v6399_v47 = vpop.permute.xlu0 %4776  ;;  %v1256_v3 = vpack.c.bf16 %v1088_v33, %v1081_v44 }
 0x13c   : > { %v4783_v18 = vunpack.i.l.bf16 %v6396_v39  ;;  %v4779_v38 = vunpack.i.h.bf16 %v6399_v47  ;;  %v4778_v26 = vunpack.i.l.bf16 %v6399_v47  ;;  %v4784_v53 = vunpack.i.h.bf16 %v6396_v39 }
 0x13d   : > { %1529 = vmatpush2.bf16.msra.mxu0 %v1256_v3 }
 0x13e   : > { %v1084_v41 = vsel %vm1066_vm0, %v4774_v50, %v4778_v26  ;;  %v1091_v43 = vsel %vm1066_vm0, %v4779_v38, %v4783_v18  ;;  %v1090_v62 = vsel %vm1066_vm0, %v4763_v20, %v4779_v38  ;;  %v8391_v20 = vunpack.i.h.bf16 %v6011_v57 }
 0x13f   : > { %v4787_v13 = vpop.permute.xlu1 %4786  ;;  %v911_v55 = vpop.permute.xlu0 %910  ;;  %v1259_v5 = vpack.c.bf16 %v1091_v43, %v1084_v41  ;;  %v1258_v63 = vpack.c.bf16 %v1090_v62, %v1083_v54  ;;  %v8392_v62 = vunpack.i.h.bf16 %v6025_v45 }
 0x140   : > { %v4789_v59 = vunpack.i.h.bf16 %v4787_v13  ;;  %v4788_v23 = vunpack.i.l.bf16 %v4787_v13  ;;  %v912_v2 = vsel %vm563_vm4, %v4769_v37, %v911_v55 }
 0x141   : > { %1611 = vmatprep.subr.bf16.mxu1 %v1259_v5 }
 0x142   : > { %1612 = vmatpush2.bf16.msra.mxu1 %v1258_v63  ;;  %v1068_v36 = vsel %vm1066_vm0, %v4784_v53, %v4788_v23 }
 0x143   : > { %v4797_v58 = vpop.permute.xlu1 %4796  ;;  %v4792_v25 = vpop.permute.xlu0 %4791 }
 0x144   : > { %v4799_v8 = vunpack.i.h.bf16 %v4797_v58  ;;  %v4798_v28 = vunpack.i.l.bf16 %v4797_v58  ;;  %v4793_v52 = vunpack.i.l.bf16 %v4792_v25  ;;  %v4794_v24 = vunpack.i.h.bf16 %v4792_v25 }
 0x146   : > { %v6417_v17 = vsel %vm470_vm5, %v8391_v20, %v4798_v28  ;;  %v1075_v11 = vsel %vm1066_vm0, %v4789_v59, %v4793_v52  ;;  %v6423_v38 = vsel %vm470_vm5, %v4798_v28, %v4799_v8  ;;  %v1067_v57 = vsel %vm1066_vm0, %v4794_v24, %v4784_v53 }
 0x147   : > { %v4807_v50 = vpop.permute.xlu1 %4806  ;;  %v4802_v44 = vpop.permute.xlu0 %4801  ;;  %v4895_v33 = vpack.i.bf16 %v6417_v17, %v912_v2  ;;  %v1250_v3 = vpack.c.bf16 %v1075_v11, %v1068_v36  ;;  %v8393_v36 = vld [vmem:[#allocation5_spill] sm:$0xff] }
 0x148   : > { %v4808_v41 = vunpack.i.l.bf16 %v4807_v50  ;;  %v4804_v43 = vunpack.i.h.bf16 %v4802_v44  ;;  %v4803_v37 = vunpack.i.l.bf16 %v4802_v44  ;;  %v4809_v54 = vunpack.i.h.bf16 %v4807_v50 }
 0x149   : > { %4896 = vrot.lane.b32.xlu0 %v4895_v33, %s5633_s15  ;;  %1530 = vmatprep.subr.bf16.mxu0 %v1250_v3 }
 0x14a   : > { %v6430_v13 = vsel %vm501_vm6, %v8392_v62, %v4803_v37  ;;  %v6433_v55 = vsel %vm501_vm6, %v4803_v37, %v4804_v43  ;;  %v1074_v5 = vsel %vm1066_vm0, %v4808_v41, %v4789_v59  ;;  %v1069_v2 = vsel %vm1066_vm0, %v4788_v23, %v4809_v54  ;;  %v6458_v62 = vld [vmem:[%s8283_s1 + $0x14] ss:$8 sps:$4 sm:$0xff]   ;;  %v6464_v23 = vld [vmem:[%s8283_s1] ss:$8 sps:$4 sm:$0xff]  }
 0x14b   : > { %v6438_v58 = vpop.permute.xlu0 %4811  ;;  %v4905_v25 = vpack.i.bf16 %v4799_v8, %v6433_v55  ;;  %v4900_v53 = vpack.i.bf16 %v6430_v13, %v6423_v38  ;;  %v1249_v28 = vpack.c.bf16 %v1074_v5, %v1067_v57  ;;  %v4910_v11 = vpack.i.bf16 %v8393_v36, %v4804_v43 }
 0x14c   : > { %v6436_v63 = vpop.permute.xlu1 %946  ;;  %v4814_v45 = vunpack.i.h.bf16 %v6438_v58  ;;  %v4813_v24 = vunpack.i.l.bf16 %v6438_v58  ;;  %v8394_v43 = vunpack.i.h.bf16 %v6055_v61  ;;  %vm8401_vm6 = vcmask 1014784  }
 0x14d   : > { %4906 = vrot.lane.b32.xlu0 %v4905_v25, %s5633_s15  ;;  %4901 = vrot.lane.b32.xlu1 %v4900_v53, %s5633_s15 }
 0x14e   : > { %1531 = vmatpush2.bf16.msra.mxu0 %v1249_v28  ;;  %v1070_v59 = vsel %vm1066_vm0, %v4809_v54, %v4813_v24  ;;  %v1077_v8 = vsel %vm1066_vm0, %v4814_v45, %v6436_v63  ;;  %v1076_v20 = vsel %vm1066_vm0, %v4793_v52, %v4814_v45  ;;  %v8395_v28 = vld [vmem:[#allocation7_spill] sm:$0xff] }
 0x14f   : > { %v4817_v44 = vpop.permute.xlu0 %4816  ;;  %v1252_v33 = vpack.c.bf16 %v1077_v8, %v1070_v59  ;;  %v1251_v3 = vpack.c.bf16 %v1076_v20, %v1069_v2 }
 0x150   : > { %v4822_v50 = vpop.permute.xlu1 %4821  ;;  %v4819_v37 = vunpack.i.h.bf16 %v4817_v44  ;;  %v4818_v57 = vunpack.i.l.bf16 %v4817_v44 }
 0x151   : > { %v4824_v41 = vunpack.i.h.bf16 %v4822_v50  ;;  %4911 = vrot.lane.b32.xlu1 %v4910_v11, %s5633_s15  ;;  %1613 = vmatprep.subr.bf16.mxu1 %v1252_v33  ;;  %v4823_v52 = vunpack.i.l.bf16 %v4822_v50  ;;  %v8396_v11 = vld [vmem:[#allocation14_spill] sm:$0xff] }
 0x152   : > { %v6469_v54 = vsel %vm439_vm7, %v8394_v43, %v4818_v57  ;;  %v6472_v5 = vsel %vm439_vm7, %v4818_v57, %v4819_v37  ;;  %1614 = vmatpush2.bf16.msra.mxu1 %v1251_v3  ;;  %1533 = vmatmul.mubr.bf16.vlgmr.msra.gmra.mxu0 %v6464_v23 }
 0x153   : > { %v4827_v53 = vpop.permute.xlu0 %4826  ;;  %v4915_v45 = vpack.i.bf16 %v6469_v54, %v8395_v28  ;;  %v4920_v59 = vpack.i.bf16 %v5771_v16, %v6472_v5  ;;  %1749 = vmatprep.subr.bf16.mxu1 %v5634_v15  ;;  %v848_v2 = vsel %vm842_vm8, %v4823_v52, %v4824_v41  ;;  %4152 = vmatprep.mubr.msk.bf16.mxu0 %vm1453_vm12, %v6458_v62 }
 0x154   : > { %v841_v25 = vpop.permute.xlu1 %840  ;;  %v4829_v61 = vunpack.i.h.bf16 %v4827_v53  ;;  %v4828_v8 = vunpack.i.l.bf16 %v4827_v53  ;;  %v847_v20 = vsel %vm842_vm8, %v6102_v0, %v4823_v52  ;;  %v6495_v53 = vld [vmem:[%s8283_s1 + $0x10] ss:$8 sps:$4 sm:$0xff]   ;;  %v1300_v0 = vld [vmem:[%s8284_s2] sm:$0xff] }
 0x155   : > { %4916 = vrot.lane.b32.xlu0 %v4915_v45, %s5633_s15  ;;  %4921 = vrot.lane.b32.xlu1 %v4920_v59, %s5633_s15  ;;  %v849_v16 = vsel %vm842_vm8, %v4824_v41, %v841_v25  ;;  %v6506_v25 = vld [vmem:[%s8283_s1 + $0x24] ss:$8 sps:$4 sm:$0xff]  }
 0x156   : > { %v878_v50 = vsel %vm873_vm9, %v8396_v11, %v4828_v8  ;;  %1616 = vmatmul.mubr.bf16.vlgmr.msra.gmra.mxu1 %v6464_v23  ;;  %v879_v44 = vsel %vm873_vm9, %v4828_v8, %v4829_v61 }
 0x157   : > { %v872_v3 = vpop.permute.xlu0 %871  ;;  %v1247_v57 = vpack.c.bf16 %v879_v44, %v848_v2  ;;  %v1246_v43 = vpack.c.bf16 %v878_v50, %v847_v20  ;;  %4161 = vmatprep.mubr.msk.bf16.mxu1 %vm1453_vm12, %v6458_v62 }
 0x158   : > { %v4832_v33 = vpop.permute.xlu1 %4831  ;;  %v880_v52 = vsel %vm873_vm9, %v4829_v61, %v872_v3  ;;  %vm8402_vm9 = vmmov %vm8401_vm6 }
 0x159   : > { %v4834_v41 = vunpack.i.h.bf16 %v4832_v33  ;;  %v1248_v45 = vpack.c.bf16 %v880_v52, %v849_v16  ;;  %952 = vrot.lane.b32.xlu0 %v4819_v37, %s5633_s15  ;;  %1666 = vmatprep.subr.bf16.mxu0 %v1247_v57  ;;  %v4833_v59 = vunpack.i.l.bf16 %v4832_v33  ;;  %s5638_s15 = smov 56  }
 0x15a   : > { %1667 = vmatpush1.bf16.msra.mxu0 %v1246_v43  ;;  %1318 = vperm.xlu1 %4925, %v1300_v0   ;;  %v6524_v43 = vld [vmem:[%s8283_s1 + $0x20] ss:$8 sps:$4 sm:$0xff]  }
 0x15b   : > { %v4837_v2 = vpop.permute.xlu0 %4836  ;;  %1750 = vmatpush1.bf16.msra.mxu1 %v1248_v45  ;;  %1541 = vmatmul.mubr.bf16.gmra.mxu0 %v6495_v53  ;;  %v786_v61 = vsel %vm780_vm10, %v4833_v59, %v4834_v41  ;;  %v785_v37 = vsel %vm780_vm10, %v6140_v27, %v4833_v59 }
 0x15c   : > { %v779_v8 = vpop.permute.xlu1 %778  ;;  %v4839_v20 = vunpack.i.h.bf16 %v4837_v2  ;;  %v4838_v11 = vunpack.i.l.bf16 %v4837_v2  ;;  %1751 = vmatprep.subr.bf16.mxu1 %v5634_v15  ;;  %4153 = vmatprep.mubr.msk.bf16.mxu0 %vm1453_vm12, %v6506_v25 }
 0x15d   : > { %v787_v44 = vsel %vm780_vm10, %v4834_v41, %v779_v8 }
 0x15e   : > { %v816_v16 = vsel %vm811_vm11, %v6142_v34, %v4838_v11  ;;  %v817_v50 = vsel %vm811_vm11, %v4838_v11, %v4839_v20  ;;  %1624 = vmatmul.mubr.bf16.gmra.mxu1 %v6495_v53  ;;  %v6531_v34 = vld [vmem:[%s8283_s1 + $0x34] ss:$8 sps:$4 sm:$0xff]  }
 0x15f   : > { %v1240_v3 = vpack.c.bf16 %v817_v50, %v786_v61  ;;  %v1239_v57 = vpack.c.bf16 %v816_v16, %v785_v37  ;;  %4162 = vmatprep.mubr.msk.bf16.mxu1 %vm1453_vm12, %v6506_v25  ;;  %v810_v27 = vpop.permute.xlu0 %809 }
 0x160   : > { %v4842_v33 = vpop.permute.xlu1 %4841  ;;  %v818_v41 = vsel %vm811_vm11, %v4839_v20, %v810_v27  ;;  %vm8403_vm11 = vmmov %vm8401_vm6 }
 0x161   : > { %v4844_v0 = vunpack.i.h.bf16 %v4842_v33  ;;  %1668 = vmatprep.subr.bf16.mxu0 %v1240_v3  ;;  %v1241_v52 = vpack.c.bf16 %v818_v41, %v787_v44  ;;  %v4843_v45 = vunpack.i.l.bf16 %v4842_v33 }
 0x162   : > { %1669 = vmatpush1.bf16.msra.mxu0 %v1239_v57 }
 0x163   : > { %1547 = vmatmul.mubr.bf16.gmra.mxu0 %v6524_v43  ;;  %v4847_v8 = vpop.permute.xlu0 %4846  ;;  %1752 = vmatpush1.bf16.msra.mxu1 %v1241_v52  ;;  %v724_v61 = vsel %vm718_vm13, %v4843_v45, %v4844_v0  ;;  %v723_v20 = vsel %vm718_vm13, %v6174_v46, %v4843_v45  ;;  %v6551_v46 = vld [vmem:[%s8283_s1 + $0x30] ss:$8 sps:$4 sm:$0xff]  }
 0x164   : > { %v717_v59 = vpop.permute.xlu1 %716  ;;  %4154 = vmatprep.mubr.msk.bf16.mxu0 %vm1453_vm12, %v6531_v34  ;;  %v4849_v2 = vunpack.i.h.bf16 %v4847_v8  ;;  %v4848_v11 = vunpack.i.l.bf16 %v4847_v8  ;;  %1753 = vmatprep.subr.bf16.mxu1 %v5634_v15 }
 0x165   : > { %v725_v37 = vsel %vm718_vm13, %v4844_v0, %v717_v59  ;;  %v6560_v59 = vld [vmem:[%s8283_s1 + $0x44] ss:$8 sps:$4 sm:$0xff]  }
 0x166   : > { %1630 = vmatmul.mubr.bf16.gmra.mxu1 %v6524_v43  ;;  %v754_v16 = vsel %vm8397_vm1, %v6176_v9, %v4848_v11  ;;  %v755_v44 = vsel %vm8398_vm2, %v4848_v11, %v4849_v2  ;;  %vm8419_vm1 = vmmov %vm8401_vm6  ;;  %vm2014_vm2 = vcmask 982016  }
 0x167   : > { %4163 = vmatprep.mubr.msk.bf16.mxu1 %vm1453_vm12, %v6531_v34  ;;  %v748_v57 = vpop.permute.xlu0 %747  ;;  %v1233_v27 = vpack.c.bf16 %v755_v44, %v724_v61  ;;  %v1232_v41 = vpack.c.bf16 %v754_v16, %v723_v20  ;;  %v8400_v61 = vld [vmem:[#allocation8_spill] sm:$0xff] }
 0x168   : > { %v4852_v50 = vpop.permute.xlu1 %4851  ;;  %v756_v0 = vsel %vm8399_vm3, %v4849_v2, %v748_v57  ;;  %v6589_v57 = vld [vmem:[%s8283_s1 + $0x54] ss:$8 sps:$4 sm:$0xff]   ;;  %vm8420_vm3 = vmmov %vm8419_vm1 }
 0x169   : > { %v4854_v33 = vunpack.i.h.bf16 %v4852_v50  ;;  %v4853_v3 = vunpack.i.l.bf16 %v4852_v50  ;;  %v1234_v52 = vpack.c.bf16 %v756_v0, %v725_v37  ;;  %1670 = vmatprep.subr.bf16.mxu0 %v1233_v27 }
 0x16a   : > { %1671 = vmatpush1.bf16.msra.mxu0 %v1232_v41 }
 0x16b   : > { %v692_v9 = vsel %vm687_vm15, %v6197_v1, %v4853_v3  ;;  %v693_v45 = vsel %vm687_vm15, %v4853_v3, %v4854_v33  ;;  %v686_v50 = vpop.permute.xlu0 %685  ;;  %1754 = vmatpush1.bf16.msra.mxu1 %v1234_v52  ;;  %1553 = vmatmul.mubr.bf16.gmra.mxu0 %v6551_v46  ;;  %v1205_v52 = vpack.c.bf16 %v6430_v13, %v6417_v17 }
 0x16c   : > { %v4857_v8 = vpop.permute.xlu1 %4856  ;;  %v1226_v11 = vpack.c.bf16 %v693_v45, %v6252_v6  ;;  %v1225_v20 = vpack.c.bf16 %v692_v9, %v8400_v61  ;;  %v694_v1 = vsel %vm687_vm15, %v4854_v33, %v686_v50  ;;  %1755 = vmatprep.subr.bf16.mxu1 %v5634_v15  ;;  %4155 = vmatprep.mubr.msk.bf16.mxu0 %vm1453_vm12, %v6560_v59  ;;  %v6625_v45 = vld [vmem:[%s8283_s1 + $0x64] ss:$8 sps:$4 sm:$0xff]   ;;  %vm8418_vm15 = vmmov %vm8401_vm6 }
 0x16d   : > { %v4859_v16 = vunpack.i.h.bf16 %v4857_v8  ;;  %v4858_v2 = vunpack.i.l.bf16 %v4857_v8  ;;  %v1227_v37 = vpack.c.bf16 %v694_v1, %v6255_v51  ;;  %v6581_v51 = vld [vmem:[%s8283_s1 + $0x40] ss:$8 sps:$4 sm:$0xff]   ;;  %v1198_v17 = vpack.c.bf16 %v6469_v54, %v8393_v36 }
 0x16e   : > { %1672 = vmatprep.subr.bf16.mxu0 %v1226_v11  ;;  %1636 = vmatmul.mubr.bf16.gmra.mxu1 %v6551_v46  ;;  %v1206_v13 = vpack.c.bf16 %v6433_v55, %v6423_v38  ;;  %v8408_v8 = vld [vmem:[#allocation12_spill] sm:$0xff]  ;;  %v8409_v11 = vld [vmem:[#allocation13_spill] sm:$0xff]  ;;  %v8411_v38 = vld [vmem:[#allocation6_spill] sm:$0xff]  ;;  %v1199_v50 = vpack.c.bf16 %v6472_v5, %v8395_v28 }
 0x16f   : > { %1673 = vmatpush1.bf16.msra.mxu0 %v1225_v20  ;;  %v538_v6 = vsel %vm8401_vm6, %v4858_v2, %v4859_v16  ;;  %4164 = vmatprep.mubr.msk.bf16.mxu1 %vm1453_vm12, %v6560_v59  ;;  %v531_v44 = vpop.permute.xlu0 %530  ;;  %v537_v33 = vsel %vm8402_vm9, %v6211_v19, %v4858_v2  ;;  %v8410_v61 = vpack.c.bf16 %v8408_v8, %v8409_v11  ;;  %v8412_v55 = vld [vmem:[#allocation15_spill] sm:$0xff]  ;;  %vm8421_vm6 = vmmov %vm8419_vm1  ;;  %vm2126_vm9 = vcmask 457728  }
 0x170   : > { %1674 = vmatprep.subr.bf16.mxu0 %v1219_v56  ;;  %1756 = vmatpush1.bf16.msra.mxu1 %v1227_v37  ;;  %v1212_v3 = vpack.c.bf16 %v6388_v35, %v538_v6  ;;  %v539_v31 = vsel %vm8403_vm11, %v4859_v16, %v531_v44  ;;  %v8405_v56 = vld [vmem:[#allocation9_spill] sm:$0xff]  ;;  %v4862_v41 = vpop.permute.xlu1 %4861  ;;  %v8407_v35 = vld [vmem:[#allocation11_spill] sm:$0xff]  ;;  %v1197_v54 = vpack.c.bf16 %v8412_v55, %v8411_v38  ;;  %vm8422_vm11 = vmmov %vm8419_vm1 }
 0x171   : > { %1757 = vmatprep.subr.bf16.mxu1 %v5634_v15  ;;  %v8406_v27 = vpack.c.bf16 %v8404_v32, %v8405_v56  ;;  %v1211_v0 = vpack.c.bf16 %v8407_v35, %v537_v33  ;;  %v1213_v9 = vpack.c.bf16 %v6381_v30, %v539_v31  ;;  %v4864_v10 = vunpack.i.h.bf16 %v4862_v41  ;;  %v6616_v30 = vld [vmem:[%s8283_s1 + $0x50] ss:$8 sps:$4 sm:$0xff]   ;;  %v6657_v28 = vld [vmem:[%s8283_s1 + $0x74] ss:$8 sps:$4 sm:$0xff]   ;;  %v5553_v44 = vld [vmem:[%s8283_s1 + $0x4] ss:$8 sps:$4 sm:$0xff]  }
 0x172   : > { %v4863_v12 = vunpack.i.l.bf16 %v4862_v41  ;;  %v6670_v6 = vld [vmem:[%s8283_s1 + $0x70] ss:$8 sps:$4 sm:$0xff]  }
 0x173   : > { %1675 = vmatpush1.bf16.msra.mxu0 %v8406_v27  ;;  %v6598_v19 = vpop.permute.xlu0 %4866 }
 0x174   : > { %1676 = vmatprep.subr.bf16.mxu0 %v1212_v3  ;;  %1758 = vmatpush1.bf16.msra.mxu1 %v1220_v21  ;;  %v4868_v21 = vunpack.i.l.bf16 %v6598_v19  ;;  %v1128_v20 = vsel %vm1066_vm0, %v4863_v12, %v4864_v10  ;;  %v1127_v16 = vsel %vm1066_vm0, %v4703_v7, %v4863_v12  ;;  %v6651_v7 = vld [vmem:[%s8283_s1 + $0x60] ss:$8 sps:$4 sm:$0xff]   ;;  %v4872_v33 = vpop.permute.xlu1 %4871  ;;  %v4869_v31 = vunpack.i.h.bf16 %v6598_v19 }
 0x175   : > { %1759 = vmatprep.subr.bf16.mxu1 %v5634_v15  ;;  %1559 = vmatmul.mubr.bf16.gmra.mxu0 %v6581_v51  ;;  %v1282_v2 = vpack.c.bf16 %v1128_v20, %v1128_v20  ;;  %v1281_v1 = vpack.c.bf16 %v1127_v16, %v1127_v16  ;;  %v4874_v3 = vunpack.i.h.bf16 %v4872_v33  ;;  %v4873_v32 = vunpack.i.l.bf16 %v4872_v33 }
 0x176   : > { %4156 = vmatprep.mubr.msk.bf16.mxu0 %vm1453_vm12, %v6589_v57  ;;  %1642 = vmatmul.mubr.bf16.gmra.mxu1 %v6581_v51  ;;  %v1129_v36 = vsel %vm1066_vm0, %v4864_v10, %v4868_v21  ;;  %v1113_v35 = vsel %vm1066_vm0, %v4723_v4, %v4869_v31 }
 0x177   : > { %1677 = vmatpush1.bf16.msra.mxu0 %v1211_v0  ;;  %4165 = vmatprep.mubr.msk.bf16.mxu1 %vm1453_vm12, %v6589_v57  ;;  %v1283_v42 = vpack.c.bf16 %v1129_v36, %v1129_v36  ;;  %v1492_v5 = vsel %vm1478_vm14, %v1281_v1, 0  ;;  %v1120_v41 = vsel %vm1066_vm0, %v4728_v49, %v4874_v3 }
 0x178   : > { %1678 = vmatprep.subr.bf16.mxu0 %v1205_v52  ;;  %1760 = vmatpush1.bf16.msra.mxu1 %v1213_v9  ;;  %v1114_v9 = vsel %vm1066_vm0, %v4869_v31, %v4873_v32  ;;  %v1274_v19 = vpack.c.bf16 %v1120_v41, %v1113_v35 }
 0x179   : > { %1761 = vmatprep.subr.bf16.mxu1 %v5634_v15  ;;  %v1498_v37 = vsel %vm1478_vm14, %v1283_v42, 0 }
 0x17b   : > { %1679 = vmatpush1.bf16.msra.mxu0 %v8410_v61 }
 0x17c   : > { %1680 = vmatprep.subr.bf16.mxu0 %v1198_v17  ;;  %1762 = vmatpush1.bf16.msra.mxu1 %v1206_v13 }
 0x17d   : > { %1763 = vmatprep.subr.bf16.mxu1 %v5634_v15  ;;  %1565 = vmatmul.mubr.bf16.gmra.mxu0 %v6616_v30 }
 0x17e   : > { %4157 = vmatprep.mubr.msk.bf16.mxu0 %vm1453_vm12, %v6625_v45  ;;  %1648 = vmatmul.mubr.bf16.gmra.mxu1 %v6616_v30 }
 0x17f   : > { %1681 = vmatpush1.bf16.msra.mxu0 %v1197_v54  ;;  %4166 = vmatprep.mubr.msk.bf16.mxu1 %vm1453_vm12, %v6625_v45 }
 0x180   : > { %4168 = vmatprep.subr.msk.bf16.mxu0 %vm1478_vm14, %v1282_v2  ;;  %1764 = vmatpush1.bf16.msra.mxu1 %v1199_v50 }
 0x181   : > { %1771 = vmatprep.subr.bf16.mxu1 %v5634_v15 }
 0x183   : > { %1689 = vmatpush2.bf16.msra.mxu0 %v1492_v5 }
 0x184   : > { %1772 = vmatpush2.bf16.msra.mxu1 %v1498_v37 }
 0x185   : > { %1773 = vmatprep.subr.bf16.mxu1 %v5634_v15  ;;  %1571 = vmatmul.mubr.bf16.gmra.mxu0 %v6651_v7 }
 0x186   : > { %4158 = vmatprep.mubr.msk.bf16.mxu0 %vm1453_vm12, %v6657_v28  ;;  %1654 = vmatmul.mubr.bf16.gmra.mxu1 %v6651_v7 }
 0x187   : > { %4167 = vmatprep.mubr.msk.bf16.mxu1 %vm1453_vm12, %v6657_v28 }
 0x18d   : > { %1577 = vmatmul.mubr.bf16.gmra.mxu0 %v6670_v6 }
 0x18e   : > { %1660 = vmatmul.mubr.bf16.gmra.mxu1 %v6670_v6  ;;  %4169 = vmatprep.mubr.msk.bf16.mxu0 %vm1453_vm12, %v5553_v44 }
 0x18f   : > { %4177 = vmatprep.mubr.msk.bf16.mxu1 %vm1453_vm12, %v5553_v44 }
 0x1a1   : > { %v4877_v56 = vpop.permute.xlu0 %4876 }
 0x1a2   : > { %v4878_v27 = vunpack.i.l.bf16 %v4877_v56  ;;  %v4879_v0 = vunpack.i.h.bf16 %v4877_v56 }
 0x1a4   : > { %v1121_v52 = vsel %vm1066_vm0, %v4874_v3, %v4878_v27  ;;  %v1115_v17 = vsel %vm1066_vm0, %v4873_v32, %v4879_v0 }
 0x1a5   : > { %v4882_v10 = vpop.permute.xlu1 %4881  ;;  %v1275_v12 = vpack.c.bf16 %v1121_v52, %v1114_v9 }
 0x1a6   : > { %v4883_v21 = vunpack.i.l.bf16 %v4882_v10  ;;  %v4884_v29 = vunpack.i.h.bf16 %v4882_v10 }
 0x1a7   : > { %1690 = vmatprep.subr.bf16.mxu0 %v1275_v12 }
 0x1a8   : > { %v1122_v60 = vsel %vm1066_vm0, %v4878_v27, %v4883_v21  ;;  %1691 = vmatpush2.bf16.msra.mxu0 %v1274_v19  ;;  %v1099_v20 = vsel %vm1066_vm0, %v4748_v40, %v4884_v29 }
 0x1a9   : > { %v1276_v49 = vpack.c.bf16 %v1122_v60, %v1115_v17 }
 0x1ab   : > { %1774 = vmatpush2.bf16.msra.mxu1 %v1276_v49 }
 0x1ac   : > { %v4892_v13 = vpop.permute.xlu1 %4891  ;;  %1775 = vmatprep.subr.bf16.mxu1 %v5634_v15 }
 0x1ad   : > { %v4893_v4 = vunpack.i.l.bf16 %v4892_v13  ;;  %v4887_v8 = vpop.permute.xlu0 %4886  ;;  %v4894_v2 = vunpack.i.h.bf16 %v4892_v13 }
 0x1ae   : > { %v4889_v11 = vunpack.i.h.bf16 %v4887_v8  ;;  %v4888_v61 = vunpack.i.l.bf16 %v4887_v8 }
 0x1b0   : > { %v1106_v16 = vsel %vm1066_vm0, %v4753_v14, %v4889_v11  ;;  %v1100_v36 = vsel %vm1066_vm0, %v4884_v29, %v4888_v61  ;;  %v1107_v38 = vsel %vm1066_vm0, %v4889_v11, %v4893_v4  ;;  %v1101_v48 = vsel %vm1066_vm0, %v4888_v61, %v4894_v2 }
 0x1b1   : > { %v1268_v55 = vpack.c.bf16 %v1107_v38, %v1100_v36  ;;  %v1267_v54 = vpack.c.bf16 %v1106_v16, %v1099_v20 }
 0x1b3   : > { %1692 = vmatprep.subr.bf16.mxu0 %v1268_v55 }
 0x1b4   : > { %1693 = vmatpush2.bf16.msra.mxu0 %v1267_v54 }
 0x1bb   : > { %v4897_v50 = vpop.permute.xlu0 %4896 }
 0x1bc   : > { %v4898_v1 = vunpack.i.l.bf16 %v4897_v50  ;;  %v4899_v42 = vunpack.i.h.bf16 %v4897_v50 }
 0x1be   : > { %v1108_v40 = vsel %vm1066_vm0, %v4893_v4, %v4898_v1  ;;  %v1085_v3 = vsel %vm1066_vm0, %v4778_v26, %v4899_v42 }
 0x1bf   : > { %v4907_v5 = vpop.permute.xlu0 %4906  ;;  %v4902_v22 = vpop.permute.xlu1 %4901  ;;  %v1269_v37 = vpack.c.bf16 %v1108_v40, %v1101_v48 }
 0x1c0   : > { %v4908_v14 = vunpack.i.l.bf16 %v4907_v5  ;;  %v4904_v44 = vunpack.i.h.bf16 %v4902_v22  ;;  %v4903_v33 = vunpack.i.l.bf16 %v4902_v22  ;;  %v4909_v31 = vunpack.i.h.bf16 %v4907_v5 }
 0x1c1   : > { %1776 = vmatpush2.bf16.msra.mxu1 %v1269_v37 }
 0x1c2   : > { %v1092_v32 = vsel %vm1066_vm0, %v4783_v18, %v4904_v44  ;;  %v1086_v56 = vsel %vm1066_vm0, %v4899_v42, %v4903_v33  ;;  %v1093_v27 = vsel %vm1066_vm0, %v4904_v44, %v4908_v14  ;;  %1777 = vmatprep.subr.bf16.mxu1 %v5634_v15  ;;  %v1087_v47 = vsel %vm1066_vm0, %v4903_v33, %v4909_v31 }
 0x1c3   : > { %v4912_v41 = vpop.permute.xlu1 %4911  ;;  %v1261_v35 = vpack.c.bf16 %v1093_v27, %v1086_v56  ;;  %v1260_v0 = vpack.c.bf16 %v1092_v32, %v1085_v3 }
 0x1c4   : > { %v4913_v9 = vunpack.i.l.bf16 %v4912_v41  ;;  %v4914_v26 = vunpack.i.h.bf16 %v4912_v41 }
 0x1c5   : > { %1694 = vmatprep.subr.bf16.mxu0 %v1261_v35 }
 0x1c6   : > { %v1094_v52 = vsel %vm1066_vm0, %v4908_v14, %v4913_v9  ;;  %1695 = vmatpush2.bf16.msra.mxu0 %v1260_v0  ;;  %v1071_v60 = vsel %vm1066_vm0, %v4813_v24, %v4914_v26 }
 0x1c7   : > { %v4917_v39 = vpop.permute.xlu0 %4916  ;;  %v4922_v10 = vpop.permute.xlu1 %4921  ;;  %v1262_v18 = vpack.c.bf16 %v1094_v52, %v1087_v47 }
 0x1c8   : > { %v4919_v12 = vunpack.i.h.bf16 %v4917_v39  ;;  %v4918_v21 = vunpack.i.l.bf16 %v4917_v39  ;;  %v4924_v19 = vunpack.i.h.bf16 %v4922_v10  ;;  %v4923_v17 = vunpack.i.l.bf16 %v4922_v10 }
 0x1c9   : > { %1778 = vmatpush2.bf16.msra.mxu1 %v1262_v18 }
 0x1ca   : > { %v1078_v49 = vsel %vm1066_vm0, %v6436_v63, %v4919_v12  ;;  %v1072_v29 = vsel %vm1066_vm0, %v4914_v26, %v4918_v21  ;;  %v1079_v13 = vsel %vm1066_vm0, %v4919_v12, %v4923_v17  ;;  %1779 = vmatprep.subr.bf16.mxu1 %v5634_v15  ;;  %v1073_v61 = vsel %vm1066_vm0, %v4918_v21, %v4924_v19 }
 0x1cb   : > { %v953_v4 = vpop.permute.xlu0 %952  ;;  %v1254_v8 = vpack.c.bf16 %v1079_v13, %v1072_v29  ;;  %v1253_v11 = vpack.c.bf16 %v1078_v49, %v1071_v60 }
 0x1cc   : > { %v1080_v20 = vsel %vm1066_vm0, %v4923_v17, %v953_v4  ;;  %vm1991_vm0 = vcmask 998400  }
 0x1cd   : > { %v1255_v16 = vpack.c.bf16 %v1080_v20, %v1073_v61  ;;  %1696 = vmatprep.subr.bf16.mxu0 %v1254_v8 }
 0x1ce   : > { %1697 = vmatpush2.bf16.msra.mxu0 %v1253_v11 }
 0x1cf   : > { %1780 = vmatpush2.bf16.msra.mxu1 %v1255_v16 }
 0x1d1   : > { %1699 = vmatmul.mubr.bf16.vlgmr.msra.gmra.mxu0 %v6464_v23 }
 0x1d2   : > { %1782 = vmatmul.mubr.bf16.vlgmr.msra.gmra.mxu1 %v6464_v23  ;;  %4170 = vmatprep.mubr.msk.bf16.mxu0 %vm1453_vm12, %v6458_v62 }
 0x1d3   : > { %4178 = vmatprep.mubr.msk.bf16.mxu1 %vm1453_vm12, %v6458_v62 }
 0x1d5   : > { %v6768_v58 = vpop.permute.xlu1 %1318 }
 0x1d9   : > { %1707 = vmatmul.mubr.bf16.gmra.mxu0 %v6495_v53 }
 0x1da   : > { %4171 = vmatprep.mubr.msk.bf16.mxu0 %vm1453_vm12, %v6506_v25  ;;  %1789 = vmatmul.mubr.bf16.gmra.mxu1 %v6495_v53 }
 0x1db   : > { %4179 = vmatprep.mubr.msk.bf16.mxu1 %vm1453_vm12, %v6506_v25 }
 0x1e1   : > { %1713 = vmatmul.mubr.bf16.gmra.mxu0 %v6524_v43 }
 0x1e2   : > { %4172 = vmatprep.mubr.msk.bf16.mxu0 %vm1453_vm12, %v6531_v34  ;;  %1795 = vmatmul.mubr.bf16.gmra.mxu1 %v6524_v43 }
 0x1e3   : > { %4180 = vmatprep.mubr.msk.bf16.mxu1 %vm1453_vm12, %v6531_v34 }
 0x1e9   : > { %1719 = vmatmul.mubr.bf16.gmra.mxu0 %v6551_v46 }
 0x1ea   : > { %4173 = vmatprep.mubr.msk.bf16.mxu0 %vm1453_vm12, %v6560_v59  ;;  %1801 = vmatmul.mubr.bf16.gmra.mxu1 %v6551_v46 }
 0x1eb   : > { %4181 = vmatprep.mubr.msk.bf16.mxu1 %vm1453_vm12, %v6560_v59 }
 0x1f1   : > { %1725 = vmatmul.mubr.bf16.gmra.mxu0 %v6581_v51 }
 0x1f2   : > { %4174 = vmatprep.mubr.msk.bf16.mxu0 %vm1453_vm12, %v6589_v57  ;;  %1807 = vmatmul.mubr.bf16.gmra.mxu1 %v6581_v51 }
 0x1f3   : > { %4182 = vmatprep.mubr.msk.bf16.mxu1 %vm1453_vm12, %v6589_v57 }
 0x1f9   : > { %1731 = vmatmul.mubr.bf16.gmra.mxu0 %v6616_v30 }
 0x1fa   : > { %4175 = vmatprep.mubr.msk.bf16.mxu0 %vm1453_vm12, %v6625_v45  ;;  %1813 = vmatmul.mubr.bf16.gmra.mxu1 %v6616_v30 }
 0x1fb   : > { %4183 = vmatprep.mubr.msk.bf16.mxu1 %vm1453_vm12, %v6625_v45 }
 0x201   : > { %1737 = vmatmul.mubr.bf16.gmra.mxu0 %v6651_v7 }
 0x202   : > { %4176 = vmatprep.mubr.msk.bf16.mxu0 %vm1453_vm12, %v6657_v28  ;;  %1819 = vmatmul.mubr.bf16.gmra.mxu1 %v6651_v7 }
 0x203   : > { %4184 = vmatprep.mubr.msk.bf16.mxu1 %vm1453_vm12, %v6657_v28 }
 0x209   : > { %1743 = vmatmul.mubr.bf16.gmra.mxu0 %v6670_v6 }
 0x20a   : > { %1825 = vmatmul.mubr.bf16.gmra.mxu1 %v6670_v6 }
 0x212   : > { %v6766_v63 = vpop.f32.mrf.mxu0 }
 0x214   : > { %v6770_v24 = vpop.f32.mrf.mxu0 }
 0x216   : > { %v1617_v62 = vpop.f32.mrf.mxu1  ;;  %v1538_v53 = vpop.f32.mrf.mxu0 }
 0x217   : > { %v6773_v23 = vadd.f32 %v1617_v62, %v6768_v58 }
 0x218   : > { %v1619_v25 = vpop.f32.mrf.mxu1  ;;  %v1539_v46 = vpop.f32.mrf.mxu0 }
 0x219   : > { %v6776_v43 = vadd.f32 %v1619_v25, %v6768_v58  ;;  %v1833_v34 = vmax.f32 %v6773_v23, 0.0 }
 0x21a   : > { %v1621_v59 = vpop.f32.mrf.mxu1 }
 0x21b   : > { %v1834_v51 = vmax.f32 %v6776_v43, 0.0  ;;  %v1542_v57 = vpop.f32.mrf.mxu0 }
 0x21c   : > { %v1622_v30 = vpop.f32.mrf.mxu1 }
 0x21d   : > { %v4926_v45 = vpack.i.bf16 %v1834_v51, %v1833_v34  ;;  %v1543_v7 = vpop.f32.mrf.mxu0 }
 0x21e   : > { %v1625_v28 = vpop.f32.mrf.mxu1 }
 0x21f   : > { %4927 = vrot.lane.b32.xlu0 %v4926_v45, %s8378_s22  ;;  %v1544_v6 = vpop.f32.mrf.mxu0 }
 0x220   : > { %v1626_v36 = vpop.f32.mrf.mxu1 }
 0x221   : > { %v1545_v38 = vpop.f32.mrf.mxu0 }
 0x222   : > { %v1627_v55 = vpop.f32.mrf.mxu1  ;;  %v6793_v38 = vadd.f32 %v6766_v63, %v6768_v58 }
 0x223   : > { %v1548_v54 = vpop.f32.mrf.mxu0  ;;  %v6797_v55 = vadd.f32 %v6770_v24, %v6768_v58 }
 0x224   : > { %v1628_v2 = vpop.f32.mrf.mxu1  ;;  %v1831_v63 = vmax.f32 %v6793_v38, 0.0 }
 0x225   : > { %v1549_v50 = vpop.f32.mrf.mxu0  ;;  %v1832_v24 = vmax.f32 %v6797_v55, 0.0 }
 0x226   : > { %v1631_v1 = vpop.f32.mrf.mxu1 }
 0x227   : > { %v1550_v42 = vpop.f32.mrf.mxu0 }
 0x228   : > { %v1632_v48 = vpop.f32.mrf.mxu1 }
 0x229   : > { %v1551_v40 = vpop.f32.mrf.mxu0 }
 0x22a   : > { %v1633_v5 = vpop.f32.mrf.mxu1 }
 0x22b   : > { %v1554_v22 = vpop.f32.mrf.mxu0 }
 0x22c   : > { %v1634_v37 = vpop.f32.mrf.mxu1 }
 0x22d   : > { %v1555_v14 = vpop.f32.mrf.mxu0 }
 0x22e   : > { %v1637_v44 = vpop.f32.mrf.mxu1 }
 0x22f   : > { %v1556_v33 = vpop.f32.mrf.mxu0 }
 0x230   : > { %v1638_v3 = vpop.f32.mrf.mxu1  ;;  %v4936_v33 = vpack.i.bf16 %v1831_v63, %v1832_v24 }
 0x231   : > { %v1557_v31 = vpop.f32.mrf.mxu0 }
 0x232   : > { %v1639_v32 = vpop.f32.mrf.mxu1 }
 0x234   : > { %v1640_v56 = vpop.f32.mrf.mxu1 }
 0x235   : > { %v1560_v27 = vpop.f32.mrf.mxu0 }
 0x236   : > { %v1643_v41 = vpop.f32.mrf.mxu1 }
 0x237   : > { %v1561_v35 = vpop.f32.mrf.mxu0 }
 0x238   : > { %v1644_v0 = vpop.f32.mrf.mxu1 }
 0x239   : > { %v1562_v9 = vpop.f32.mrf.mxu0 }
 0x23a   : > { %v1645_v47 = vpop.f32.mrf.mxu1 }
 0x23b   : > { %v1563_v26 = vpop.f32.mrf.mxu0 }
 0x23c   : > { %v1646_v52 = vpop.f32.mrf.mxu1 }
 0x23d   : > { %v1566_v39 = vpop.f32.mrf.mxu0 }
 0x23e   : > { %v1649_v10 = vpop.f32.mrf.mxu1 }
 0x23f   : > { %v1567_v18 = vpop.f32.mrf.mxu0 }
 0x240   : > { %v1650_v12 = vpop.f32.mrf.mxu1 }
 0x241   : > { %v1568_v21 = vpop.f32.mrf.mxu0 }
 0x242   : > { %v1651_v19 = vpop.f32.mrf.mxu1 }
 0x243   : > { %v1569_v17 = vpop.f32.mrf.mxu0 }
 0x244   : > { %v1652_v60 = vpop.f32.mrf.mxu1 }
 0x245   : > { %v1572_v49 = vpop.f32.mrf.mxu0 }
 0x246   : > { %v1655_v29 = vpop.f32.mrf.mxu1 }
 0x247   : > { %v1573_v13 = vpop.f32.mrf.mxu0 }
 0x248   : > { %v1656_v4 = vpop.f32.mrf.mxu1 }
 0x249   : > { %v1574_v8 = vpop.f32.mrf.mxu0 }
 0x24a   : > { %v1657_v11 = vpop.f32.mrf.mxu1 }
 0x24b   : > { %v1575_v61 = vpop.f32.mrf.mxu0 }
 0x24c   : > { %v1658_v20 = vpop.f32.mrf.mxu1 }
 0x24d   : > { %v1578_v16 = vpop.f32.mrf.mxu0 }
 0x24e   : > { %v1661_v62 = vpop.f32.mrf.mxu1 }
 0x24f   : > { %v1579_v53 = vpop.f32.mrf.mxu0 }
 0x250   : > { %v1662_v25 = vpop.f32.mrf.mxu1 }
 0x251   : > { %v1580_v46 = vpop.f32.mrf.mxu0 }
 0x252   : > { %v1663_v59 = vpop.f32.mrf.mxu1 }
 0x253   : > { %v1581_v57 = vpop.f32.mrf.mxu0 }
 0x254   : > { %v1664_v30 = vpop.f32.mrf.mxu1 }
 0x291   : > { %v1700_v45 = vpop.f32.mrf.mxu0 }
 0x292   : > { %v6786_v7 = vadd.f32 %v1700_v45, %v6768_v58  ;;  %v1783_v28 = vpop.f32.mrf.mxu1 }
 0x293   : > { %v1702_v6 = vpop.f32.mrf.mxu0  ;;  %v6789_v36 = vadd.f32 %v1783_v28, %v6768_v58 }
 0x294   : > { %v6800_v54 = vadd.f32 %v1702_v6, %v6768_v58  ;;  %v1785_v2 = vpop.f32.mrf.mxu1  ;;  %v1835_v42 = vmax.f32 %v6786_v7, 0.0  ;;  %v8414_v7 = vmov 0.0  }
 0x295   : > { %v1837_v50 = vmax.f32 %v6789_v36, 0.0  ;;  %v1704_v1 = vpop.f32.mrf.mxu0 }
 0x296   : > { %v1836_v48 = vmax.f32 %v6800_v54, 0.0  ;;  %v1786_v40 = vpop.f32.mrf.mxu1 }
 0x297   : > { %v1705_v5 = vpop.f32.mrf.mxu0  ;;  %1857 = vrot.lane.b32.xlu0 %v1837_v50, %s8378_s22 }
 0x298   : > { %v4931_v58 = vpack.i.bf16 %v1836_v48, %v1835_v42  ;;  %v1787_v22 = vpop.f32.mrf.mxu1 }
 0x299   : > { %v1708_v37 = vpop.f32.mrf.mxu0 }
 0x29a   : > { %4932 = vrot.lane.b32.xlu1 %v4931_v58, %s8378_s22  ;;  %v1790_v14 = vpop.f32.mrf.mxu1 }
 0x29b   : > { %v1709_v44 = vpop.f32.mrf.mxu0 }
 0x29c   : > { %v1791_v3 = vpop.f32.mrf.mxu1 }
 0x29d   : > { %v1710_v31 = vpop.f32.mrf.mxu0 }
 0x29e   : > { %4937 = vrot.lane.b32.xlu1 %v4936_v33, %s8378_s22  ;;  %v1792_v32 = vpop.f32.mrf.mxu1 }
 0x29f   : > { %v1711_v56 = vpop.f32.mrf.mxu0 }
 0x2a0   : > { %v1793_v27 = vpop.f32.mrf.mxu1 }
 0x2a1   : > { %v1714_v41 = vpop.f32.mrf.mxu0  ;;  %v4928_v27 = vpop.permute.xlu0 %4927 }
 0x2a2   : > { %v1796_v35 = vpop.f32.mrf.mxu1  ;;  %v4930_v41 = vunpack.i.h.bf16 %v4928_v27 }
 0x2a3   : > { %v1715_v0 = vpop.f32.mrf.mxu0  ;;  %v4929_v35 = vunpack.i.l.bf16 %v4928_v27 }
 0x2a4   : > { %v1797_v9 = vpop.f32.mrf.mxu1 }
 0x2a5   : > { %v1716_v47 = vpop.f32.mrf.mxu0  ;;  %v1863_v9 = vsel %vm439_vm7, %v4929_v35, %v4930_v41 }
 0x2a6   : > { %v1798_v26 = vpop.f32.mrf.mxu1 }
 0x2a7   : > { %v1717_v52 = vpop.f32.mrf.mxu0 }
 0x2a8   : > { %v1799_v39 = vpop.f32.mrf.mxu1 }
 0x2a9   : > { %v1720_v10 = vpop.f32.mrf.mxu0 }
 0x2aa   : > { %v1802_v18 = vpop.f32.mrf.mxu1 }
 0x2ab   : > { %v1721_v12 = vpop.f32.mrf.mxu0 }
 0x2ac   : > { %v1803_v21 = vpop.f32.mrf.mxu1  ;;  %v1877_v12 = vmax.f32 %v1833_v34, %v1863_v9 }
 0x2ad   : > { %v1722_v19 = vpop.f32.mrf.mxu0 }
 0x2ae   : > { %v1804_v17 = vpop.f32.mrf.mxu1 }
 0x2af   : > { %v1723_v60 = vpop.f32.mrf.mxu0 }
 0x2b0   : > { %v1805_v49 = vpop.f32.mrf.mxu1 }
 0x2b1   : > { %v1726_v29 = vpop.f32.mrf.mxu0 }
 0x2b2   : > { %v1808_v13 = vpop.f32.mrf.mxu1 }
 0x2b3   : > { %v1727_v4 = vpop.f32.mrf.mxu0 }
 0x2b4   : > { %v1809_v8 = vpop.f32.mrf.mxu1 }
 0x2b5   : > { %v1728_v11 = vpop.f32.mrf.mxu0 }
 0x2b6   : > { %v1810_v61 = vpop.f32.mrf.mxu1 }
 0x2b7   : > { %v1729_v20 = vpop.f32.mrf.mxu0 }
 0x2b8   : > { %v1811_v16 = vpop.f32.mrf.mxu1 }
 0x2b9   : > { %v1732_v62 = vpop.f32.mrf.mxu0 }
 0x2ba   : > { %v1814_v53 = vpop.f32.mrf.mxu1 }
 0x2bb   : > { %v1733_v25 = vpop.f32.mrf.mxu0 }
 0x2bc   : > { %v1815_v46 = vpop.f32.mrf.mxu1 }
 0x2bd   : > { %v1734_v59 = vpop.f32.mrf.mxu0 }
 0x2be   : > { %v1816_v57 = vpop.f32.mrf.mxu1 }
 0x2bf   : > { %v1735_v30 = vpop.f32.mrf.mxu0 }
 0x2c0   : > { %v1817_v45 = vpop.f32.mrf.mxu1 }
 0x2c1   : > { %v1738_v28 = vpop.f32.mrf.mxu0 }
 0x2c2   : > { %v1820_v6 = vpop.f32.mrf.mxu1 }
 0x2c3   : > { %v1739_v2 = vpop.f32.mrf.mxu0 }
 0x2c4   : > { %v1821_v1 = vpop.f32.mrf.mxu1 }
 0x2c5   : > { %v1740_v40 = vpop.f32.mrf.mxu0 }
 0x2c6   : > { %v1822_v5 = vpop.f32.mrf.mxu1 }
 0x2c7   : > { %v1741_v58 = vpop.f32.mrf.mxu0 }
 0x2c8   : > { %v1823_v22 = vpop.f32.mrf.mxu1 }
 0x2c9   : > { %v1744_v37 = vpop.f32.mrf.mxu0 }
 0x2ca   : > { %v1826_v14 = vpop.f32.mrf.mxu1 }
 0x2cb   : > { %v1745_v44 = vpop.f32.mrf.mxu0 }
 0x2cc   : > { %v1827_v33 = vpop.f32.mrf.mxu1 }
 0x2cd   : > { %v1746_v3 = vpop.f32.mrf.mxu0 }
 0x2ce   : > { %v1828_v31 = vpop.f32.mrf.mxu1 }
 0x2cf   : > { %v1747_v32 = vpop.f32.mrf.mxu0 }
 0x2d0   : > { %v1829_v56 = vpop.f32.mrf.mxu1 }
 0x309   : > { %v1858_v52 = vpop.permute.xlu0 %1857 }
 0x30c   : > { %v4933_v0 = vpop.permute.xlu1 %4932 }
 0x30d   : > { %v4935_v47 = vunpack.i.h.bf16 %v4933_v0  ;;  %v4934_v26 = vunpack.i.l.bf16 %v4933_v0 }
 0x30f   : > { %v1866_v39 = vsel %vm439_vm7, %v4935_v47, %v1858_v52  ;;  %v1864_v10 = vsel %vm439_vm7, %v4930_v41, %v4934_v26  ;;  %v1865_v18 = vsel %vm439_vm7, %v4934_v26, %v4935_v47 }
 0x310   : > { %v6828_v21 = vmax.f32 %v1836_v48, %v1866_v39  ;;  %v1878_v19 = vmax.f32 %v1834_v51, %v1864_v10  ;;  %v1879_v17 = vmax.f32 %v1835_v42, %v1865_v18  ;;  %v4938_v60 = vpop.permute.xlu1 %4937 }
 0x311   : > { %v4940_v49 = vunpack.i.h.bf16 %v4938_v60  ;;  %v4939_v29 = vunpack.i.l.bf16 %v4938_v60 }
 0x312   : > { %v4946_v13 = vpack.i.bf16 %v6828_v21, %v1879_v17  ;;  %v4941_v4 = vpack.i.bf16 %v1878_v19, %v1877_v12 }
 0x313   : > { %v1861_v8 = vsel %vm439_vm7, %v4940_v49, %v4939_v29  ;;  %v1862_v23 = vsel %vm439_vm7, %v4939_v29, %v4929_v35 }
 0x314   : > { %v1875_v34 = vmax.f32 %v1831_v63, %v1861_v8  ;;  %v1876_v43 = vmax.f32 %v1832_v24, %v1862_v23  ;;  %4947 = vrot.lane.b32.xlu1 %v4946_v13, %s8413_s24  ;;  %4942 = vrot.lane.b32.xlu0 %v4941_v4, %s8413_s24 }
 0x316   : > { %v4951_v51 = vpack.i.bf16 %v1875_v34, %v1876_v43 }
 0x318   : > { %4952 = vrot.lane.b32.xlu1 %v4951_v51, %s8413_s24  ;;  %1859 = vrot.lane.b32.xlu0 %v8414_v7, %s8378_s22  ;;  %s5635_s22 = smov 58  }
 0x386   : > { %v6846_v54 = vpop.permute.xlu1 %4947  ;;  %v4943_v42 = vpop.permute.xlu0 %4942 }
 0x387   : > { %v4950_v48 = vunpack.i.h.bf16 %v6846_v54  ;;  %v4949_v38 = vunpack.i.l.bf16 %v6846_v54  ;;  %v4945_v63 = vunpack.i.h.bf16 %v4943_v42  ;;  %v4944_v55 = vunpack.i.l.bf16 %v4943_v42 }
 0x389   : > { %v1912_v24 = vsel %vm563_vm4, %v4949_v38, %v4950_v48  ;;  %v1911_v11 = vsel %vm563_vm4, %v4945_v63, %v4949_v38  ;;  %v1910_v16 = vsel %vm563_vm4, %v4944_v55, %v4945_v63 }
 0x38a   : > { %v4953_v61 = vpop.permute.xlu1 %4952  ;;  %v1860_v20 = vpop.permute.xlu0 %1859  ;;  %v6856_v59 = vmax.f32 %v1879_v17, %v1912_v24  ;;  %v6859_v30 = vmax.f32 %v1878_v19, %v1911_v11  ;;  %v6861_v45 = vmax.f32 %v1877_v12, %v1910_v16 }
 0x38b   : > { %v4954_v62 = vunpack.i.l.bf16 %v4953_v61  ;;  %v1867_v53 = vsel %vm439_vm7, %v1858_v52, %v1860_v20  ;;  %v1883_v25 = vmax.f32 %v1860_v20, 0.0  ;;  %vm2103_vm7 = vcmask 474112  }
 0x38c   : > { %v1881_v46 = vmax.f32 %v1837_v50, %v1867_v53  ;;  %v4961_v36 = vpack.i.bf16 %v6859_v30, %v6861_v45  ;;  %v4955_v50 = vunpack.i.h.bf16 %v4953_v61 }
 0x38d   : > { %v1909_v57 = vsel %vm563_vm4, %v4954_v62, %v4944_v55 }
 0x38e   : > { %v6863_v28 = vmax.f32 %v1876_v43, %v1909_v57  ;;  %v4956_v6 = vpack.i.bf16 %v1883_v25, %v1881_v46  ;;  %v1908_v1 = vsel %vm563_vm4, %v4955_v50, %v4954_v62 }
 0x38f   : > { %v6886_v40 = vmax.f32 %v1875_v34, %v1908_v1 }
 0x390   : > { %4957 = vrot.lane.b32.xlu0 %v4956_v6, %s8413_s24  ;;  %v4966_v2 = vpack.i.bf16 %v6863_v28, %v6856_v59  ;;  %v5041_v5 = vpack.i.bf16 %v6861_v45, %v6863_v28  ;;  %s8357_s24 = smov 120  }
 0x391   : > { %v5036_v58 = vpack.i.bf16 %v6886_v40, %v6863_v28 }
 0x392   : > { %4967 = vrot.lane.b32.xlu1 %v4966_v2, %s5635_s22 }
 0x394   : > { %4962 = vrot.lane.b32.xlu0 %v4961_v36, %s5635_s22 }
 0x396   : > { %4972 = vrot.lane.b32.xlu1 %v4961_v36, %s8380_s29 }
 0x398   : > { %4977 = vrot.lane.b32.xlu0 %v4966_v2, %s8380_s29 }
 0x39a   : > { %4982 = vrot.lane.b32.xlu1 %v4961_v36, %s8377_s16 }
 0x39c   : > { %4987 = vrot.lane.b32.xlu0 %v4966_v2, %s8377_s16 }
 0x39e   : > { %4992 = vrot.lane.b32.xlu1 %v4961_v36, %s8415_s12 }
 0x3a0   : > { %4997 = vrot.lane.b32.xlu0 %v4966_v2, %s8415_s12 }
 0x3a2   : > { %5002 = vrot.lane.b32.xlu1 %v4961_v36, %s5636_s14 }
 0x3a4   : > { %2162 = vrot.lane.b32.xlu0 %v6856_v59, %s5636_s14 }
 0x3a6   : > { %5007 = vrot.lane.b32.xlu1 %v4961_v36, %s8416_s25 }
 0x3a8   : > { %5012 = vrot.lane.b32.xlu0 %v4966_v2, %s8416_s25 }
 0x3aa   : > { %5017 = vrot.lane.b32.xlu1 %v4961_v36, %s5637_s30 }
 0x3ac   : > { %5022 = vrot.lane.b32.xlu0 %v4966_v2, %s5637_s30 }
 0x3ae   : > { %5027 = vrot.lane.b32.xlu1 %v4961_v36, %s8417_s13 }
 0x3b0   : > { %5032 = vrot.lane.b32.xlu0 %v4966_v2, %s8417_s13 }
 0x3b2   : > { %5042 = vrot.lane.b32.xlu1 %v5041_v5, %s5638_s15 }
 0x3b4   : > { %5037 = vrot.lane.b32.xlu0 %v5036_v58, %s8357_s24 }
 0x3b6   : > { %2114 = vrot.lane.b32.xlu1 %v6886_v40, %s5638_s15 }
 0x3b8   : > { %2025 = vrot.lane.b32.xlu0 %v6886_v40, %s8415_s12 }
 0x3ba   : > { %5047 = vrot.lane.b32.xlu1 %v4961_v36, %s8357_s24 }
 0x3bc   : > { %1979 = vrot.lane.b32.xlu0 %v6886_v40, %s5637_s30 }
 0x3be   : > { %1957 = vrot.lane.b32.xlu1 %v6886_v40, %s8416_s25 }
 0x3c2   : > { %1935 = vrot.lane.b32.xlu1 %v6886_v40, %s8417_s13 }
 0x402   : > { %v4958_v22 = vpop.permute.xlu0 %4957 }
 0x403   : > { %v4960_v37 = vunpack.i.h.bf16 %v4958_v22  ;;  %v4959_v14 = vunpack.i.l.bf16 %v4958_v22 }
 0x404   : > { %v6907_v44 = vpop.permute.xlu1 %4967 }
 0x405   : > { %v1913_v33 = vsel %vm563_vm4, %v4950_v48, %v4959_v14  ;;  %v1914_v3 = vsel %vm563_vm4, %v4959_v14, %v4960_v37  ;;  %vm2168_vm4 = vcmask 539648   ;;  %v8351_v24 = vunpack.i.l.bf16 %v6907_v44 }
 0x406   : > { %v6912_v31 = vmax.f32 %v6828_v21, %v1913_v33  ;;  %v1928_v32 = vmax.f32 %v1881_v46, %v1914_v3  ;;  %v4963_v56 = vpop.permute.xlu0 %4962 }
 0x407   : > { %v6921_v9 = vunpack.i.l.bf16 %v4963_v56  ;;  %v4965_v38 = vunpack.i.h.bf16 %v4963_v56 }
 0x408   : > { %v4973_v27 = vpop.permute.xlu1 %4972  ;;  %v5056_v41 = vpack.i.bf16 %v6912_v31, %v6886_v40  ;;  %v5051_v35 = vpack.i.bf16 %v8414_v7, %v1928_v32  ;;  %v6926_v26 = vpack.i.bf16 %v1928_v32, %v6912_v31 }
 0x409   : > { %v4974_v10 = vunpack.i.l.bf16 %v4973_v27  ;;  %v5071_v19 = vpack.i.bf16 %v6921_v9, %v6886_v40  ;;  %v4975_v34 = vunpack.i.h.bf16 %v4973_v27  ;;  %v6990_v46 = vsel %vm2103_vm7, %v6921_v9, %v4965_v38 }
 0x40a   : > { %5057 = vrot.lane.b32.xlu0 %v5056_v41, %s5635_s22  ;;  %v6918_v0 = vpop.permute.xlu0 %4977  ;;  %5052 = vrot.lane.b32.xlu1 %v5051_v35, %s5635_s22  ;;  %v6995_v57 = vsel %vm2103_vm7, %v4965_v38, %v8351_v24 }
 0x40b   : > { %v4980_v52 = vunpack.i.h.bf16 %v6918_v0  ;;  %v8343_v13 = vunpack.i.l.bf16 %v6918_v0  ;;  %v6974_v63 = vsel %vm780_vm10, %v4974_v10, %v4975_v34  ;;  %v5101_v33 = vpack.i.bf16 %v6995_v57, %v6990_v46 }
 0x40c   : > { %v6923_v47 = vpop.permute.xlu1 %4982 }
 0x40d   : > { %v4984_v18 = vunpack.i.l.bf16 %v6923_v47  ;;  %v6943_v17 = vsel %vm780_vm10, %v4980_v52, %v4974_v10  ;;  %v6968_v54 = vsel %vm780_vm10, %v4975_v34, %v8343_v13  ;;  %v4985_v50 = vunpack.i.h.bf16 %v6923_v47 }
 0x40e   : > { %5067 = vrot.lane.b32.xlu0 %v6926_v26, %s8380_s29  ;;  %v6931_v39 = vpop.permute.xlu0 %4987  ;;  %5062 = vrot.lane.b32.xlu1 %v5056_v41, %s8377_s16  ;;  %v5106_v11 = vpack.i.bf16 %v6968_v54, %v6974_v63 }
 0x40f   : > { %v4990_v12 = vunpack.i.h.bf16 %v6931_v39  ;;  %v5091_v61 = vpack.i.bf16 %v4984_v18, %v4974_v10  ;;  %v8338_v6 = vunpack.i.l.bf16 %v6931_v39  ;;  %v7030_v10 = vsel %vm842_vm8, %v4984_v18, %v4985_v50 }
 0x410   : > { %v6936_v21 = vpop.permute.xlu1 %4992 }
 0x411   : > { %v6948_v60 = vsel %vm842_vm8, %v4990_v12, %v4984_v18  ;;  %v6959_v8 = vunpack.i.l.bf16 %v6936_v21  ;;  %v7013_v3 = vsel %vm842_vm8, %v4985_v50, %v8338_v6  ;;  %v4995_v41 = vunpack.i.h.bf16 %v6936_v21 }
 0x412   : > { %5072 = vrot.lane.b32.xlu0 %v5071_v19, %s8380_s29  ;;  %v6951_v49 = vpop.permute.xlu0 %4997  ;;  %5087 = vrot.lane.b32.xlu1 %v6926_v26, %s5636_s14  ;;  %v2387_v29 = vpack.c.bf16 %v6948_v60, %v6943_v17  ;;  %v5111_v21 = vpack.i.bf16 %v7013_v3, %v7030_v10  ;;  %s4283_s14 = sshll.u32 %s5726_s21, 4 }
 0x413   : > { %v8342_v32 = vunpack.i.l.bf16 %v6951_v49  ;;  %v2039_v18 = vsel %vm718_vm13, %v6959_v8, %v4995_v41 }
 0x414   : > { %v5003_v4 = vpop.permute.xlu1 %5002 }
 0x415   : > { %v5004_v23 = vunpack.i.l.bf16 %v5003_v4  ;;  %v5005_v42 = vunpack.i.h.bf16 %v5003_v4 }
 0x416   : > { %5077 = vrot.lane.b32.xlu0 %v5051_v35, %s8377_s16  ;;  %v6962_v43 = vpop.permute.xlu0 %2162  ;;  %s5644_s16 = smov [#allocation2]  }
 0x417   : > { %v5096_v51 = vpack.i.bf16 %v6959_v8, %v5004_v23  ;;  %v2169_v20 = vsel %vm2168_vm4, %v5004_v23, %v5005_v42  ;;  %v2170_v16 = vsel %vm2168_vm4, %v5005_v42, %v6962_v43  ;;  %v7042_v42 = vsel %vm718_vm13, %v4995_v41, %v8342_v32  ;;  %s5558_s21 = sshll.u32 %s5644_s16, 4  ;;  %s5559_s21 = int_to_ptr.vmem [resolvable:$false] %s5558_s21 }
 0x418   : > { %v6970_v48 = vpop.permute.xlu1 %5007  ;;  %v5116_v1 = vpack.i.bf16 %v2170_v16, %v2169_v20  ;;  %s5560_s22 = scalar_lea.vmem %s5559_s21, 32 }
 0x419   : > { %5097 = vrot.lane.b32.xlu1 %v5096_v51, %s8380_s29  ;;  %v5010_v62 = vunpack.i.h.bf16 %v6970_v48  ;;  %v5009_v53 = vunpack.i.l.bf16 %v6970_v48 }
 0x41a   : > { %5082 = vrot.lane.b32.xlu0 %v6926_v26, %s8415_s12  ;;  %v6978_v55 = vpop.permute.xlu0 %5012 }
 0x41b   : > { %v8339_v2 = vunpack.i.l.bf16 %v6978_v55  ;;  %v7006_v22 = vsel %vm8418_vm15, %v5009_v53, %v5010_v62  ;;  %vm8448_vm15 = vmmov %vm8419_vm1 }
 0x41c   : > { %v5018_v25 = vpop.permute.xlu1 %5017  ;;  %v5126_v19 = vpack.i.bf16 %v7006_v22, %v8414_v7 }
 0x41d   : > { %5107 = vrot.lane.b32.xlu1 %v5106_v11, %s8380_s29  ;;  %v5020_v5 = vunpack.i.h.bf16 %v5018_v25  ;;  %v5019_v37 = vunpack.i.l.bf16 %v5018_v25  ;;  %v1972_v56 = vsel %vm8419_vm1, %v5010_v62, %v8339_v2  ;;  %v5015_v11 = vunpack.i.h.bf16 %v6978_v55 }
 0x41e   : > { %v7000_v36 = vpop.permute.xlu0 %5022  ;;  %5092 = vrot.lane.b32.xlu0 %v5091_v61, %s8380_s29 }
 0x41f   : > { %v8341_v58 = vunpack.i.l.bf16 %v7000_v36  ;;  %v1994_v4 = vsel %vm1991_vm0, %v5019_v37, %v5020_v5  ;;  %v5025_v48 = vunpack.i.h.bf16 %v7000_v36 }
 0x420   : > { %v5028_v14 = vpop.permute.xlu1 %5027  ;;  %v5131_v16 = vpack.i.bf16 %v1994_v4, %v1972_v56 }
 0x421   : > { %v1995_v27 = vsel %vm1991_vm0, %v5020_v5, %v8341_v58  ;;  %5117 = vrot.lane.b32.xlu1 %v5116_v1, %s8380_s29  ;;  %v5030_v23 = vunpack.i.h.bf16 %v5028_v14  ;;  %v5029_v34 = vunpack.i.l.bf16 %v5028_v14  ;;  %v5121_v5 = vpack.i.bf16 %v7042_v42, %v2039_v18 }
 0x422   : > { %v7024_v35 = vpop.permute.xlu0 %5032  ;;  %5102 = vrot.lane.b32.xlu0 %v5101_v33, %s8380_s29  ;;  %v7027_v47 = vpack.c.bf16 %v1995_v27, %v1972_v56  ;;  %v5000_v14 = vunpack.i.h.bf16 %v6951_v49  ;;  %v1993_v33 = vsel %vm1991_vm0, %v5025_v48, %v5019_v37  ;;  %v1970_v56 = vsel %vm8420_vm3, %v5015_v11, %v5009_v53 }
 0x423   : > { %v1949_v62 = vsel %vm470_vm5, %v5029_v34, %v5030_v23  ;;  %v5035_v25 = vunpack.i.h.bf16 %v7024_v35  ;;  %v8340_v50 = vunpack.i.l.bf16 %v7024_v35 }
 0x424   : > { %v7035_v51 = vpop.permute.xlu1 %5042 }
 0x425   : > { %5127 = vrot.lane.b32.xlu1 %v5126_v19, %s8380_s29  ;;  %v1948_v6 = vsel %vm470_vm5, %v5035_v25, %v5029_v34  ;;  %v7073_v37 = vsel %vm470_vm5, %v5030_v23, %v8340_v50  ;;  %v2038_v34 = vsel %vm718_vm13, %v5000_v14, %v6959_v8 }
 0x426   : > { %v5038_v38 = vpop.permute.xlu0 %5037  ;;  %5112 = vrot.lane.b32.xlu0 %v5111_v21, %s8380_s29  ;;  %v5151_v50 = vpack.i.bf16 %v1948_v6, %v7073_v37 }
 0x427   : > { %v5040_v61 = vunpack.i.h.bf16 %v5038_v38  ;;  %v5039_v20 = vunpack.i.l.bf16 %v5038_v38  ;;  %v5146_v38 = vpack.i.bf16 %v1949_v62, %v1993_v33 }
 0x428   : > { %v7053_v1 = vpop.permute.xlu1 %2114 }
 0x429   : > { %5132 = vrot.lane.b32.xlu1 %v5131_v16, %s8380_s29  ;;  %v7062_v19 = vsel %vm2014_vm2, %v5040_v61, %v5039_v20  ;;  %v5136_v61 = vpack.i.bf16 %v1970_v56, %v1995_v27 }
 0x42a   : > { %v2026_v41 = vpop.permute.xlu0 %2025  ;;  %5122 = vrot.lane.b32.xlu0 %v5121_v5, %s8380_s29 }
 0x42b   : > { %v7065_v21 = vsel %vm718_vm13, %v2026_v41, %v5000_v14 }
 0x42c   : > { %v2381_v16 = vpack.c.bf16 %v7065_v21, %v7062_v19  ;;  %v7077_v53 = vpop.permute.xlu1 %5047 }
 0x42d   : > { %v8348_v5 = vunpack.i.h.bf16 %v7077_v53  ;;  %v5049_v41 = vunpack.i.l.bf16 %v7077_v53  ;;  %5147 = vrot.lane.b32.xlu1 %v5146_v38, %s8380_s29  ;;  %v7097_v38 = vld [vmem:[%s8285_s3 + $0x4] ss:$8 sps:$4 sm:$0xff]  }
 0x42e   : > { %v1980_v2 = vpop.permute.xlu0 %1979  ;;  %5137 = vrot.lane.b32.xlu0 %v5136_v61, %s8380_s29  ;;  %v8344_v61 = vunpack.i.h.bf16 %v7035_v51  ;;  %4202 = vmatprep.mubr.msk.bf16.mxu0 %vm1453_vm12, %v7097_v38 }
 0x42f   : > { %v2016_v23 = vsel %vm2014_vm2, %v5039_v20, %v5049_v41  ;;  %v2017_v27 = vsel %vm2014_vm2, %v5049_v41, %v8348_v5  ;;  %v7100_v8 = vsel %vm1991_vm0, %v1980_v2, %v5025_v48  ;;  %v5044_v2 = vunpack.i.l.bf16 %v7035_v51  ;;  %4211 = vmatprep.mubr.msk.bf16.mxu1 %vm1453_vm12, %v7097_v38 }
 0x430   : > { %v1958_v58 = vpop.permute.xlu1 %1957  ;;  %v7090_v32 = vpack.c.bf16 %v2039_v18, %v2017_v27  ;;  %v7092_v13 = vpack.c.bf16 %v2038_v34, %v2016_v23  ;;  %v7112_v18 = vpack.c.bf16 %v1994_v4, %v7006_v22  ;;  %v7127_v22 = vpack.c.bf16 %v1949_v62, %v6861_v45 }
 0x431   : > { %v7103_v20 = vsel %vm8421_vm6, %v1958_v58, %v5015_v11  ;;  %5152 = vrot.lane.b32.xlu1 %v5151_v50, %s8380_s29  ;;  %v2377_v58 = vpack.c.bf16 %v1993_v33, %v1970_v56  ;;  %v4970_v4 = vunpack.i.h.bf16 %v6907_v44  ;;  %v2128_v48 = vsel %vm2126_vm9, %v5044_v2, %v8344_v61 }
 0x432   : > { %v2376_v14 = vpack.c.bf16 %v7100_v8, %v7103_v20  ;;  %2633 = vmatprep.subr.bf16.mxu0 %v7090_v32  ;;  %2173 = vrot.lane.b32.xlu0 %v8414_v7, %s8415_s12  ;;  %v2372_v11 = vpack.c.bf16 %v1948_v6, %v6863_v28  ;;  %v5171_v62 = vpack.i.bf16 %v6912_v31, %v6856_v59 }
 0x433   : > { %2634 = vmatpush1.bf16.msra.mxu0 %v7092_v13  ;;  %v2105_v50 = vsel %vm2103_vm7, %v4970_v4, %v6921_v9  ;;  %v2127_v34 = vsel %vm2126_vm9, %v7053_v1, %v5044_v2 }
 0x434   : > { %2635 = vmatprep.subr.bf16.mxu0 %v7112_v18  ;;  %v2392_v45 = vpack.c.bf16 %v2128_v48, %v2105_v50  ;;  %v1936_v28 = vpop.permute.xlu1 %1935 }
 0x435   : > { %5157 = vrot.lane.b32.xlu1 %v6926_v26, %s5637_s30 }
 0x436   : > { %5142 = vrot.lane.b32.xlu0 %v6926_v26, %s8416_s25 }
 0x437   : > { %2636 = vmatpush1.bf16.msra.mxu0 %v2377_v58 }
 0x438   : > { %2637 = vmatprep.subr.bf16.mxu0 %v7127_v22 }
 0x439   : > { %5167 = vrot.lane.b32.xlu1 %v6926_v26, %s8357_s24 }
 0x43a   : > { %5162 = vrot.lane.b32.xlu0 %v6926_v26, %s8417_s13 }
 0x43b   : > { %2638 = vmatpush1.bf16.msra.mxu0 %v2372_v11 }
 0x43c   : > { %2639 = vmatprep.subr.bf16.mxu0 %v2392_v45 }
 0x43d   : > { %2010 = vrot.lane.b32.xlu1 %v6856_v59, %s8357_s24  ;;  %s5642_s24 = smov 112  }
 0x43e   : > { %5172 = vrot.lane.b32.xlu0 %v5171_v62, %s5638_s15 }
 0x442   : > { %2120 = vrot.lane.b32.xlu0 %v6859_v30, %s5638_s15 }
 0x47c   : > { %v7148_v6 = vpop.permute.xlu0 %5057  ;;  %v5053_v9 = vpop.permute.xlu1 %5052 }
 0x47d   : > { %v5060_v26 = vunpack.i.h.bf16 %v7148_v6  ;;  %v5059_v33 = vunpack.i.l.bf16 %v7148_v6  ;;  %v5055_v56 = vunpack.i.h.bf16 %v5053_v9  ;;  %v5054_v41 = vunpack.i.l.bf16 %v5053_v9 }
 0x47f   : > { %v2104_v23 = vsel %vm2103_vm7, %v5059_v33, %v4970_v4  ;;  %v2192_v27 = vsel %vm2103_vm7, %v5060_v26, %v5054_v41  ;;  %v2193_v48 = vsel %vm2103_vm7, %v5054_v41, %v5055_v56 }
 0x480   : > { %v7159_v50 = vpop.permute.xlu0 %5067  ;;  %v7161_v45 = vpop.permute.xlu1 %5062  ;;  %v5176_v62 = vpack.i.bf16 %v2193_v48, %v2192_v27  ;;  %v2391_v61 = vpack.c.bf16 %v2127_v34, %v2104_v23 }
 0x481   : > { %v5064_v9 = vunpack.i.l.bf16 %v7161_v45  ;;  %v8345_v34 = vunpack.i.h.bf16 %v7161_v45 }
 0x482   : > { %5177 = vrot.lane.b32.xlu1 %v5176_v62, %s8380_s29  ;;  %2640 = vmatpush1.bf16.msra.mxu0 %v2391_v61 }
 0x483   : > { %2641 = vmatprep.subr.bf16.mxu0 %v2387_v29  ;;  %v2081_v4 = vsel %vm842_vm8, %v5064_v9, %v4990_v12 }
 0x484   : > { %v5073_v1 = vpop.permute.xlu0 %5072  ;;  %v7174_v56 = vpop.permute.xlu1 %5087 }
 0x485   : > { %v5074_v2 = vunpack.i.l.bf16 %v5073_v1  ;;  %v5075_v21 = vunpack.i.h.bf16 %v5073_v1 }
 0x487   : > { %v2059_v33 = vsel %vm780_vm10, %v5074_v2, %v4980_v52  ;;  %v1947_v2 = vsel %vm470_vm5, %v1936_v28, %v5035_v25 }
 0x488   : > { %v5078_v41 = vpop.permute.xlu0 %5077  ;;  %v2386_v61 = vpack.c.bf16 %v2081_v4, %v2059_v33  ;;  %v8349_v4 = vunpack.i.l.bf16 %v7159_v50  ;;  %v2371_v19 = vpack.c.bf16 %v1947_v2, %v6886_v40 }
 0x489   : > { %v5080_v23 = vunpack.i.h.bf16 %v5078_v41  ;;  %v5079_v27 = vunpack.i.l.bf16 %v5078_v41 }
 0x48a   : > { %2642 = vmatpush1.bf16.msra.mxu0 %v2386_v61 }
 0x48b   : > { %v2186_v60 = vsel %vm842_vm8, %v8345_v34, %v5079_v27  ;;  %v2187_v29 = vsel %vm842_vm8, %v5079_v27, %v5080_v23  ;;  %v7181_v12 = vpop.permute.xlu1 %5097  ;;  %2643 = vmatprep.subr.bf16.mxu0 %v7092_v13  ;;  %v5070_v13 = vunpack.i.h.bf16 %v7159_v50 }
 0x48c   : > { %v7184_v52 = vpop.permute.xlu0 %5082  ;;  %v5186_v48 = vpack.i.bf16 %v2187_v29, %v2186_v60 }
 0x48d   : > { %v7214_v40 = vsel %vm780_vm10, %v8349_v4, %v5070_v13 }
 0x48e   : > { %5187 = vrot.lane.b32.xlu1 %v5186_v48, %s8380_s29  ;;  %2644 = vmatpush1.bf16.msra.mxu0 %v2381_v16  ;;  %v5090_v16 = vunpack.i.h.bf16 %v7174_v56 }
 0x48f   : > { %v7190_v62 = vpop.permute.xlu1 %5107  ;;  %2645 = vmatprep.subr.bf16.mxu0 %v2377_v58  ;;  %v8347_v58 = vunpack.i.l.bf16 %v7174_v56 }
 0x490   : > { %v5093_v9 = vpop.permute.xlu0 %5092  ;;  %v8350_v25 = vunpack.i.h.bf16 %v7190_v62  ;;  %v5109_v8 = vunpack.i.l.bf16 %v7190_v62 }
 0x491   : > { %v5094_v28 = vunpack.i.l.bf16 %v5093_v9  ;;  %v2172_v23 = vsel %vm2168_vm4, %v8347_v58, %v5090_v16  ;;  %v5095_v2 = vunpack.i.h.bf16 %v5093_v9 }
 0x492   : > { %2646 = vmatpush1.bf16.msra.mxu0 %v2376_v14 }
 0x493   : > { %v7200_v33 = vpop.permute.xlu1 %5117  ;;  %2647 = vmatprep.subr.bf16.mxu0 %v2372_v11 }
 0x494   : > { %v7205_v41 = vpop.permute.xlu0 %5102  ;;  %v5120_v9 = vunpack.i.h.bf16 %v7200_v33 }
 0x495   : > { %v8346_v20 = vunpack.i.h.bf16 %v7205_v41  ;;  %v5104_v14 = vunpack.i.l.bf16 %v7205_v41 }
 0x496   : > { %2648 = vmatpush1.bf16.msra.mxu0 %v2371_v19 }
 0x497   : > { %v2326_v11 = vsel %vm780_vm10, %v5104_v14, %v8346_v20  ;;  %v5128_v1 = vpop.permute.xlu1 %5127  ;;  %v2325_v61 = vsel %vm780_vm10, %v5075_v21, %v5104_v14  ;;  %v2316_v20 = vsel %vm780_vm10, %v5109_v8, %v8350_v25  ;;  %v2315_v21 = vsel %vm780_vm10, %v5094_v28, %v5109_v8 }
 0x498   : > { %v2420_v27 = vpack.c.bf16 %v2326_v11, %v2326_v11  ;;  %v5129_v60 = vunpack.i.l.bf16 %v5128_v1  ;;  %v7223_v29 = vpop.permute.xlu0 %5112  ;;  %v2419_v48 = vpack.c.bf16 %v2325_v61, %v2325_v61  ;;  %v5119_v14 = vunpack.i.l.bf16 %v7200_v33 }
 0x499   : > { %v8352_v19 = vunpack.i.h.bf16 %v7223_v29  ;;  %v5114_v34 = vunpack.i.l.bf16 %v7223_v29  ;;  %v5099_v28 = vunpack.i.l.bf16 %v7181_v12 }
 0x49a   : > { %v2181_v58 = vsel %vm780_vm10, %v5070_v13, %v5129_v60  ;;  %4201 = vmatprep.subr.msk.bf16.mxu0 %vm1478_vm14, %v2420_v27  ;;  %v2619_v11 = vsel %vm1478_vm14, %v2419_v48, 0  ;;  %v5100_v48 = vunpack.i.h.bf16 %v7181_v12  ;;  %v2306_v12 = vsel %vm780_vm10, %v5119_v14, %v5120_v9 }
 0x49b   : > { %v5181_v61 = vpack.i.bf16 %v2181_v58, %v7214_v40  ;;  %v2320_v5 = vsel %vm780_vm10, %v5095_v2, %v5114_v34  ;;  %v7238_v4 = vpop.permute.xlu1 %5132  ;;  %2656 = vmatpush2.bf16.msra.mxu0 %v2619_v11  ;;  %v2321_v8 = vsel %vm780_vm10, %v5114_v34, %v8352_v19  ;;  %v5191_v2 = vpack.i.bf16 %v5090_v16, %v2172_v23 }
 0x49c   : > { %v2414_v13 = vpack.c.bf16 %v2320_v5, %v2315_v21  ;;  %v7244_v60 = vpop.permute.xlu0 %5122  ;;  %v2415_v27 = vpack.c.bf16 %v2321_v8, %v2316_v20  ;;  %v5085_v11 = vunpack.i.h.bf16 %v7184_v52  ;;  %v2305_v24 = vsel %vm780_vm10, %v5099_v28, %v5119_v14 }
 0x49d   : > { %v8353_v25 = vunpack.i.h.bf16 %v7244_v60  ;;  %v5124_v58 = vunpack.i.l.bf16 %v7244_v60  ;;  %5182 = vrot.lane.b32.xlu0 %v5181_v61, %s8380_s29  ;;  %v8356_v34 = vunpack.i.l.bf16 %v7238_v4  ;;  %v5135_v16 = vunpack.i.h.bf16 %v7238_v4 }
 0x49e   : > { %2657 = vmatprep.subr.bf16.mxu0 %v2415_v27  ;;  %v5084_v27 = vunpack.i.l.bf16 %v7184_v52  ;;  %v8440_v33 = vunpack.i.l.bf16 %v7238_v4 }
 0x49f   : > { %v2310_v5 = vsel %vm780_vm10, %v5100_v48, %v5124_v58  ;;  %v5148_v21 = vpop.permute.xlu1 %5147  ;;  %2658 = vmatpush2.bf16.msra.mxu0 %v2414_v13  ;;  %v2311_v20 = vsel %vm780_vm10, %v5124_v58, %v8353_v25  ;;  %v5130_v48 = vunpack.i.h.bf16 %v5128_v1 }
 0x4a0   : > { %v2409_v23 = vpack.c.bf16 %v2310_v5, %v2305_v24  ;;  %v5149_v61 = vunpack.i.l.bf16 %v5148_v21  ;;  %v7261_v8 = vpop.permute.xlu0 %5137  ;;  %v2410_v28 = vpack.c.bf16 %v2311_v20, %v2306_v12  ;;  %v5150_v58 = vunpack.i.h.bf16 %v5148_v21 }
 0x4a1   : > { %v5140_v13 = vunpack.i.h.bf16 %v7261_v8  ;;  %v8354_v19 = vunpack.i.l.bf16 %v7261_v8  ;;  %5192 = vrot.lane.b32.xlu0 %v5191_v2, %s8380_s29  ;;  %v2296_v52 = vsel %vm780_vm10, %v5130_v48, %v8356_v34 }
 0x4a2   : > { %v2300_v14 = vsel %vm780_vm10, %v5149_v61, %v5135_v16  ;;  %2659 = vmatprep.subr.bf16.mxu0 %v2410_v28  ;;  %v2156_v61 = vsel %vm718_vm13, %v5084_v27, %v5085_v11 }
 0x4a3   : > { %v2295_v25 = vsel %vm780_vm10, %v5140_v13, %v5130_v48  ;;  %v7269_v24 = vpop.permute.xlu1 %5152  ;;  %2660 = vmatpush2.bf16.msra.mxu0 %v2409_v23  ;;  %v2301_v1 = vsel %vm780_vm10, %v5135_v16, %v8354_v19 }
 0x4a4   : > { %v2404_v5 = vpack.c.bf16 %v2300_v14, %v2295_v25  ;;  %v5155_v2 = vunpack.i.h.bf16 %v7269_v24  ;;  %v8355_v12 = vunpack.i.l.bf16 %v7269_v24  ;;  %v2174_v20 = vpop.permute.xlu0 %2173  ;;  %v2405_v21 = vpack.c.bf16 %v2301_v1, %v2296_v52 }
 0x4a5   : > { %v2175_v28 = vsel %vm718_vm13, %v5085_v11, %v2174_v20 }
 0x4a6   : > { %v2290_v23 = vsel %vm780_vm10, %v5155_v2, %v5150_v58  ;;  %v5196_v13 = vpack.i.bf16 %v2175_v28, %v2156_v61  ;;  %2661 = vmatprep.subr.bf16.mxu0 %v2405_v21  ;;  %v2291_v48 = vsel %vm780_vm10, %v5150_v58, %v8355_v12  ;;  %v7292_v58 = vld [vmem:[%s8285_s3] ss:$8 sps:$4 sm:$0xff]  }
 0x4a7   : > { %v5158_v16 = vpop.permute.xlu1 %5157  ;;  %2662 = vmatpush2.bf16.msra.mxu0 %v2404_v5  ;;  %v2400_v25 = vpack.c.bf16 %v2291_v48, %v6974_v63  ;;  %v2399_v1 = vpack.c.bf16 %v2290_v23, %v6943_v17 }
 0x4a8   : > { %v5160_v14 = vunpack.i.h.bf16 %v5158_v16  ;;  %v5159_v19 = vunpack.i.l.bf16 %v5158_v16  ;;  %5197 = vrot.lane.b32.xlu1 %v5196_v13, %s8380_s29  ;;  %v5143_v52 = vpop.permute.xlu0 %5142  ;;  %v7298_v13 = vld [vmem:[%s8285_s3 + $0x14] ss:$8 sps:$4 sm:$0xff]  }
 0x4a9   : > { %v5145_v11 = vunpack.i.h.bf16 %v5143_v52  ;;  %v5144_v20 = vunpack.i.l.bf16 %v5143_v52  ;;  %2663 = vmatprep.subr.bf16.mxu0 %v2400_v25  ;;  %v8423_v25 = vunpack.i.l.bf16 %v6907_v44  ;;  %v8426_v44 = vunpack.i.l.bf16 %v6951_v49 }
 0x4aa   : > { %v2148_v2 = vsel %vm1991_vm0, %v5159_v19, %v5160_v14 }
 0x4ab   : > { %v5206_v5 = vpack.i.bf16 %v5160_v14, %v2148_v2  ;;  %v2144_v21 = vsel %vm8422_vm11, %v5144_v20, %v5145_v11  ;;  %v5168_v28 = vpop.permute.xlu1 %5167  ;;  %2664 = vmatpush2.bf16.msra.mxu0 %v2399_v1  ;;  %v7306_v14 = vsel %vm2103_vm7, %v8423_v25, %v5060_v26  ;;  %v2041_v6 = vsel %vm718_vm13, %v8426_v44, %v5084_v27  ;;  %vm8430_vm7 = vmmov %vm8419_vm1 }
 0x4ac   : > { %v5201_v17 = vpack.i.bf16 %v5145_v11, %v2144_v21  ;;  %v5170_v23 = vunpack.i.h.bf16 %v5168_v28  ;;  %v5169_v48 = vunpack.i.l.bf16 %v5168_v28  ;;  %v5163_v16 = vpop.permute.xlu0 %5162  ;;  %2803 = vmatprep.subr.bf16.mxu0 %v5634_v15  ;;  %v8424_v11 = vunpack.i.l.bf16 %v7159_v50 }
 0x4ad   : > { %v5165_v52 = vunpack.i.h.bf16 %v5163_v16  ;;  %v5164_v1 = vunpack.i.l.bf16 %v5163_v16  ;;  %5207 = vrot.lane.b32.xlu1 %v5206_v5, %s8380_s29  ;;  %v8425_v28 = vunpack.i.l.bf16 %v6918_v0  ;;  %v8427_v50 = vunpack.i.l.bf16 %v7000_v36 }
 0x4ae   : > { %v2152_v12 = vsel %vm2014_vm2, %v5169_v48, %v5170_v23  ;;  %5202 = vrot.lane.b32.xlu0 %v5201_v17, %s8380_s29  ;;  %2666 = vmatmul.mubr.bf16.vlgmr.msra.gmra.mxu0 %v7292_v58  ;;  %v8428_v25 = vunpack.i.h.bf16 %v7077_v53 }
 0x4af   : > { %v7315_v34 = vsel %vm780_vm10, %v8425_v28, %v8424_v11  ;;  %v2398_v26 = vpack.c.bf16 %v2156_v61, %v2152_v12  ;;  %v2140_v23 = vsel %vm470_vm5, %v5164_v1, %v5165_v52  ;;  %v2011_v16 = vpop.permute.xlu1 %2010  ;;  %v1996_v0 = vsel %vm1991_vm0, %v8427_v50, %v5159_v19  ;;  %4203 = vmatprep.mubr.msk.bf16.mxu0 %vm1453_vm12, %v7298_v13  ;;  %v7362_v28 = vld [vmem:[%s8285_s3 + $0x24] ss:$8 sps:$4 sm:$0xff]   ;;  %vm8449_vm0 = vmmov %vm8419_vm1 }
 0x4b0   : > { %v5216_v5 = vpack.i.bf16 %v7315_v34, %v5165_v52  ;;  %v5211_v17 = vpack.i.bf16 %v2140_v23, %v7306_v14  ;;  %v2018_v49 = vsel %vm2014_vm2, %v8428_v25, %v2011_v16  ;;  %v2019_v27 = vsel %vm2014_vm2, %v2011_v16, %v5169_v48  ;;  %v5173_v12 = vpop.permute.xlu0 %5172  ;;  %vm8451_vm3 = vmmov %vm8449_vm0 }
 0x4b1   : > { %v8429_v61 = vunpack.i.l.bf16 %v6978_v55  ;;  %v7338_v36 = vpack.c.bf16 %v7042_v42, %v2018_v49  ;;  %v7340_v19 = vpack.c.bf16 %v2041_v6, %v2019_v27  ;;  %2804 = vmatpush1.bf16.msra.mxu0 %v2398_v26  ;;  %v8431_v11 = vunpack.i.l.bf16 %v7174_v56  ;;  %v7353_v42 = vld [vmem:[%s8285_s3 + $0x10] ss:$8 sps:$4 sm:$0xff]   ;;  %vm8452_vm6 = vmmov %vm8449_vm0 }
 0x4b2   : > { %5217 = vrot.lane.b32.xlu1 %v5216_v5, %s8380_s29  ;;  %5212 = vrot.lane.b32.xlu0 %v5211_v17, %s8380_s29  ;;  %v2397_v48 = vpack.c.bf16 %v2148_v2, %v2144_v21  ;;  %v8432_v56 = vunpack.i.l.bf16 %v7024_v35  ;;  %v5175_v44 = vunpack.i.h.bf16 %v5173_v12  ;;  %v8433_v5 = vunpack.i.h.bf16 %v7161_v45  ;;  %v2440_v17 = vld [vmem:[%s8286_s4] sm:$0xff]  ;;  %v7420_v49 = vld [vmem:[%s8285_s3 + $0x30] ss:$8 sps:$4 sm:$0xff]   ;;  %vm8454_vm11 = vmmov %vm8449_vm0 }
 0x4b3   : > { %v1973_v52 = vsel %vm8430_vm7, %v8429_v61, %v5144_v20  ;;  %v2171_v53 = vsel %vm2168_vm4, %v6962_v43, %v8431_v11  ;;  %2805 = vmatprep.subr.bf16.mxu0 %v5634_v15  ;;  %2718 = vmatprep.subr.bf16.mxu1 %v7340_v19  ;;  %v8434_v2 = vunpack.i.l.bf16 %v6931_v39  ;;  %v8435_v45 = vunpack.i.h.bf16 %v7035_v51  ;;  %v7404_v51 = vld [vmem:[%s8285_s3 + $0x34] ss:$8 sps:$4 sm:$0xff]   ;;  %v7481_v27 = vld [vmem:[%s8285_s3 + $0x70] ss:$8 sps:$4 sm:$0xff]   ;;  %vm8455_vm7 = vmmov %vm8449_vm0 }
 0x4b4   : > { %v5221_v55 = vpack.i.bf16 %v2041_v6, %v2171_v53  ;;  %v2380_v20 = vpack.c.bf16 %v1996_v0, %v1973_v52  ;;  %2719 = vmatpush1.bf16.msra.mxu1 %v7338_v36  ;;  %v1951_v43 = vsel %vm470_vm5, %v8432_v56, %v5164_v1  ;;  %v5174_v6 = vunpack.i.l.bf16 %v5173_v12  ;;  %v2121_v26 = vpop.permute.xlu0 %2120 }
 0x4b5   : > { %v2085_v21 = vsel %vm842_vm8, %v8434_v2, %v8433_v5  ;;  %2806 = vmatpush1.bf16.msra.mxu0 %v2397_v48  ;;  %v2375_v35 = vpack.c.bf16 %v1951_v43, %v6856_v59  ;;  %v2396_v1 = vpack.c.bf16 %v2140_v23, %v6912_v31  ;;  %v5226_v50 = vpack.i.bf16 %v1996_v0, %v1973_v52  ;;  %v2441_v31 = vld [vmem:[%s8286_s4 + $0x8] sm:$0xff]  ;;  %vm8445_vm8 = vmmov %vm8419_vm1 }
 0x4b6   : > { %5222 = vrot.lane.b32.xlu1 %v5221_v55, %s8380_s29  ;;  %2720 = vmatprep.subr.bf16.mxu1 %v2380_v20  ;;  %v2130_v16 = vsel %vm2126_vm9, %v2121_v26, %v5174_v6  ;;  %v2131_v39 = vsel %vm2126_vm9, %v5174_v6, %v5175_v44  ;;  %v2374_v59 = vpack.c.bf16 %v7073_v37, %v6859_v30  ;;  %v7398_v30 = vld [vmem:[%s8285_s3 + $0x20] ss:$8 sps:$4 sm:$0xff]   ;;  %vm3072_vm4 = vcmask 916480  }
 0x4b7   : > { %2272 = vrot.lane.b32.xlu0 %v2085_v21, %s8380_s29  ;;  %2807 = vmatprep.subr.bf16.mxu0 %v5634_v15  ;;  %v2129_v23 = vsel %vm2126_vm9, %v8435_v45, %v2121_v26  ;;  %v2394_v0 = vpack.c.bf16 %v2130_v16, %v6995_v57  ;;  %v2395_v37 = vpack.c.bf16 %v2131_v39, %v7306_v14  ;;  %vm8453_vm9 = vmmov %vm8449_vm0 }
 0x4b8   : > { %2676 = vmatmul.mubr.bf16.gmra.mxu0 %v7353_v42  ;;  %2721 = vmatpush1.bf16.msra.mxu1 %v7027_v47  ;;  %v2393_v57 = vpack.c.bf16 %v2129_v23, %v6990_v46  ;;  %v2389_v25 = vpack.c.bf16 %v7013_v3, %v6968_v54  ;;  %v2390_v14 = vpack.c.bf16 %v2085_v21, %v7315_v34  ;;  %v7425_v3 = vld [vmem:[%s8285_s3 + $0x44] ss:$8 sps:$4 sm:$0xff]  }
 0x4b9   : > { %4204 = vmatprep.mubr.msk.bf16.mxu0 %vm1453_vm12, %v7362_v28  ;;  %2722 = vmatprep.subr.bf16.mxu1 %v2375_v35  ;;  %v2388_v46 = vpack.c.bf16 %v7030_v10, %v6974_v63  ;;  %v7439_v63 = vld [vmem:[%s8285_s3 + $0x40] ss:$8 sps:$4 sm:$0xff]   ;;  %v7445_v10 = vld [vmem:[%s8285_s3 + $0x54] ss:$8 sps:$4 sm:$0xff]  }
 0x4ba   : > { %2200 = vrot.lane.b32.xlu1 %v1951_v43, %s8380_s29  ;;  %2808 = vmatpush1.bf16.msra.mxu0 %v2396_v1 }
 0x4bb   : > { %5227 = vrot.lane.b32.xlu0 %v5226_v50, %s8380_s29  ;;  %2809 = vmatprep.subr.bf16.mxu0 %v5634_v15 }
 0x4bc   : > { %2723 = vmatpush1.bf16.msra.mxu1 %v2374_v59 }
 0x4bd   : > { %2724 = vmatprep.subr.bf16.mxu1 %v2394_v0 }
 0x4be   : > { %2463 = vperm.xlu1 %4925, %v2441_v31   ;;  %2810 = vmatpush1.bf16.msra.mxu0 %v2395_v37 }
 0x4bf   : > { %2458 = vperm.xlu0 %5231, %v2440_v17   ;;  %2811 = vmatprep.subr.bf16.mxu0 %v5634_v15 }
 0x4c0   : > { %2682 = vmatmul.mubr.bf16.gmra.mxu0 %v7398_v30  ;;  %2725 = vmatpush1.bf16.msra.mxu1 %v2393_v57 }
 0x4c1   : > { %4205 = vmatprep.mubr.msk.bf16.mxu0 %vm1453_vm12, %v7404_v51  ;;  %2726 = vmatprep.subr.bf16.mxu1 %v2389_v25 }
 0x4c2   : > { %2812 = vmatpush1.bf16.msra.mxu0 %v2390_v14 }
 0x4c3   : > { %2813 = vmatprep.subr.bf16.mxu0 %v5634_v15 }
 0x4c4   : > { %2727 = vmatpush1.bf16.msra.mxu1 %v2388_v46 }
 0x4c5   : > { %2728 = vmatprep.subr.bf16.mxu1 %v7338_v36 }
 0x4c6   : > { %2814 = vmatpush1.bf16.msra.mxu0 %v7340_v19 }
 0x4c7   : > { %2815 = vmatprep.subr.bf16.mxu0 %v5634_v15 }
 0x4c8   : > { %2688 = vmatmul.mubr.bf16.gmra.mxu0 %v7420_v49  ;;  %2729 = vmatpush1.bf16.msra.mxu1 %v7090_v32  ;;  %v7455_v32 = vld [vmem:[%s8285_s3 + $0x50] ss:$8 sps:$4 sm:$0xff]  }
 0x4c9   : > { %4206 = vmatprep.mubr.msk.bf16.mxu0 %vm1453_vm12, %v7425_v3  ;;  %2730 = vmatprep.subr.bf16.mxu1 %v7027_v47  ;;  %v7460_v47 = vld [vmem:[%s8285_s3 + $0x64] ss:$8 sps:$4 sm:$0xff]  }
 0x4ca   : > { %2816 = vmatpush1.bf16.msra.mxu0 %v2380_v20 }
 0x4cb   : > { %2817 = vmatprep.subr.bf16.mxu0 %v5634_v15 }
 0x4cc   : > { %2731 = vmatpush1.bf16.msra.mxu1 %v7112_v18  ;;  %v7468_v18 = vld [vmem:[%s8285_s3 + $0x60] ss:$8 sps:$4 sm:$0xff]  }
 0x4cd   : > { %2732 = vmatprep.subr.bf16.mxu1 %v2374_v59 }
 0x4ce   : > { %2818 = vmatpush1.bf16.msra.mxu0 %v2375_v35 }
 0x4cf   : > { %2825 = vmatprep.subr.bf16.mxu0 %v5634_v15 }
 0x4d0   : > { %2694 = vmatmul.mubr.bf16.gmra.mxu0 %v7439_v63  ;;  %2733 = vmatpush1.bf16.msra.mxu1 %v7127_v22  ;;  %v7473_v22 = vld [vmem:[%s8285_s3 + $0x74] ss:$8 sps:$4 sm:$0xff]  }
 0x4d1   : > { %4207 = vmatprep.mubr.msk.bf16.mxu0 %vm1453_vm12, %v7445_v10 }
 0x4d8   : > { %2700 = vmatmul.mubr.bf16.gmra.mxu0 %v7455_v32 }
 0x4d9   : > { %4208 = vmatprep.mubr.msk.bf16.mxu0 %vm1453_vm12, %v7460_v47 }
 0x4e0   : > { %2706 = vmatmul.mubr.bf16.gmra.mxu0 %v7468_v18 }
 0x4e1   : > { %4209 = vmatprep.mubr.msk.bf16.mxu0 %vm1453_vm12, %v7473_v22 }
 0x4e8   : > { %2712 = vmatmul.mubr.bf16.gmra.mxu0 %v7481_v27 }
 0x4e9   : > { %4219 = vmatprep.mubr.msk.bf16.mxu0 %vm1453_vm12, %v7097_v38 }
 0x4f4   : > { %v5178_v12 = vpop.permute.xlu1 %5177 }
 0x4f5   : > { %v5180_v61 = vunpack.i.h.bf16 %v5178_v12  ;;  %v5179_v52 = vunpack.i.l.bf16 %v5178_v12 }
 0x4f7   : > { %v2329_v36 = vsel %vm780_vm10, %v5179_v52, %v5180_v61 }
 0x4f8   : > { %v2423_v19 = vpack.c.bf16 %v2329_v36, %v2329_v36 }
 0x4fa   : > { %v2631_v11 = vsel %vm1478_vm14, %v2423_v19, 0 }
 0x4fb   : > { %2826 = vmatpush2.bf16.msra.mxu0 %v2631_v11 }
 0x4fc   : > { %2827 = vmatprep.subr.bf16.mxu0 %v5634_v15 }
 0x500   : > { %v5188_v53 = vpop.permute.xlu1 %5187 }
 0x501   : > { %v5190_v55 = vunpack.i.h.bf16 %v5188_v53  ;;  %v5189_v20 = vunpack.i.l.bf16 %v5188_v53 }
 0x503   : > { %v2324_v44 = vsel %vm780_vm10, %v5189_v20, %v5190_v55 }
 0x50f   : > { %v5183_v48 = vpop.permute.xlu0 %5182 }
 0x510   : > { %v5185_v56 = vunpack.i.h.bf16 %v5183_v48  ;;  %v5184_v43 = vunpack.i.l.bf16 %v5183_v48  ;;  %v8436_v48 = vunpack.i.h.bf16 %v7205_v41 }
 0x512   : > { %v2319_v38 = vsel %vm780_vm10, %v5184_v43, %v5185_v56 }
 0x513   : > { %v2418_v6 = vpack.c.bf16 %v2324_v44, %v2319_v38  ;;  %v5193_v26 = vpop.permute.xlu0 %5192 }
 0x514   : > { %v5195_v5 = vunpack.i.h.bf16 %v5193_v26  ;;  %v5194_v2 = vunpack.i.l.bf16 %v5193_v26 }
 0x515   : > { %2828 = vmatpush2.bf16.msra.mxu0 %v2418_v6 }
 0x516   : > { %2829 = vmatprep.subr.bf16.mxu0 %v5634_v15  ;;  %v2309_v16 = vsel %vm780_vm10, %v5194_v2, %v5195_v5 }
 0x51a   : > { %v5198_v21 = vpop.permute.xlu1 %5197 }
 0x51b   : > { %v5200_v35 = vunpack.i.h.bf16 %v5198_v21  ;;  %v5199_v1 = vunpack.i.l.bf16 %v5198_v21 }
 0x51d   : > { %v2314_v50 = vsel %vm780_vm10, %v5199_v1, %v5200_v35 }
 0x51e   : > { %v2413_v39 = vpack.c.bf16 %v2314_v50, %v2309_v16 }
 0x51f   : > { %v5208_v59 = vpop.permute.xlu1 %5207 }
 0x520   : > { %v5210_v31 = vunpack.i.h.bf16 %v5208_v59  ;;  %v5209_v45 = vunpack.i.l.bf16 %v5208_v59  ;;  %v5203_v23 = vpop.permute.xlu0 %5202  ;;  %2830 = vmatpush2.bf16.msra.mxu0 %v2413_v39 }
 0x521   : > { %v5205_v0 = vunpack.i.h.bf16 %v5203_v23  ;;  %v5204_v17 = vunpack.i.l.bf16 %v5203_v23  ;;  %2831 = vmatprep.subr.bf16.mxu0 %v5634_v15 }
 0x522   : > { %v2304_v37 = vsel %vm780_vm10, %v5209_v45, %v5210_v31 }
 0x523   : > { %v2299_v57 = vsel %vm780_vm10, %v5204_v17, %v5205_v0 }
 0x524   : > { %v5218_v25 = vpop.permute.xlu1 %5217  ;;  %v2408_v14 = vpack.c.bf16 %v2304_v37, %v2299_v57  ;;  %v5213_v12 = vpop.permute.xlu0 %5212 }
 0x525   : > { %v5219_v46 = vunpack.i.l.bf16 %v5218_v25  ;;  %v5220_v61 = vunpack.i.h.bf16 %v5218_v25  ;;  %v5215_v36 = vunpack.i.h.bf16 %v5213_v12  ;;  %v5214_v19 = vunpack.i.l.bf16 %v5213_v12 }
 0x526   : > { %2832 = vmatpush2.bf16.msra.mxu0 %v2408_v14 }
 0x527   : > { %v2294_v11 = vsel %vm780_vm10, %v5215_v36, %v5219_v46  ;;  %v2328_v53 = vsel %vm780_vm10, %v5214_v19, %v5179_v52  ;;  %2833 = vmatprep.subr.bf16.mxu0 %v5634_v15  ;;  %v2327_v56 = vsel %vm780_vm10, %v8436_v48, %v5214_v19  ;;  %v2318_v21 = vsel %vm780_vm10, %v5220_v61, %v5184_v43 }
 0x528   : > { %v5223_v55 = vpop.permute.xlu1 %5222  ;;  %v2403_v44 = vpack.c.bf16 %v2294_v11, %v7214_v40  ;;  %v2422_v38 = vpack.c.bf16 %v2328_v53, %v2328_v53  ;;  %v2421_v16 = vpack.c.bf16 %v2327_v56, %v2327_v56  ;;  %v8437_v52 = vunpack.i.h.bf16 %v7223_v29 }
 0x529   : > { %v5225_v6 = vunpack.i.h.bf16 %v5223_v55  ;;  %v5224_v26 = vunpack.i.l.bf16 %v5223_v55  ;;  %v2273_v5 = vpop.permute.xlu0 %2272 }
 0x52a   : > { %v2323_v35 = vsel %vm780_vm10, %v2273_v5, %v5189_v20  ;;  %4210 = vmatprep.subr.msk.bf16.mxu1 %vm1478_vm14, %v2422_v38  ;;  %v2322_v41 = vsel %vm780_vm10, %v8437_v52, %v2273_v5  ;;  %2834 = vmatpush2.bf16.msra.mxu0 %v2403_v44  ;;  %v2625_v39 = vsel %vm1478_vm14, %v2421_v16, 0  ;;  %v8438_v20 = vunpack.i.h.bf16 %v7190_v62 }
 0x52b   : > { %v2417_v50 = vpack.c.bf16 %v2323_v35, %v2318_v21  ;;  %2741 = vmatpush2.bf16.msra.mxu1 %v2625_v39  ;;  %v2308_v59 = vsel %vm780_vm10, %v5224_v26, %v5194_v2  ;;  %v2313_v31 = vsel %vm780_vm10, %v5225_v6, %v5199_v1  ;;  %3684 = vmatprep.subr.bf16.mxu0 %v5634_v15  ;;  %v8439_v2 = vunpack.i.h.bf16 %v7244_v60 }
 0x52c   : > { %v2317_v43 = vsel %vm780_vm10, %v8438_v20, %v5220_v61  ;;  %v2307_v37 = vsel %vm780_vm10, %v5120_v9, %v5224_v26  ;;  %v2412_v57 = vpack.c.bf16 %v2313_v31, %v2308_v59  ;;  %v2201_v14 = vpop.permute.xlu1 %2200  ;;  %v8441_v60 = vunpack.i.l.bf16 %v7261_v8 }
 0x52d   : > { %v5228_v40 = vpop.permute.xlu0 %5227  ;;  %2742 = vmatprep.subr.bf16.mxu1 %v2417_v50  ;;  %v2416_v29 = vpack.c.bf16 %v2322_v41, %v2317_v43  ;;  %2836 = vmatmul.mubr.bf16.vlgmr.msra.gmra.mxu0 %v7292_v58  ;;  %v2312_v1 = vsel %vm780_vm10, %v8439_v2, %v5225_v6  ;;  %v2293_v19 = vsel %vm780_vm10, %v2201_v14, %v5215_v36  ;;  %vm3562_vm14 = vcmask 130048  }
 0x52e   : > { %v5230_v23 = vunpack.i.h.bf16 %v5228_v40  ;;  %v5229_v0 = vunpack.i.l.bf16 %v5228_v40  ;;  %4220 = vmatprep.mubr.msk.bf16.mxu0 %vm1453_vm12, %v7298_v13  ;;  %v2411_v46 = vpack.c.bf16 %v2312_v1, %v2307_v37  ;;  %v2402_v4 = vpack.c.bf16 %v2293_v19, %v7315_v34 }
 0x52f   : > { %2743 = vmatpush2.bf16.msra.mxu1 %v2416_v29 }
 0x530   : > { %v2298_v62 = vsel %vm780_vm10, %v5229_v0, %v5204_v17  ;;  %v2303_v25 = vsel %vm780_vm10, %v5230_v23, %v5209_v45  ;;  %2744 = vmatprep.subr.bf16.mxu1 %v2412_v57  ;;  %v2297_v9 = vsel %vm780_vm10, %v8440_v33, %v5229_v0  ;;  %v2302_v12 = vsel %vm780_vm10, %v8441_v60, %v5230_v23 }
 0x531   : > { %v2407_v61 = vpack.c.bf16 %v2303_v25, %v2298_v62  ;;  %v2406_v11 = vpack.c.bf16 %v2302_v12, %v2297_v9  ;;  %v8442_v45 = vunpack.i.l.bf16 %v7269_v24 }
 0x533   : > { %2745 = vmatpush2.bf16.msra.mxu1 %v2411_v46  ;;  %v2292_v17 = vsel %vm780_vm10, %v8442_v45, %v2201_v14  ;;  %vm3059_vm10 = vcmask 949248  }
 0x534   : > { %2746 = vmatprep.subr.bf16.mxu1 %v2407_v61  ;;  %v2401_v8 = vpack.c.bf16 %v2292_v17, %v6968_v54 }
 0x535   : > { %2844 = vmatmul.mubr.bf16.gmra.mxu0 %v7353_v42 }
 0x536   : > { %4221 = vmatprep.mubr.msk.bf16.mxu0 %vm1453_vm12, %v7362_v28 }
 0x537   : > { %2747 = vmatpush2.bf16.msra.mxu1 %v2406_v11 }
 0x538   : > { %2748 = vmatprep.subr.bf16.mxu1 %v2402_v4 }
 0x539   : > { %v7593_v31 = vpop.permute.xlu1 %2463 }
 0x53a   : > { %v7587_v52 = vpop.permute.xlu0 %2458 }
 0x53b   : > { %2749 = vmatpush2.bf16.msra.mxu1 %v2401_v8 }
 0x53d   : > { %2850 = vmatmul.mubr.bf16.gmra.mxu0 %v7398_v30 }
 0x53e   : > { %2751 = vmatmul.mubr.bf16.vlgmr.msra.gmra.mxu1 %v7292_v58  ;;  %4222 = vmatprep.mubr.msk.bf16.mxu0 %vm1453_vm12, %v7404_v51 }
 0x53f   : > { %4212 = vmatprep.mubr.msk.bf16.mxu1 %vm1453_vm12, %v7298_v13 }
 0x545   : > { %2856 = vmatmul.mubr.bf16.gmra.mxu0 %v7420_v49 }
 0x546   : > { %2761 = vmatmul.mubr.bf16.gmra.mxu1 %v7353_v42  ;;  %4223 = vmatprep.mubr.msk.bf16.mxu0 %vm1453_vm12, %v7425_v3 }
 0x547   : > { %4213 = vmatprep.mubr.msk.bf16.mxu1 %vm1453_vm12, %v7362_v28 }
 0x54d   : > { %2862 = vmatmul.mubr.bf16.gmra.mxu0 %v7439_v63 }
 0x54e   : > { %2767 = vmatmul.mubr.bf16.gmra.mxu1 %v7398_v30  ;;  %4224 = vmatprep.mubr.msk.bf16.mxu0 %vm1453_vm12, %v7445_v10 }
 0x54f   : > { %4214 = vmatprep.mubr.msk.bf16.mxu1 %vm1453_vm12, %v7404_v51 }
 0x555   : > { %2868 = vmatmul.mubr.bf16.gmra.mxu0 %v7455_v32 }
 0x556   : > { %2773 = vmatmul.mubr.bf16.gmra.mxu1 %v7420_v49  ;;  %4225 = vmatprep.mubr.msk.bf16.mxu0 %vm1453_vm12, %v7460_v47 }
 0x557   : > { %4215 = vmatprep.mubr.msk.bf16.mxu1 %vm1453_vm12, %v7425_v3 }
 0x55d   : > { %2874 = vmatmul.mubr.bf16.gmra.mxu0 %v7468_v18 }
 0x55e   : > { %2779 = vmatmul.mubr.bf16.gmra.mxu1 %v7439_v63  ;;  %4226 = vmatprep.mubr.msk.bf16.mxu0 %vm1453_vm12, %v7473_v22 }
 0x55f   : > { %4216 = vmatprep.mubr.msk.bf16.mxu1 %vm1453_vm12, %v7445_v10 }
 0x565   : > { %2880 = vmatmul.mubr.bf16.gmra.mxu0 %v7481_v27 }
 0x566   : > { %2785 = vmatmul.mubr.bf16.gmra.mxu1 %v7455_v32 }
 0x567   : > { %4217 = vmatprep.mubr.msk.bf16.mxu1 %vm1453_vm12, %v7460_v47 }
 0x56e   : > { %v7577_v54 = vpop.f32.mrf.mxu0  ;;  %2791 = vmatmul.mubr.bf16.gmra.mxu1 %v7468_v18 }
 0x56f   : > { %4218 = vmatprep.mubr.msk.bf16.mxu1 %vm1453_vm12, %v7473_v22  ;;  %vm8446_vm12 = vmmov %vm8419_vm1 }
 0x570   : > { %v2669_v34 = vpop.f32.mrf.mxu0 }
 0x571   : > { %v7607_v62 = vadd.f32 %v2669_v34, %v7587_v52 }
 0x572   : > { %v7582_v24 = vpop.f32.mrf.mxu0 }
 0x573   : > { %v2887_v60 = vmax.f32 %v7607_v62, 0.0 }
 0x574   : > { %v7584_v58 = vpop.f32.mrf.mxu0 }
 0x576   : > { %2797 = vmatmul.mubr.bf16.gmra.mxu1 %v7481_v27 }
 0x578   : > { %v2677_v13 = vpop.f32.mrf.mxu0 }
 0x57a   : > { %v2678_v42 = vpop.f32.mrf.mxu0 }
 0x57c   : > { %v2679_v28 = vpop.f32.mrf.mxu0 }
 0x57d   : > { %v7630_v28 = vadd.f32 %v7584_v58, %v7593_v31 }
 0x57e   : > { %v2680_v30 = vpop.f32.mrf.mxu0 }
 0x580   : > { %v2683_v51 = vpop.f32.mrf.mxu0 }
 0x582   : > { %v2684_v49 = vpop.f32.mrf.mxu0 }
 0x584   : > { %v2685_v3 = vpop.f32.mrf.mxu0 }
 0x586   : > { %v2686_v63 = vpop.f32.mrf.mxu0 }
 0x588   : > { %v2689_v10 = vpop.f32.mrf.mxu0 }
 0x58a   : > { %v2690_v32 = vpop.f32.mrf.mxu0 }
 0x58c   : > { %v2691_v47 = vpop.f32.mrf.mxu0 }
 0x58e   : > { %v2692_v18 = vpop.f32.mrf.mxu0 }
 0x58f   : > { %v2892_v18 = vmax.f32 %v7630_v28, 0.0 }
 0x590   : > { %v2695_v36 = vpop.f32.mrf.mxu0 }
 0x592   : > { %v2696_v22 = vpop.f32.mrf.mxu0 }
 0x594   : > { %v2697_v53 = vpop.f32.mrf.mxu0 }
 0x596   : > { %v2698_v55 = vpop.f32.mrf.mxu0 }
 0x598   : > { %v2701_v48 = vpop.f32.mrf.mxu0 }
 0x59a   : > { %v2702_v56 = vpop.f32.mrf.mxu0 }
 0x59c   : > { %v2703_v44 = vpop.f32.mrf.mxu0 }
 0x59e   : > { %v2704_v38 = vpop.f32.mrf.mxu0 }
 0x5a0   : > { %v2707_v27 = vpop.f32.mrf.mxu0 }
 0x5a2   : > { %v2708_v6 = vpop.f32.mrf.mxu0 }
 0x5a4   : > { %v2709_v26 = vpop.f32.mrf.mxu0 }
 0x5a6   : > { %v2710_v5 = vpop.f32.mrf.mxu0 }
 0x5a8   : > { %v2713_v21 = vpop.f32.mrf.mxu0 }
 0x5aa   : > { %v2714_v35 = vpop.f32.mrf.mxu0 }
 0x5ac   : > { %v2715_v16 = vpop.f32.mrf.mxu0 }
 0x5ae   : > { %v2716_v50 = vpop.f32.mrf.mxu0 }
 0x5ed   : > { %v2837_v41 = vpop.f32.mrf.mxu0 }
 0x5ee   : > { %v7590_v39 = vadd.f32 %v2837_v41, %v7587_v52 }
 0x5ef   : > { %v2839_v40 = vpop.f32.mrf.mxu0 }
 0x5f0   : > { %v2890_v59 = vmax.f32 %v7590_v39, 0.0 }
 0x5f1   : > { %v2840_v20 = vpop.f32.mrf.mxu0 }
 0x5f2   : > { %v5232_v43 = vpack.i.bf16 %v8414_v7, %v2890_v59  ;;  %v7599_v23 = vadd.f32 %v2840_v20, %v7593_v31 }
 0x5f3   : > { %v2842_v0 = vpop.f32.mrf.mxu0 }
 0x5f4   : > { %v2895_v29 = vmax.f32 %v7599_v23, 0.0  ;;  %5233 = vrot.lane.b32.xlu1 %v5232_v43, %s8417_s13 }
 0x5f5   : > { %v2845_v37 = vpop.f32.mrf.mxu0 }
 0x5f6   : > { %2926 = vrot.lane.b32.xlu0 %v2895_v29, %s8417_s13 }
 0x5f7   : > { %v2846_v2 = vpop.f32.mrf.mxu0 }
 0x5f9   : > { %v2847_v1 = vpop.f32.mrf.mxu0 }
 0x5fb   : > { %v2848_v57 = vpop.f32.mrf.mxu0 }
 0x5fd   : > { %v2851_v25 = vpop.f32.mrf.mxu0 }
 0x5fe   : > { %v2752_v14 = vpop.f32.mrf.mxu1 }
 0x5ff   : > { %v7610_v46 = vadd.f32 %v2752_v14, %v7587_v52  ;;  %v2852_v33 = vpop.f32.mrf.mxu0 }
 0x600   : > { %v2754_v9 = vpop.f32.mrf.mxu1 }
 0x601   : > { %v2888_v12 = vmax.f32 %v7610_v46, 0.0  ;;  %v2853_v61 = vpop.f32.mrf.mxu0  ;;  %v7619_v45 = vadd.f32 %v2754_v9, %v7587_v52 }
 0x602   : > { %v2756_v19 = vpop.f32.mrf.mxu1 }
 0x603   : > { %v5242_v11 = vpack.i.bf16 %v2888_v12, %v2887_v60  ;;  %v2854_v17 = vpop.f32.mrf.mxu0  ;;  %v7622_v8 = vadd.f32 %v2756_v19, %v7593_v31  ;;  %v2889_v30 = vmax.f32 %v7619_v45, 0.0 }
 0x604   : > { %v2758_v4 = vpop.f32.mrf.mxu1 }
 0x605   : > { %v7625_v34 = vadd.f32 %v2758_v4, %v7593_v31  ;;  %5243 = vrot.lane.b32.xlu0 %v5242_v11, %s8417_s13  ;;  %v2857_v13 = vpop.f32.mrf.mxu0  ;;  %v2893_v63 = vmax.f32 %v7622_v8, 0.0 }
 0x606   : > { %v2762_v42 = vpop.f32.mrf.mxu1 }
 0x607   : > { %v2894_v51 = vmax.f32 %v7625_v34, 0.0  ;;  %v2858_v49 = vpop.f32.mrf.mxu0  ;;  %v5247_v22 = vpack.i.bf16 %v2893_v63, %v2892_v18 }
 0x608   : > { %v2763_v3 = vpop.f32.mrf.mxu1 }
 0x609   : > { %v5237_v10 = vpack.i.bf16 %v2894_v51, %v2889_v30  ;;  %v2859_v32 = vpop.f32.mrf.mxu0 }
 0x60a   : > { %v2764_v47 = vpop.f32.mrf.mxu1 }
 0x60b   : > { %5238 = vrot.lane.b32.xlu1 %v5237_v10, %s8417_s13  ;;  %v2860_v58 = vpop.f32.mrf.mxu0 }
 0x60c   : > { %v2765_v36 = vpop.f32.mrf.mxu1 }
 0x60d   : > { %v2863_v53 = vpop.f32.mrf.mxu0 }
 0x60e   : > { %v2768_v55 = vpop.f32.mrf.mxu1 }
 0x60f   : > { %5248 = vrot.lane.b32.xlu1 %v5247_v22, %s8417_s13  ;;  %v2864_v48 = vpop.f32.mrf.mxu0  ;;  %v2668_v55 = vadd.f32 %v7577_v54, %v7587_v52 }
 0x610   : > { %v2769_v56 = vpop.f32.mrf.mxu1  ;;  %v2672_v48 = vadd.f32 %v7582_v24, %v7593_v31 }
 0x611   : > { %v2865_v44 = vpop.f32.mrf.mxu0 }
 0x612   : > { %v2770_v38 = vpop.f32.mrf.mxu1 }
 0x613   : > { %v2866_v27 = vpop.f32.mrf.mxu0 }
 0x614   : > { %v2771_v6 = vpop.f32.mrf.mxu1 }
 0x615   : > { %v2869_v26 = vpop.f32.mrf.mxu0 }
 0x616   : > { %v2774_v5 = vpop.f32.mrf.mxu1 }
 0x617   : > { %v2870_v21 = vpop.f32.mrf.mxu0  ;;  %v2886_v5 = vmax.f32 %v2668_v55, 0.0 }
 0x618   : > { %v2775_v35 = vpop.f32.mrf.mxu1  ;;  %v2891_v21 = vmax.f32 %v2672_v48, 0.0 }
 0x619   : > { %v2871_v16 = vpop.f32.mrf.mxu0 }
 0x61a   : > { %v2776_v50 = vpop.f32.mrf.mxu1  ;;  %v5257_v24 = vpack.i.bf16 %v2891_v21, %v2886_v5 }
 0x61b   : > { %v2872_v41 = vpop.f32.mrf.mxu0 }
 0x61c   : > { %v2777_v40 = vpop.f32.mrf.mxu1 }
 0x61d   : > { %v2875_v20 = vpop.f32.mrf.mxu0 }
 0x61e   : > { %v2780_v43 = vpop.f32.mrf.mxu1 }
 0x61f   : > { %v2876_v0 = vpop.f32.mrf.mxu0 }
 0x620   : > { %v2781_v37 = vpop.f32.mrf.mxu1 }
 0x621   : > { %v2877_v2 = vpop.f32.mrf.mxu0 }
 0x622   : > { %v2782_v1 = vpop.f32.mrf.mxu1 }
 0x623   : > { %v2878_v57 = vpop.f32.mrf.mxu0 }
 0x624   : > { %v2783_v25 = vpop.f32.mrf.mxu1 }
 0x625   : > { %v2881_v14 = vpop.f32.mrf.mxu0 }
 0x626   : > { %v2786_v33 = vpop.f32.mrf.mxu1 }
 0x627   : > { %v2882_v9 = vpop.f32.mrf.mxu0 }
 0x628   : > { %v2787_v61 = vpop.f32.mrf.mxu1 }
 0x629   : > { %v2883_v19 = vpop.f32.mrf.mxu0 }
 0x62a   : > { %v2788_v11 = vpop.f32.mrf.mxu1 }
 0x62b   : > { %v2884_v17 = vpop.f32.mrf.mxu0 }
 0x62c   : > { %v2789_v4 = vpop.f32.mrf.mxu1 }
 0x62e   : > { %v2792_v13 = vpop.f32.mrf.mxu1 }
 0x630   : > { %v2793_v42 = vpop.f32.mrf.mxu1 }
 0x632   : > { %v2794_v49 = vpop.f32.mrf.mxu1 }
 0x634   : > { %v2795_v3 = vpop.f32.mrf.mxu1 }
 0x636   : > { %v2798_v10 = vpop.f32.mrf.mxu1 }
 0x638   : > { %v2799_v32 = vpop.f32.mrf.mxu1 }
 0x63a   : > { %v2800_v47 = vpop.f32.mrf.mxu1 }
 0x63c   : > { %v2801_v58 = vpop.f32.mrf.mxu1 }
 0x666   : > { %v5234_v36 = vpop.permute.xlu1 %5233 }
 0x667   : > { %v5236_v22 = vunpack.i.h.bf16 %v5234_v36  ;;  %v5235_v53 = vunpack.i.l.bf16 %v5234_v36 }
 0x668   : > { %v2927_v56 = vpop.permute.xlu0 %2926 }
 0x669   : > { %v2959_v44 = vmax.f32 %v5236_v22, 0.0  ;;  %v2932_v38 = vsel %vm470_vm5, %v5235_v53, %v5236_v22  ;;  %v2937_v27 = vsel %vm470_vm5, %v2927_v56, %v5236_v22 }
 0x66a   : > { %v2952_v6 = vmax.f32 %v2890_v59, %v2932_v38  ;;  %v2957_v26 = vmax.f32 %v2895_v29, %v2937_v27 }
 0x66c   : > { %2991 = vrot.lane.b32.xlu1 %v2957_v26, %s8415_s12  ;;  %v5252_v54 = vpack.i.bf16 %v2959_v44, %v2952_v6 }
 0x66e   : > { %5253 = vrot.lane.b32.xlu0 %v5252_v54, %s8415_s12 }
 0x672   : > { %5258 = vrot.lane.b32.xlu0 %v5257_v24, %s8417_s13  ;;  %s5641_s13 = smov 4  }
 0x677   : > { %v5244_v52 = vpop.permute.xlu0 %5243 }
 0x678   : > { %v5246_v31 = vunpack.i.h.bf16 %v5244_v52  ;;  %v5245_v35 = vunpack.i.l.bf16 %v5244_v52 }
 0x67a   : > { %v2929_v39 = vsel %vm470_vm5, %v5245_v35, %v5246_v31 }
 0x67b   : > { %v2949_v40 = vmax.f32 %v2887_v60, %v2929_v39 }
 0x67d   : > { %v5239_v16 = vpop.permute.xlu1 %5238 }
 0x67e   : > { %v5241_v59 = vunpack.i.h.bf16 %v5239_v16  ;;  %v5240_v50 = vunpack.i.l.bf16 %v5239_v16 }
 0x680   : > { %v2936_v23 = vsel %vm470_vm5, %v5241_v59, %v2927_v56  ;;  %v2930_v29 = vsel %vm470_vm5, %v5246_v31, %v5240_v50  ;;  %v2931_v41 = vsel %vm470_vm5, %v5240_v50, %v5235_v53 }
 0x681   : > { %v2956_v20 = vmax.f32 %v2894_v51, %v2936_v23  ;;  %v2950_v43 = vmax.f32 %v2888_v12, %v2930_v29  ;;  %v2951_v0 = vmax.f32 %v2889_v30, %v2931_v41  ;;  %v5249_v37 = vpop.permute.xlu1 %5248 }
 0x682   : > { %v5251_v2 = vunpack.i.h.bf16 %v5249_v37  ;;  %v5250_v1 = vunpack.i.l.bf16 %v5249_v37 }
 0x683   : > { %v5262_v57 = vpack.i.bf16 %v2956_v20, %v2951_v0  ;;  %v5267_v25 = vpack.i.bf16 %v2950_v43, %v2949_v40 }
 0x684   : > { %v2935_v14 = vsel %vm470_vm5, %v5251_v2, %v5241_v59  ;;  %v2934_v33 = vsel %vm470_vm5, %v5250_v1, %v5251_v2 }
 0x685   : > { %v2955_v62 = vmax.f32 %v2893_v63, %v2935_v14  ;;  %v2954_v60 = vmax.f32 %v2892_v18, %v2934_v33  ;;  %5263 = vrot.lane.b32.xlu1 %v5262_v57, %s8415_s12  ;;  %5268 = vrot.lane.b32.xlu0 %v5267_v25, %s8415_s12 }
 0x687   : > { %v5272_v46 = vpack.i.bf16 %v2955_v62, %v2954_v60 }
 0x689   : > { %5273 = vrot.lane.b32.xlu1 %v5272_v46, %s8415_s12 }
 0x6de   : > { %v2992_v30 = vpop.permute.xlu1 %2991 }
 0x6e0   : > { %v5254_v12 = vpop.permute.xlu0 %5253 }
 0x6e1   : > { %v5256_v45 = vunpack.i.h.bf16 %v5254_v12  ;;  %v5255_v34 = vunpack.i.l.bf16 %v5254_v12 }
 0x6e3   : > { %v3002_v51 = vsel %vm718_vm13, %v2992_v30, %v5256_v45  ;;  %v2997_v9 = vsel %vm718_vm13, %v5255_v34, %v5256_v45 }
 0x6e4   : > { %v3022_v8 = vmax.f32 %v2957_v26, %v3002_v51  ;;  %v3017_v63 = vmax.f32 %v2952_v6, %v2997_v9  ;;  %v5259_v61 = vpop.permute.xlu0 %5258 }
 0x6e5   : > { %v5261_v28 = vunpack.i.h.bf16 %v5259_v61  ;;  %v5260_v18 = vunpack.i.l.bf16 %v5259_v61 }
 0x6e6   : > { %v5287_v19 = vpack.i.bf16 %v3022_v8, %v3017_v63 }
 0x6e7   : > { %v2933_v11 = vsel %vm470_vm5, %v5261_v28, %v5250_v1  ;;  %v2928_v17 = vsel %vm470_vm5, %v5260_v18, %v5245_v35  ;;  %vm8444_vm5 = vmmov %vm8419_vm1 }
 0x6e8   : > { %5288 = vrot.lane.b32.xlu0 %v5287_v19, %s8443_s0  ;;  %v2953_v4 = vmax.f32 %v2891_v21, %v2933_v11  ;;  %v2948_v13 = vmax.f32 %v2886_v5, %v2928_v17 }
 0x6ea   : > { %v5297_v42 = vpack.i.bf16 %v2953_v4, %v2948_v13 }
 0x6ec   : > { %5293 = vrot.lane.b32.xlu0 %v5287_v19, %s8416_s25 }
 0x6f0   : > { %5298 = vrot.lane.b32.xlu0 %v5297_v42, %s8415_s12  ;;  %s5640_s12 = smov 116  }
 0x6f7   : > { %v5264_v49 = vpop.permute.xlu1 %5263  ;;  %v5269_v3 = vpop.permute.xlu0 %5268 }
 0x6f8   : > { %v5266_v10 = vunpack.i.h.bf16 %v5264_v49  ;;  %v5265_v32 = vunpack.i.l.bf16 %v5264_v49  ;;  %v5271_v47 = vunpack.i.h.bf16 %v5269_v3  ;;  %v5270_v58 = vunpack.i.l.bf16 %v5269_v3 }
 0x6fa   : > { %v3001_v36 = vsel %vm718_vm13, %v5266_v10, %v2992_v30  ;;  %v2996_v22 = vsel %vm718_vm13, %v5265_v32, %v5255_v34  ;;  %v2994_v48 = vsel %vm718_vm13, %v5270_v58, %v5271_v47  ;;  %v2995_v6 = vsel %vm718_vm13, %v5271_v47, %v5265_v32 }
 0x6fb   : > { %v3021_v53 = vmax.f32 %v2956_v20, %v3001_v36  ;;  %v3016_v55 = vmax.f32 %v2951_v0, %v2996_v22  ;;  %v7693_v27 = vmax.f32 %v2949_v40, %v2994_v48  ;;  %v5274_v26 = vpop.permute.xlu1 %5273  ;;  %v7699_v5 = vmax.f32 %v2950_v43, %v2995_v6 }
 0x6fc   : > { %v5276_v54 = vunpack.i.h.bf16 %v5274_v26  ;;  %v5275_v31 = vunpack.i.l.bf16 %v5274_v26 }
 0x6fd   : > { %v5277_v56 = vpack.i.bf16 %v3016_v55, %v8414_v7  ;;  %v3272_v44 = vpack.c.bf16 %v3021_v53, %v3016_v55  ;;  %v7691_v38 = vpack.i.bf16 %v3021_v53, %v3016_v55  ;;  %v5317_v21 = vpack.i.bf16 %v7693_v27, %v3021_v53 }
 0x6fe   : > { %v5327_v24 = vpack.i.bf16 %v7699_v5, %v8414_v7  ;;  %v3000_v52 = vsel %vm718_vm13, %v5276_v54, %v5266_v10  ;;  %v2999_v16 = vsel %vm718_vm13, %v5275_v31, %v5276_v54 }
 0x6ff   : > { %5278 = vrot.lane.b32.xlu1 %v5277_v56, %s8443_s0  ;;  %4286 = vmatprep.subr.bf16.mxu1 %v3272_v44  ;;  %v7708_v35 = vmax.f32 %v2955_v62, %v3000_v52  ;;  %v7714_v39 = vmax.f32 %v2954_v60, %v2999_v16 }
 0x700   : > { %5308 = vrot.lane.b32.xlu0 %v7691_v38, %s5640_s12 }
 0x701   : > { %v5337_v59 = vpack.i.bf16 %v7708_v35, %v7699_v5  ;;  %v5347_v50 = vpack.i.bf16 %v7714_v39, %v7693_v27 }
 0x703   : > { %5283 = vrot.lane.b32.xlu1 %v5277_v56, %s8416_s25 }
 0x704   : > { %5318 = vrot.lane.b32.xlu0 %v5317_v21, %s8443_s0 }
 0x707   : > { %5303 = vrot.lane.b32.xlu1 %v5287_v19, %s5641_s13 }
 0x708   : > { %5328 = vrot.lane.b32.xlu0 %v5327_v24, %s5640_s12 }
 0x70b   : > { %5313 = vrot.lane.b32.xlu1 %v5287_v19, %s5640_s12  ;;  %v5332_v19 = vpack.i.bf16 %v7699_v5, %v7714_v39 }
 0x70c   : > { %3089 = vrot.lane.b32.xlu0 %v7708_v35, %s8443_s0 }
 0x710   : > { %5338 = vrot.lane.b32.xlu0 %v5337_v59, %s5642_s24 }
 0x714   : > { %5348 = vrot.lane.b32.xlu0 %v5347_v50, %s8416_s25 }
 0x75a   : > { %v5289_v23 = vpop.permute.xlu0 %5288 }
 0x75b   : > { %v7738_v33 = vunpack.i.l.bf16 %v5289_v23  ;;  %v5291_v44 = vunpack.i.h.bf16 %v5289_v23 }
 0x75e   : > { %v5294_v29 = vpop.permute.xlu0 %5293 }
 0x75f   : > { %v7747_v34 = vunpack.i.h.bf16 %v5294_v29  ;;  %v7749_v30 = vunpack.i.l.bf16 %v5294_v29 }
 0x762   : > { %v5299_v41 = vpop.permute.xlu0 %5298 }
 0x763   : > { %v5301_v40 = vunpack.i.h.bf16 %v5299_v41  ;;  %v5300_v20 = vunpack.i.l.bf16 %v5299_v41  ;;  %v5487_v41 = vld [vmem:[%s8287_s5 + $0x4] ss:$16 sps:$4 sm:$0xff]  }
 0x764   : > { %3619 = vmatprep.mubr.bf16.mxu1 %v5487_v41 }
 0x765   : > { %v2998_v43 = vsel %vm718_vm13, %v5301_v40, %v5275_v31  ;;  %v2993_v0 = vsel %vm718_vm13, %v5300_v20, %v5270_v58  ;;  %vm8447_vm13 = vmmov %vm8419_vm1 }
 0x766   : > { %v7724_v37 = vmax.f32 %v2953_v4, %v2998_v43  ;;  %v7726_v2 = vmax.f32 %v2948_v13, %v2993_v0  ;;  %vm8450_vm1 = vmmov %vm8449_vm0 }
 0x768   : > { %v5357_v1 = vpack.i.bf16 %v7726_v2, %v7708_v35  ;;  %v3257_v57 = vpack.c.bf16 %v7724_v37, %v7726_v2  ;;  %v5367_v25 = vpack.i.bf16 %v7714_v39, %v7724_v37  ;;  %v5377_v42 = vpack.i.bf16 %v7724_v37, %v7693_v27 }
 0x769   : > { %v5402_v22 = vpack.i.bf16 %v7724_v37, %v7726_v2  ;;  %v5362_v48 = vpack.i.bf16 %v7693_v27, %v7726_v2  ;;  %v5412_v26 = vpack.i.bf16 %v7726_v2, %v5291_v44  ;;  %v5493_v2 = vld [vmem:[%s8287_s5 + $0x40] ss:$16 sps:$4 sm:$0xff]  }
 0x76a   : > { %5358 = vrot.lane.b32.xlu0 %v5357_v1, %s5640_s12  ;;  %v3315_v1 = vld [vmem:[%s8288_s6 + $0x8] sm:$0xff] }
 0x76e   : > { %5368 = vrot.lane.b32.xlu0 %v5367_v25, %s5642_s24  ;;  %v3317_v25 = vld [vmem:[%s8288_s6 + $0x18] sm:$0xff] }
 0x771   : > { %v7736_v14 = vpop.permute.xlu1 %5278 }
 0x772   : > { %v5280_v62 = vunpack.i.l.bf16 %v7736_v14  ;;  %v7741_v60 = vpop.permute.xlu0 %5308  ;;  %v5281_v31 = vunpack.i.h.bf16 %v7736_v14  ;;  %v3262_v14 = vpack.c.bf16 %v7714_v39, %v7693_v27  ;;  %v3320_v27 = vld [vmem:[%s8288_s6 + $0x30] sm:$0xff] }
 0x773   : > { %v5310_v17 = vunpack.i.l.bf16 %v7741_v60  ;;  %v5311_v47 = vunpack.i.h.bf16 %v7741_v60 }
 0x774   : > { %v3175_v46 = vsel %vm2014_vm2, %v7738_v33, %v5280_v62  ;;  %v3176_v21 = vsel %vm2014_vm2, %v5291_v44, %v5280_v62 }
 0x775   : > { %v5322_v12 = vpack.i.bf16 %v3175_v46, %v3021_v53  ;;  %v7745_v45 = vpop.permute.xlu1 %5283  ;;  %v5387_v54 = vpack.i.bf16 %v3176_v21, %v5280_v62  ;;  %v3321_v62 = vld [vmem:[%s8288_s6 + $0x38] sm:$0xff]  ;;  %v3323_v46 = vld [vmem:[%s8288_s6 + $0x48] sm:$0xff] }
 0x776   : > { %v5285_v51 = vunpack.i.l.bf16 %v7745_v45  ;;  %v7752_v9 = vpop.permute.xlu0 %5318  ;;  %v5286_v16 = vunpack.i.h.bf16 %v7745_v45 }
 0x777   : > { %5323 = vrot.lane.b32.xlu1 %v5322_v12, %s8416_s25  ;;  %v5320_v29 = vunpack.i.l.bf16 %v7752_v9  ;;  %v3325_v12 = vld [vmem:[%s8288_s6 + $0x58] sm:$0xff] }
 0x778   : > { %v7757_v8 = vsel %vm8444_vm5, %v7749_v30, %v5285_v51  ;;  %v7761_v63 = vsel %vm8445_vm8, %v7747_v34, %v5285_v51  ;;  %v7825_v23 = vsel %vm8446_vm12, %v5286_v16, %v7749_v30  ;;  %vm8457_vm5 = vmmov %vm8449_vm0 }
 0x779   : > { %v5372_v61 = vpack.i.bf16 %v5285_v51, %v7757_v8  ;;  %v5304_v28 = vpop.permute.xlu1 %5303  ;;  %v3278_v18 = vpack.c.bf16 %v7761_v63, %v7757_v8  ;;  %v5417_v40 = vpack.i.bf16 %v7825_v23, %v7724_v37  ;;  %v3158_v20 = vsel %vm2014_vm2, %v5320_v29, %v5291_v44  ;;  %v3327_v51 = vld [vmem:[%s8288_s6 + $0x68] sm:$0xff]  ;;  %vm8458_vm8 = vmmov %vm8449_vm0  ;;  %v5491_v37 = vld [vmem:[%s8287_s5 + $0x44] ss:$16 sps:$4 sm:$0xff]  }
 0x77a   : > { %v7768_v11 = vpop.permute.xlu0 %5328  ;;  %v5305_v24 = vunpack.i.l.bf16 %v5304_v28  ;;  %v5422_v43 = vpack.i.bf16 %v3158_v20, %v7738_v33  ;;  %v5511_v44 = vld [vmem:[%s8287_s5 + $0xc] ss:$16 sps:$4 sm:$0xff]   ;;  %vm8459_vm12 = vmmov %vm8449_vm0 }
 0x77b   : > { %v5331_v4 = vunpack.i.h.bf16 %v7768_v11  ;;  %5333 = vrot.lane.b32.xlu1 %v5332_v19, %s8443_s0  ;;  %5373 = vrot.lane.b32.xlu0 %v5372_v61, %s8416_s25  ;;  %v7782_v3 = vunpack.i.l.bf16 %v7768_v11  ;;  %v3329_v61 = vld [vmem:[%s8288_s6 + $0x78] sm:$0xff]  ;;  %v5485_v11 = vld [vmem:[%s8287_s5] ss:$16 sps:$4 sm:$0xff]  }
 0x77c   : > { %v5392_v52 = vpack.i.bf16 %v5305_v24, %v7761_v63  ;;  %4259 = vmatprep.mubr.msk.bf16.mxu0 %vm3562_vm14, %v5511_v44 }
 0x77d   : > { %v5314_v13 = vpop.permute.xlu1 %5313  ;;  %v7779_v49 = vsel %vm3059_vm10, %v5331_v4, %v5310_v17 }
 0x77e   : > { %v5316_v10 = vunpack.i.h.bf16 %v5314_v13  ;;  %v5315_v32 = vunpack.i.l.bf16 %v5314_v13 }
 0x77f   : > { %5343 = vrot.lane.b32.xlu1 %v7691_v38, %s5642_s24  ;;  %5378 = vrot.lane.b32.xlu0 %v5377_v42, %s5640_s12  ;;  %v5306_v38 = vunpack.i.h.bf16 %v5304_v28  ;;  %v3090_v28 = vpop.permute.xlu0 %3089 }
 0x780   : > { %v7790_v58 = vsel %vm3059_vm10, %v5315_v32, %v7782_v3  ;;  %v3164_v53 = vsel %vm3059_vm10, %v5311_v47, %v5316_v10  ;;  %v3163_v56 = vsel %vm3059_vm10, %v5310_v17, %v5315_v32  ;;  %v3180_v0 = vsel %vm3059_vm10, %v5316_v10, %v7782_v3 }
 0x781   : > { %v5432_v36 = vpack.i.bf16 %v7782_v3, %v7790_v58  ;;  %v5407_v55 = vpack.i.bf16 %v3164_v53, %v5315_v32  ;;  %v5382_v6 = vpack.i.bf16 %v3163_v56, %v5306_v38 }
 0x783   : > { %5353 = vrot.lane.b32.xlu1 %v5337_v59, %s8416_s25  ;;  %5403 = vrot.lane.b32.xlu0 %v5402_v22, %s8443_s0  ;;  %v3157_v59 = vsel %vm2014_vm2, %v5281_v31, %v7738_v33  ;;  %v3319_v33 = vld [vmem:[%s8288_s6 + $0x28] sm:$0xff]  ;;  %v7869_v19 = vpop.permute.xlu0 %5338 }
 0x784   : > { %v5397_v50 = vpack.i.bf16 %v3157_v59, %v5316_v10  ;;  %v5341_v21 = vunpack.i.h.bf16 %v7869_v19 }
 0x787   : > { %5363 = vrot.lane.b32.xlu1 %v5362_v48, %s5642_s24  ;;  %5408 = vrot.lane.b32.xlu0 %v5407_v55, %s8416_s25  ;;  %v7871_v17 = vpop.permute.xlu0 %5348  ;;  %v5321_v55 = vunpack.i.h.bf16 %v7752_v9 }
 0x788   : > { %v5350_v3 = vunpack.i.l.bf16 %v7871_v17 }
 0x78b   : > { %5383 = vrot.lane.b32.xlu1 %v5382_v6, %s8416_s25  ;;  %5413 = vrot.lane.b32.xlu0 %v5412_v26, %s8416_s25 }
 0x78f   : > { %5388 = vrot.lane.b32.xlu1 %v5387_v54, %s8416_s25  ;;  %v5340_v54 = vunpack.i.l.bf16 %v7869_v19 }
 0x793   : > { %5393 = vrot.lane.b32.xlu1 %v5392_v52, %s8416_s25 }
 0x797   : > { %3057 = vrot.lane.b32.xlu1 %v7714_v39, %s5640_s12  ;;  %s8246_s12 = scalar_lea.hbm %s8293_s11, %s4283_s14 }
 0x79b   : > { %5398 = vrot.lane.b32.xlu1 %v5397_v50, %s8416_s25 }
 0x79f   : > { %5418 = vrot.lane.b32.xlu1 %v5417_v40, %s8416_s25  ;;  %v3314_v40 = vld [vmem:[%s8288_s6] sm:$0xff] }
 0x7a3   : > { %5423 = vrot.lane.b32.xlu1 %v5422_v43, %s8416_s25 }
 0x7a7   : > { %3187 = vrot.lane.b32.xlu1 %v7747_v34, %s8416_s25 }
 0x7ab   : > { %3225 = vrot.lane.b32.xlu1 %v3180_v0, %s8416_s25 }
 0x7af   : > { %3337 = vperm.xlu1 %4925, %v3315_v1   ;;  %v5351_v1 = vunpack.i.h.bf16 %v7871_v17 }
 0x7b3   : > { %3347 = vperm.xlu1 %4925, %v3317_v25  }
 0x7b7   : > { %3357 = vperm.xlu1 %4925, %v3319_v33  }
 0x7bb   : > { %3367 = vperm.xlu1 %4925, %v3321_v62  }
 0x7bf   : > { %3377 = vperm.xlu1 %4925, %v3323_v46   ;;  %v3316_v46 = vld [vmem:[%s8288_s6 + $0x10] sm:$0xff] }
 0x7c3   : > { %3387 = vperm.xlu1 %4925, %v3325_v12  }
 0x7c7   : > { %3397 = vperm.xlu1 %4925, %v3327_v51  }
 0x7cb   : > { %3407 = vperm.xlu1 %4925, %v3329_v61  }
 0x7dc   : > { %v7876_v10 = vpop.permute.xlu0 %5358 }
 0x7dd   : > { %v5360_v59 = vunpack.i.l.bf16 %v7876_v10 }
 0x7df   : > { %v3134_v25 = vsel %vm3059_vm10, %v5360_v59, %v5311_v47 }
 0x7e0   : > { %v7901_v38 = vpop.permute.xlu0 %5368  ;;  %v3270_v47 = vpack.c.bf16 %v3134_v25, %v7779_v49  ;;  %v3126_v49 = vsel %vm2014_vm2, %v3090_v28, %v5320_v29 }
 0x7e9   : > { %v7873_v13 = vpop.permute.xlu1 %5323 }
 0x7ea   : > { %v5325_v42 = vunpack.i.l.bf16 %v7873_v13  ;;  %v5326_v45 = vunpack.i.h.bf16 %v7873_v13 }
 0x7ec   : > { %v7882_v32 = vsel %vm8447_vm13, %v5325_v42, %v7747_v34  ;;  %vm8460_vm13 = vmmov %vm8449_vm0 }
 0x7ed   : > { %v5427_v22 = vpack.i.bf16 %v7882_v32, %v7749_v30  ;;  %v7886_v53 = vpop.permute.xlu1 %5333  ;;  %v7920_v20 = vpop.permute.xlu0 %5373 }
 0x7ee   : > { %v5336_v48 = vunpack.i.h.bf16 %v7886_v53  ;;  %v5335_v56 = vunpack.i.l.bf16 %v7886_v53 }
 0x7ef   : > { %5428 = vrot.lane.b32.xlu0 %v5427_v22, %s8416_s25 }
 0x7f0   : > { %v3091_v34 = vsel %vm2014_vm2, %v5321_v55, %v5336_v48  ;;  %v3092_v30 = vsel %vm2014_vm2, %v5335_v56, %v3090_v28  ;;  %v3125_v44 = vsel %vm2014_vm2, %v5336_v48, %v5281_v31 }
 0x7f1   : > { %v3264_v6 = vpack.c.bf16 %v3092_v30, %v3091_v34  ;;  %v5344_v26 = vpop.permute.xlu1 %5343  ;;  %v7943_v22 = vpop.permute.xlu0 %5378  ;;  %v5371_v34 = vunpack.i.h.bf16 %v7901_v38  ;;  %v5370_v30 = vunpack.i.l.bf16 %v7901_v38  ;;  %v3269_v48 = vpack.c.bf16 %v3126_v49, %v3125_v44 }
 0x7f2   : > { %v5346_v24 = vunpack.i.h.bf16 %v5344_v26  ;;  %v5345_v52 = vunpack.i.l.bf16 %v5344_v26 }
 0x7f3   : > { %4287 = vmatpush3.bf16.msra.mxu1 %v3264_v6  ;;  %5433 = vrot.lane.b32.xlu0 %v5432_v36, %s8416_s25  ;;  %v3318_v6 = vld [vmem:[%s8288_s6 + $0x20] sm:$0xff]  ;;  %v3074_v28 = vsel %vm3072_vm4, %v5370_v30, %v5371_v34  ;;  %s375_s25 = sand.u32 1, %s5606_s18  }
 0x7f4   : > { %v3141_v50 = vsel %vm3072_vm4, %v5340_v54, %v5345_v52  ;;  %v3142_v41 = vsel %vm3072_vm4, %v5341_v21, %v5346_v24  ;;  %s376_s30 = scalar_lea.vmem [#allocation2], %s375_s25  ;;  %s4062_s13 = scalar_lea.sflag [#allocation3], %s375_s25 }
 0x7f5   : > { %v5354_v43 = vpop.permute.xlu1 %5353  ;;  %v3271_v0 = vpack.c.bf16 %v3142_v41, %v3141_v50  ;;  %v5404_v39 = vpop.permute.xlu0 %5403  ;;  %s4074_s29 = sshll.u32 %s376_s30, 4  ;;  %s4075_s29 = int_to_ptr.vmem [resolvable:$true] %s4074_s29 }
 0x7f6   : > { %v5356_v58 = vunpack.i.h.bf16 %v5354_v43  ;;  %v5355_v36 = vunpack.i.l.bf16 %v5354_v43  ;;  %v5376_v43 = vunpack.i.h.bf16 %v7920_v20  ;;  %v5405_v44 = vunpack.i.l.bf16 %v5404_v39  ;;  %s5554_s24 = scalar_lea.vmem %s4075_s29, 16  ;;  %p5561_p0 = scmp.lt.s32.totalorder %s4075_s29, %s5559_s21 }
 0x7f7   : > { %4288 = vmatprep.subr.bf16.mxu1 %v3271_v0  ;;  %3332 = vperm.xlu0 %5231, %v3314_v40   ;;  %p5555_p11 = scmp.ne.s32.totalorder %s4075_s29, %s5554_s24  ;;  %p5562_p1 = scmp.lt.s32.totalorder %s5560_s22, %s5554_s24 }
 0x7f8   : > { %v3083_v33 = vsel %vm8448_vm15, %v5350_v3, %v5355_v36  ;;  %v3084_v62 = vsel %vm8449_vm0, %v5351_v1, %v5356_v58  ;;  %v3117_v24 = vsel %vm8450_vm1, %v5355_v36, %v5286_v16  ;;  %v3118_v29 = vsel %vm8451_vm3, %v5356_v58, %v5325_v42  ;;  %v3322_v36 = vld [vmem:[%s8288_s6 + $0x40] sm:$0xff]  ;;  %vm8463_vm15 = vmmov %vm8449_vm0 }
 0x7f9   : > { %v3263_v12 = vpack.c.bf16 %v3084_v62, %v3083_v33  ;;  %v7938_v51 = vpop.permute.xlu1 %5363  ;;  %v3268_v40 = vpack.c.bf16 %v3118_v29, %v3117_v24  ;;  %v5375_v42 = vunpack.i.l.bf16 %v7920_v20  ;;  %v5380_v33 = vunpack.i.l.bf16 %v7943_v22  ;;  %vm8464_vm1 = vmmov %vm8449_vm0  ;;  %p5556_p12 = pnand %p5555_p11, %p5743_p5  ;;  %p5563_p2 = por %p5562_p1, %p5561_p0 }
 0x7fa   : > { %v5366_v60 = vunpack.i.h.bf16 %v7938_v51  ;;  %v5365_v61 = vunpack.i.l.bf16 %v7938_v51  ;;  %v3047_v29 = vsel %vm2014_vm2, %v5405_v44, %v5321_v55  ;;  %v5506_v44 = vld [vmem:[%s8287_s5 + $0xe0] ss:$16 sps:$4 sm:$0xff]  }
 0x7fb   : > { %4289 = vmatpush3.bf16.msra.mxu1 %v3263_v12  ;;  %3342 = vperm.xlu0 %5231, %v3316_v46   ;;  %v5361_v46 = vunpack.i.h.bf16 %v7876_v10  ;;  %v3233_v20 = vsel %vm8454_vm11, %v5375_v42, %v5376_v43  ;;  %v5409_v12 = vpop.permute.xlu0 %5408  ;;  %v3099_v10 = vsel %vm3059_vm10, %v5380_v33, %v5331_v4  ;;  %v5488_v4 = vld [vmem:[%s8287_s5 + $0x24] ss:$16 sps:$4 sm:$0xff]   ;;  %p5557_p13 = pneg %p5556_p12 }
 0x7fc   : > { %4290 = vmatprep.subr.bf16.mxu1 %v3270_v47  ;;  %v3073_v31 = vsel %vm3072_vm4, %v5365_v61, %v5366_v60  ;;  %v5381_v61 = vunpack.i.h.bf16 %v7943_v22  ;;  %v5406_v47 = vunpack.i.h.bf16 %v5404_v39  ;;  %v3107_v9 = vsel %vm3072_vm4, %v5366_v60, %v5340_v54 }
 0x7fd   : > { %v7956_v26 = vpop.permute.xlu1 %5383  ;;  %v3261_v52 = vpack.c.bf16 %v3074_v28, %v3073_v31  ;;  %v3060_v31 = vsel %vm3059_vm10, %v5361_v46, %v5380_v33  ;;  %v3267_v28 = vpack.c.bf16 %v7708_v35, %v7699_v5  ;;  %v3108_v35 = vsel %vm3072_vm4, %v5371_v34, %v5341_v21  ;;  %vm8461_vm4 = vmmov %vm8449_vm0  ;;  %v5499_v33 = vld [vmem:[%s8287_s5 + $0x84] ss:$16 sps:$4 sm:$0xff]   ;;  %p5564_p3 = pnand %p5563_p2, %p5557_p13 }
 0x7fe   : > { %v3048_v22 = vsel %vm2014_vm2, %v5406_v47, %v5335_v56  ;;  %v5385_v5 = vunpack.i.l.bf16 %v7956_v26  ;;  %v5411_v56 = vunpack.i.h.bf16 %v5409_v12  ;;  %v5386_v51 = vunpack.i.h.bf16 %v7956_v26  ;;  %vm8456_vm2 = vmmov %vm8449_vm0  ;;  %v5502_v46 = vld [vmem:[%s8287_s5 + $0xa4] ss:$16 sps:$4 sm:$0xff]  }
 0x7ff   : > { %3352 = vperm.xlu0 %5231, %v3318_v6   ;;  %4291 = vmatpush3.bf16.msra.mxu1 %v3262_v14  ;;  %v3324_v6 = vld [vmem:[%s8288_s6 + $0x50] sm:$0xff]  ;;  %v5414_v39 = vpop.permute.xlu0 %5413  ;;  %v3259_v55 = vpack.c.bf16 %v3048_v22, %v3047_v29  ;;  %v3266_v60 = vpack.c.bf16 %v3108_v35, %v3107_v9  ;;  %v5410_v63 = vunpack.i.l.bf16 %v5409_v12  ;;  %v5518_v35 = vld [vmem:[%s8287_s5 + $0x6c] ss:$16 sps:$4 sm:$0xff]  }
 0x800   : > { %4292 = vmatprep.subr.bf16.mxu1 %v3269_v48  ;;  %v5416_v54 = vunpack.i.h.bf16 %v5414_v39  ;;  %v5505_v12 = vld [vmem:[%s8287_s5 + $0xc4] ss:$16 sps:$4 sm:$0xff]  }
 0x801   : > { %v5389_v50 = vpop.permute.xlu1 %5388  ;;  %v3231_v21 = vsel %vm8457_vm5, %v5386_v51, %v5410_v63  ;;  %v5508_v47 = vld [vmem:[%s8287_s5 + $0xe4] ss:$16 sps:$4 sm:$0xff]   ;;  %v5521_v51 = vld [vmem:[%s8287_s5 + $0x8c] ss:$16 sps:$4 sm:$0xff]  }
 0x802   : > { %v5391_v41 = vunpack.i.h.bf16 %v5389_v50  ;;  %v5390_v16 = vunpack.i.l.bf16 %v5389_v50  ;;  %v3035_v34 = vsel %vm8458_vm8, %v5416_v54, %v5350_v3  ;;  %v5523_v54 = vld [vmem:[%s8287_s5 + $0x88] ss:$16 sps:$4 sm:$0xff]   ;;  %v5530_v63 = vld [vmem:[%s8287_s5 + $0xec] ss:$16 sps:$4 sm:$0xff]  }
 0x803   : > { %3362 = vperm.xlu0 %5231, %v3320_v27   ;;  %4293 = vmatpush3.bf16.msra.mxu1 %v3261_v52  ;;  %v3326_v27 = vld [vmem:[%s8288_s6 + $0x60] sm:$0xff] }
 0x804   : > { %v3235_v0 = vsel %vm8452_vm6, %v5326_v45, %v5390_v16  ;;  %v3236_v58 = vsel %vm8453_vm9, %v5391_v41, %v5390_v16  ;;  %4294 = vmatprep.subr.bf16.mxu1 %v3268_v40  ;;  %v3328_v45 = vld [vmem:[%s8288_s6 + $0x70] sm:$0xff]  ;;  %v5415_v16 = vunpack.i.l.bf16 %v5414_v39  ;;  %v3273_v39 = vpack.c.bf16 %v7882_v32, %v7825_v23  ;;  %v5514_v23 = vld [vmem:[%s8287_s5 + $0x28] ss:$16 sps:$4 sm:$0xff]  }
 0x805   : > { %v3280_v25 = vpack.c.bf16 %v3236_v58, %v3235_v0  ;;  %v5394_v13 = vpop.permute.xlu1 %5393  ;;  %v5517_v32 = vld [vmem:[%s8287_s5 + $0x48] ss:$16 sps:$4 sm:$0xff]   ;;  %vm4046_vm6 = vcmask 1040384  }
 0x806   : > { %v5395_v62 = vunpack.i.l.bf16 %v5394_v13  ;;  %v5396_v52 = vunpack.i.h.bf16 %v5394_v13  ;;  %v5496_v13 = vld [vmem:[%s8287_s5 + $0x60] ss:$16 sps:$4 sm:$0xff]  }
 0x807   : > { %3685 = vmatpush1.bf16.msra.mxu0 %v3280_v25  ;;  %3372 = vperm.xlu0 %5231, %v3322_v36   ;;  %v5490_v25 = vld [vmem:[%s8287_s5 + $0x20] ss:$16 sps:$4 sm:$0xff]  }
 0x808   : > { %v3234_v30 = vsel %vm8455_vm7, %v5395_v62, %v5376_v43  ;;  %3686 = vmatprep.subr.bf16.mxu0 %v5634_v15  ;;  %v3277_v41 = vpack.c.bf16 %v5385_v5, %v5396_v52  ;;  %v5497_v62 = vld [vmem:[%s8287_s5 + $0x80] ss:$16 sps:$4 sm:$0xff]   ;;  %v5512_v5 = vld [vmem:[%s8287_s5 + $0x2c] ss:$16 sps:$4 sm:$0xff]  }
 0x809   : > { %v3279_v49 = vpack.c.bf16 %v3234_v30, %v3233_v20  ;;  %v3058_v14 = vpop.permute.xlu1 %3057  ;;  %v5500_v20 = vld [vmem:[%s8287_s5 + $0xa0] ss:$16 sps:$4 sm:$0xff]  }
 0x80a   : > { %v3061_v48 = vsel %vm3059_vm10, %v5381_v61, %v3058_v14  ;;  %v3100_v38 = vsel %vm3059_vm10, %v3058_v14, %v5360_v59  ;;  %v5503_v61 = vld [vmem:[%s8287_s5 + $0xc0] ss:$16 sps:$4 sm:$0xff]   ;;  %vm8462_vm10 = vmmov %vm8449_vm0 }
 0x80b   : > { %v3260_v24 = vpack.c.bf16 %v3061_v48, %v3060_v31  ;;  %3382 = vperm.xlu0 %5231, %v3324_v6   ;;  %3687 = vmatpush1.bf16.msra.mxu0 %v3279_v49  ;;  %v3265_v42 = vpack.c.bf16 %v3100_v38, %v3099_v10  ;;  %v5535_v10 = vld [vmem:[%s8289_s7 + $0x28] sm:$0xff]  }
 0x80c   : > { %3688 = vmatprep.subr.bf16.mxu0 %v5634_v15 }
 0x80d   : > { %v5399_v50 = vpop.permute.xlu1 %5398  ;;  %4295 = vmatpush3.bf16.msra.mxu1 %v3260_v24 }
 0x80e   : > { %v5400_v53 = vunpack.i.l.bf16 %v5399_v50  ;;  %4296 = vmatprep.subr.bf16.mxu1 %v3267_v28  ;;  %v5401_v0 = vunpack.i.h.bf16 %v5399_v50 }
 0x80f   : > { %3392 = vperm.xlu0 %5231, %v3326_v27   ;;  %3689 = vmatpush1.bf16.msra.mxu0 %v3278_v18 }
 0x810   : > { %3690 = vmatprep.subr.bf16.mxu0 %v5634_v15  ;;  %v3232_v18 = vsel %vm8456_vm2, %v5411_v56, %v5400_v53  ;;  %v5520_v56 = vld [vmem:[%s8287_s5 + $0x68] ss:$16 sps:$4 sm:$0xff]  }
 0x811   : > { %v8025_v8 = vpop.permute.xlu1 %5418  ;;  %4297 = vmatpush3.bf16.msra.mxu1 %v3259_v55  ;;  %v3276_v59 = vpack.c.bf16 %v3232_v18, %v3231_v21  ;;  %v5509_v55 = vld [vmem:[%s8287_s5 + $0x8] ss:$16 sps:$4 sm:$0xff]  }
 0x812   : > { %v5420_v19 = vunpack.i.l.bf16 %v8025_v8  ;;  %4298 = vmatprep.subr.bf16.mxu1 %v3266_v60  ;;  %v5421_v6 = vunpack.i.h.bf16 %v8025_v8  ;;  %v5524_v60 = vld [vmem:[%s8287_s5 + $0xac] ss:$16 sps:$4 sm:$0xff]   ;;  %v5529_v8 = vld [vmem:[%s8287_s5 + $0xc8] ss:$16 sps:$4 sm:$0xff]  }
 0x813   : > { %3402 = vperm.xlu0 %5231, %v3328_v45   ;;  %3691 = vmatpush1.bf16.msra.mxu0 %v3277_v41  ;;  %v5526_v45 = vld [vmem:[%s8287_s5 + $0xa8] ss:$16 sps:$4 sm:$0xff]   ;;  %v5527_v41 = vld [vmem:[%s8287_s5 + $0xcc] ss:$16 sps:$4 sm:$0xff]  }
 0x814   : > { %v3036_v26 = vsel %vm8459_vm12, %v5420_v19, %v5351_v1  ;;  %3692 = vmatprep.subr.bf16.mxu0 %v5634_v15  ;;  %v5532_v18 = vld [vmem:[%s8287_s5 + $0xe8] ss:$16 sps:$4 sm:$0xff]  }
 0x815   : > { %v3258_v40 = vpack.c.bf16 %v3036_v26, %v3035_v34  ;;  %v5424_v43 = vpop.permute.xlu1 %5423  ;;  %v5533_v34 = vld [vmem:[%s8289_s7 + $0x38] sm:$0xff]   ;;  %v5534_v26 = vld [vmem:[%s8289_s7 + $0x30] sm:$0xff]  }
 0x816   : > { %v5426_v58 = vunpack.i.h.bf16 %v5424_v43  ;;  %v5425_v36 = vunpack.i.l.bf16 %v5424_v43 }
 0x817   : > { %4299 = vmatpush3.bf16.msra.mxu1 %v3258_v40  ;;  %3693 = vmatpush1.bf16.msra.mxu0 %v3276_v59  ;;  %v5536_v40 = vld [vmem:[%s8289_s7 + $0x20] sm:$0xff]  }
 0x818   : > { %v3229_v17 = vsel %vm8460_vm13, %v5401_v0, %v5425_v36  ;;  %v3230_v1 = vsel %vm8461_vm4, %v5426_v58, %v5415_v16  ;;  %4300 = vmatprep.subr.bf16.mxu1 %v3265_v42  ;;  %3694 = vmatprep.subr.bf16.mxu0 %v5634_v15  ;;  %v5537_v42 = vld [vmem:[%s8289_s7 + $0x18] sm:$0xff]   ;;  %v5538_v58 = vld [vmem:[%s8289_s7 + $0x10] sm:$0xff]  }
 0x819   : > { %v3275_v3 = vpack.c.bf16 %v3230_v1, %v3229_v17  ;;  %v3188_v31 = vpop.permute.xlu1 %3187  ;;  %v5539_v17 = vld [vmem:[%s8289_s7 + $0x8] sm:$0xff]  }
 0x81b   : > { %4301 = vmatpush3.bf16.msra.mxu1 %v3257_v57  ;;  %3695 = vmatpush1.bf16.msra.mxu0 %v3275_v3  ;;  %v5494_v57 = vld [vmem:[%s8287_s5 + $0x64] ss:$16 sps:$4 sm:$0xff]  }
 0x81c   : > { %3696 = vmatprep.subr.bf16.mxu0 %v5634_v15  ;;  %4368 = vmatprep.subr.bf16.mxu1 %v8414_v7  ;;  %v5540_v3 = vld [vmem:[%s8289_s7] sm:$0xff]  }
 0x81d   : > { %v3226_v52 = vpop.permute.xlu1 %3225 }
 0x81e   : > { %3620 = vmatmul.mubr.bf16.vlgmr.msra.gmra.mxu1 %v5485_v11 }
 0x81f   : > { %3627 = vmatprep.mubr.bf16.mxu1 %v5488_v4  ;;  %4369 = vmatpush3.bf16.msra.mxu1 %v5533_v34 }
 0x820   : > { %4370 = vmatprep.subr.bf16.mxu1 %v8414_v7 }
 0x823   : > { %4371 = vmatpush3.bf16.msra.mxu1 %v5534_v26 }
 0x824   : > { %4372 = vmatprep.subr.bf16.mxu1 %v8414_v7 }
 0x826   : > { %3628 = vmatmul.mubr.bf16.gmra.mxu1 %v5490_v25 }
 0x827   : > { %3635 = vmatprep.mubr.bf16.mxu1 %v5491_v37  ;;  %4373 = vmatpush3.bf16.msra.mxu1 %v5535_v10 }
 0x828   : > { %4374 = vmatprep.subr.bf16.mxu1 %v8414_v7 }
 0x82b   : > { %4375 = vmatpush3.bf16.msra.mxu1 %v5536_v40 }
 0x82c   : > { %4376 = vmatprep.subr.bf16.mxu1 %v8414_v7 }
 0x82e   : > { %3636 = vmatmul.mubr.bf16.gmra.mxu1 %v5493_v2 }
 0x82f   : > { %3643 = vmatprep.mubr.bf16.mxu1 %v5494_v57  ;;  %4377 = vmatpush3.bf16.msra.mxu1 %v5537_v42 }
 0x830   : > { %4378 = vmatprep.subr.bf16.mxu1 %v8414_v7 }
 0x833   : > { %4379 = vmatpush3.bf16.msra.mxu1 %v5538_v58 }
 0x834   : > { %4380 = vmatprep.subr.bf16.mxu1 %v8414_v7 }
 0x836   : > { %3644 = vmatmul.mubr.bf16.gmra.mxu1 %v5496_v13 }
 0x837   : > { %3651 = vmatprep.mubr.bf16.mxu1 %v5499_v33  ;;  %4381 = vmatpush3.bf16.msra.mxu1 %v5539_v17 }
 0x838   : > { %4382 = vmatprep.subr.bf16.mxu1 %v8414_v7 }
 0x83b   : > { %4383 = vmatpush3.bf16.msra.mxu1 %v5540_v3 }
 0x83c   : > { %4388 = vmatprep.subr.bf16.mxu1 %v8414_v7 }
 0x83e   : > { %3652 = vmatmul.mubr.bf16.gmra.mxu1 %v5497_v62 }
 0x83f   : > { %3659 = vmatprep.mubr.bf16.mxu1 %v5502_v46 }
 0x846   : > { %3660 = vmatmul.mubr.bf16.gmra.mxu1 %v5500_v20 }
 0x847   : > { %3667 = vmatprep.mubr.bf16.mxu1 %v5505_v12 }
 0x84e   : > { %3668 = vmatmul.mubr.bf16.gmra.mxu1 %v5503_v61 }
 0x84f   : > { %3675 = vmatprep.mubr.bf16.mxu1 %v5508_v47 }
 0x856   : > { %3676 = vmatmul.mubr.bf16.gmra.mxu1 %v5506_v44 }
 0x861   : > { %v5429_v30 = vpop.permute.xlu0 %5428 }
 0x862   : > { %v5431_v49 = vunpack.i.h.bf16 %v5429_v30  ;;  %v5430_v14 = vunpack.i.l.bf16 %v5429_v30 }
 0x864   : > { %v3228_v48 = vsel %vm8462_vm10, %v5431_v49, %v3188_v31  ;;  %v3227_v24 = vsel %vm8463_vm15, %v5421_v6, %v5430_v14  ;;  %v3338_v6 = vpop.permute.xlu1 %3337 }
 0x865   : > { %v3274_v22 = vpack.c.bf16 %v3228_v48, %v3227_v24  ;;  %v5434_v29 = vpop.permute.xlu0 %5433 }
 0x866   : > { %v5436_v28 = vunpack.i.h.bf16 %v5434_v29  ;;  %v5435_v27 = vunpack.i.l.bf16 %v5434_v29 }
 0x867   : > { %3697 = vmatpush1.bf16.msra.mxu0 %v3274_v22 }
 0x868   : > { %3698 = vmatprep.subr.bf16.mxu0 %v5634_v15  ;;  %v3238_v50 = vsel %vm8449_vm0, %v3226_v52, %v5436_v28  ;;  %v3237_v9 = vsel %vm8464_vm1, %v5435_v27, %v5436_v28 }
 0x869   : > { %v3281_v53 = vpack.c.bf16 %v3238_v50, %v3237_v9 }
 0x86b   : > { %3699 = vmatpush1.bf16.msra.mxu0 %v3273_v39 }
 0x86c   : > { %3714 = vmatprep.subr.bf16.mxu0 %v5634_v15  ;;  %v5515_v15 = vld [vmem:[%s8287_s5 + $0x4c] ss:$16 sps:$4 sm:$0xff]  }
 0x86f   : > { %3715 = vmatpush2.bf16.msra.mxu0 %v3281_v53 }
 0x872   : > { %3717 = vmatmul.mubr.bf16.vlgmr.msra.gmra.mxu0 %v5509_v55  ;;  %v3333_v20 = vpop.permute.xlu0 %3332 }
 0x873   : > { %4260 = vmatprep.mubr.msk.bf16.mxu0 %vm3562_vm14, %v5512_v5  ;;  %v3348_v5 = vpop.permute.xlu1 %3347 }
 0x876   : > { %v3343_v28 = vpop.permute.xlu0 %3342 }
 0x87a   : > { %3725 = vmatmul.mubr.bf16.gmra.mxu0 %v5514_v23 }
 0x87b   : > { %4261 = vmatprep.mubr.msk.bf16.mxu0 %vm3562_vm14, %v5515_v15 }
 0x882   : > { %3733 = vmatmul.mubr.bf16.gmra.mxu0 %v5517_v32 }
 0x883   : > { %4262 = vmatprep.mubr.msk.bf16.mxu0 %vm3562_vm14, %v5518_v35 }
 0x88a   : > { %3741 = vmatmul.mubr.bf16.gmra.mxu0 %v5520_v56 }
 0x88b   : > { %4263 = vmatprep.mubr.msk.bf16.mxu0 %vm3562_vm14, %v5521_v51 }
 0x892   : > { %3749 = vmatmul.mubr.bf16.gmra.mxu0 %v5523_v54 }
 0x893   : > { %4264 = vmatprep.mubr.msk.bf16.mxu0 %vm3562_vm14, %v5524_v60  ;;  %v3353_v60 = vpop.permute.xlu0 %3352 }
 0x897   : > { %v3363_v42 = vpop.permute.xlu0 %3362 }
 0x89a   : > { %3757 = vmatmul.mubr.bf16.gmra.mxu0 %v5526_v45 }
 0x89b   : > { %4265 = vmatprep.mubr.msk.bf16.mxu0 %vm3562_vm14, %v5527_v41 }
 0x8a2   : > { %3765 = vmatmul.mubr.bf16.gmra.mxu0 %v5529_v8 }
 0x8a3   : > { %4266 = vmatprep.mubr.msk.bf16.mxu0 %vm3562_vm14, %v5530_v63  ;;  %vm5643_vm14 = vmmov 0  }
 0x8a4   : > { %4384 = vmatprep.mubr.msk.bf16.mxu1 %vm5643_vm14, %v8414_v7 }
 0x8aa   : > { %3773 = vmatmul.mubr.bf16.gmra.mxu0 %v5532_v18 }
 0x8de   : > { %v4302_v19 = vpop.f32.mrf.mxu1 }
 0x8e0   : > { %v4303_v38 = vpop.f32.mrf.mxu1 }
 0x8e1   : > { %v4304_v62 = vadd.f32 %v4303_v38, %v4302_v19 }
 0x8e2   : > { %v4305_v21 = vpop.f32.mrf.mxu1 }
 0x8e3   : > { %v3622_v61 = vadd.f32 %v4304_v62, %v3333_v20 }
 0x8e4   : > { %v4306_v16 = vpop.f32.mrf.mxu1 }
 0x8e5   : > { %v4307_v12 = vadd.f32 %v4306_v16, %v4305_v21  ;;  %v3358_v21 = vpop.permute.xlu1 %3357 }
 0x8e6   : > { %v4308_v59 = vpop.f32.mrf.mxu1 }
 0x8e7   : > { %v3625_v48 = vadd.f32 %v4307_v12, %v3338_v6 }
 0x8e8   : > { %v4309_v43 = vpop.f32.mrf.mxu1 }
 0x8e9   : > { %v4310_v14 = vadd.f32 %v4309_v43, %v4308_v59 }
 0x8ea   : > { %v4311_v0 = vpop.f32.mrf.mxu1 }
 0x8eb   : > { %v3630_v50 = vadd.f32 %v4310_v14, %v3343_v28 }
 0x8ec   : > { %v4312_v36 = vpop.f32.mrf.mxu1 }
 0x8ed   : > { %v4313_v39 = vadd.f32 %v4312_v36, %v4311_v0 }
 0x8ee   : > { %v4314_v1 = vpop.f32.mrf.mxu1 }
 0x8ef   : > { %v3633_v35 = vadd.f32 %v4313_v39, %v3348_v5 }
 0x8f0   : > { %v4315_v11 = vpop.f32.mrf.mxu1 }
 0x8f1   : > { %v4316_v15 = vadd.f32 %v4315_v11, %v4314_v1 }
 0x8f2   : > { %v4317_v4 = vpop.f32.mrf.mxu1 }
 0x8f3   : > { %v3638_v63 = vadd.f32 %v4316_v15, %v3353_v60 }
 0x8f4   : > { %v4318_v25 = vpop.f32.mrf.mxu1 }
 0x8f5   : > { %v4319_v41 = vadd.f32 %v4318_v25, %v4317_v4  ;;  %v3368_v4 = vpop.permute.xlu1 %3367 }
 0x8f6   : > { %v4320_v37 = vpop.f32.mrf.mxu1 }
 0x8f7   : > { %v3641_v10 = vadd.f32 %v4319_v41, %v3358_v21 }
 0x8f8   : > { %v4321_v2 = vpop.f32.mrf.mxu1 }
 0x8f9   : > { %v4322_v26 = vadd.f32 %v4321_v2, %v4320_v37 }
 0x8fa   : > { %v4323_v57 = vpop.f32.mrf.mxu1 }
 0x8fb   : > { %v3646_v17 = vadd.f32 %v4322_v26, %v3363_v42 }
 0x8fc   : > { %v4324_v13 = vpop.f32.mrf.mxu1 }
 0x8fd   : > { %v4325_v58 = vadd.f32 %v4324_v13, %v4323_v57 }
 0x8fe   : > { %v8189_v33 = vpop.f32.mrf.mxu1 }
 0x8ff   : > { %v3649_v62 = vadd.f32 %v4325_v58, %v3368_v4 }
 0x900   : > { %v8191_v46 = vpop.f32.mrf.mxu1 }
 0x901   : > { %v4328_v37 = vadd.f32 %v8191_v46, %v8189_v33 }
 0x902   : > { %v8193_v47 = vpop.f32.mrf.mxu1 }
 0x904   : > { %v4330_v24 = vpop.f32.mrf.mxu1 }
 0x905   : > { %v4331_v57 = vadd.f32 %v4330_v24, %v8193_v47 }
 0x906   : > { %v4332_v9 = vpop.f32.mrf.mxu1 }
 0x908   : > { %v4333_v56 = vpop.f32.mrf.mxu1 }
 0x90a   : > { %v4335_v18 = vpop.f32.mrf.mxu1 }
 0x90c   : > { %v4336_v59 = vpop.f32.mrf.mxu1 }
 0x90e   : > { %v4338_v1 = vpop.f32.mrf.mxu1 }
 0x910   : > { %v4339_v20 = vpop.f32.mrf.mxu1 }
 0x932   : > { %v3718_v44 = vpop.f32.mrf.mxu0 }
 0x933   : > { %v3719_v30 = vadd.f32 %v3718_v44, %v3622_v61  ;;  %v3373_v44 = vpop.permute.xlu0 %3372 }
 0x934   : > { %v3720_v49 = vpop.f32.mrf.mxu0  ;;  %v3654_v6 = vadd.f32 %v4328_v37, %v3373_v44 }
 0x935   : > { %v3781_v31 = vmax.f32 %v3719_v30, 0.0  ;;  %v4341_v49 = vpop.f32.mrf.mxu1 }
 0x936   : > { %v3721_v22 = vpop.f32.mrf.mxu0 }
 0x937   : > { %v3722_v29 = vadd.f32 %v3721_v22, %v3625_v48  ;;  %3797 = vxpose.xlu0.b32.start [1/16] (narrow) %v3781_v31, 8  ;;  %v3378_v48 = vpop.permute.xlu1 %3377  ;;  %v4342_v28 = vpop.f32.mrf.mxu1 }
 0x938   : > { %v3723_v27 = vpop.f32.mrf.mxu0  ;;  %v3657_v46 = vadd.f32 %v4331_v57, %v3378_v48  ;;  %v5547_v48 = vld [vmem:[%s8291_s9 + $0x8] sm:$0xff]  }
 0x939   : > { %v3782_v52 = vmax.f32 %v3722_v29, 0.0  ;;  %v4334_v29 = vadd.f32 %v4333_v56, %v4332_v9  ;;  %v4344_v24 = vpop.f32.mrf.mxu1 }
 0x93a   : > { %v3726_v53 = vpop.f32.mrf.mxu0 }
 0x93b   : > { %v3727_v55 = vadd.f32 %v3726_v53, %v3630_v50  ;;  %3798 = vxpose.xlu0.b32.cont [2/16] (narrow) %v3782_v52, 8  ;;  %v3383_v52 = vpop.permute.xlu0 %3382  ;;  %v4337_v53 = vadd.f32 %v4336_v59, %v4335_v18  ;;  %v3388_v15 = vpop.permute.xlu1 %3387 }
 0x93c   : > { %v3728_v23 = vpop.f32.mrf.mxu0  ;;  %v3662_v47 = vadd.f32 %v4334_v29, %v3383_v52  ;;  %v4345_v56 = vpop.f32.mrf.mxu1  ;;  %v3846_v29 = vld [vmem:[%s8290_s8] sm:$0x1] }
 0x93d   : > { %v3783_v32 = vmax.f32 %v3727_v55, 0.0  ;;  %v3665_v9 = vadd.f32 %v4337_v53, %v3388_v15  ;;  %v8465_v53 = vlaneseq }
 0x93e   : > { %v3729_v51 = vpop.f32.mrf.mxu0 }
 0x93f   : > { %v3730_v54 = vadd.f32 %v3729_v51, %v3633_v35  ;;  %3799 = vxpose.xlu0.b32.cont [3/16] (narrow) %v3783_v32, 8  ;;  %v4340_v35 = vadd.f32 %v4339_v20, %v4338_v1 }
 0x940   : > { %v3731_v45 = vpop.f32.mrf.mxu0 }
 0x941   : > { %v3784_v8 = vmax.f32 %v3730_v54, 0.0  ;;  %v3393_v45 = vpop.permute.xlu0 %3392 }
 0x942   : > { %v3734_v19 = vpop.f32.mrf.mxu0  ;;  %v3670_v18 = vadd.f32 %v4340_v35, %v3393_v45 }
 0x943   : > { %v3735_v38 = vadd.f32 %v3734_v19, %v3638_v63  ;;  %3800 = vxpose.xlu0.b32.cont [4/16] (narrow) %v3784_v8, 8  ;;  %v4343_v8 = vadd.f32 %v4342_v28, %v4341_v49  ;;  %v4347_v19 = vpop.f32.mrf.mxu1  ;;  %v5544_v49 = vld [vmem:[%s8291_s9 + $0x20] sm:$0xff]  }
 0x944   : > { %v3736_v34 = vpop.f32.mrf.mxu0 }
 0x945   : > { %v3785_v16 = vmax.f32 %v3735_v38, 0.0  ;;  %v3398_v34 = vpop.permute.xlu1 %3397 }
 0x946   : > { %v3737_v40 = vpop.f32.mrf.mxu0  ;;  %v3673_v59 = vadd.f32 %v4343_v8, %v3398_v34 }
 0x947   : > { %v3738_v43 = vadd.f32 %v3737_v40, %v3641_v10  ;;  %3801 = vxpose.xlu0.b32.cont [5/16] (narrow) %v3785_v16, 8  ;;  %v4346_v16 = vadd.f32 %v4345_v56, %v4344_v24  ;;  %v4348_v40 = vpop.f32.mrf.mxu1 }
 0x948   : > { %v3739_v0 = vpop.f32.mrf.mxu0 }
 0x949   : > { %v3786_v36 = vmax.f32 %v3738_v43, 0.0  ;;  %v3403_v0 = vpop.permute.xlu0 %3402  ;;  %v3408_v4 = vpop.permute.xlu1 %3407 }
 0x94a   : > { %v3742_v3 = vpop.f32.mrf.mxu0  ;;  %v3678_v1 = vadd.f32 %v4346_v16, %v3403_v0 }
 0x94b   : > { %v3743_v11 = vadd.f32 %v3742_v3, %v3646_v17  ;;  %3802 = vxpose.xlu0.b32.cont [6/16] (narrow) %v3786_v36, 8  ;;  %v4349_v36 = vadd.f32 %v4348_v40, %v4347_v19 }
 0x94c   : > { %v3744_v25 = vpop.f32.mrf.mxu0 }
 0x94d   : > { %v3787_v2 = vmax.f32 %v3743_v11, 0.0 }
 0x94e   : > { %v3745_v12 = vpop.f32.mrf.mxu0 }
 0x94f   : > { %v3746_v61 = vadd.f32 %v3745_v12, %v3649_v62  ;;  %3803 = vxpose.xlu0.b32.cont [7/16] (narrow) %v3787_v2, 8  ;;  %v3681_v2 = vadd.f32 %v4349_v36, %v3408_v4 }
 0x950   : > { %v3747_v30 = vpop.f32.mrf.mxu0 }
 0x951   : > { %v3788_v13 = vmax.f32 %v3746_v61, 0.0  ;;  %v5541_v30 = vld [vmem:[%s8291_s9 + $0x38] sm:$0xff]  }
 0x952   : > { %v3750_v14 = vpop.f32.mrf.mxu0 }
 0x953   : > { %v3751_v31 = vadd.f32 %v3750_v14, %v3654_v6  ;;  %3804 = vxpose.xlu0.b32.cont [8/16] (narrow) %v3788_v13, 8  ;;  %v5542_v13 = vld [vmem:[%s8291_s9 + $0x30] sm:$0xff]   ;;  %v5543_v6 = vld [vmem:[%s8291_s9 + $0x28] sm:$0xff]   ;;  %v5545_v14 = vld [vmem:[%s8291_s9 + $0x18] sm:$0xff]  }
 0x954   : > { %v3752_v22 = vpop.f32.mrf.mxu0 }
 0x955   : > { %v3789_v33 = vmax.f32 %v3751_v31, 0.0  ;;  %v5546_v31 = vld [vmem:[%s8291_s9 + $0x10] sm:$0xff]   ;;  %v5548_v22 = vld [vmem:[%s8291_s9] sm:$0xff]  }
 0x956   : > { %v3753_v27 = vpop.f32.mrf.mxu0 }
 0x957   : > { %v3754_v39 = vadd.f32 %v3753_v27, %v3657_v46  ;;  %3805 = vxpose.xlu0.b32.cont [9/16] (narrow) %v3789_v33, 8 }
 0x958   : > { %v3755_v50 = vpop.f32.mrf.mxu0 }
 0x959   : > { %v3790_v55 = vmax.f32 %v3754_v39, 0.0 }
 0x95a   : > { %v3758_v5 = vpop.f32.mrf.mxu0 }
 0x95b   : > { %v3759_v23 = vadd.f32 %v3758_v5, %v3662_v47  ;;  %3806 = vxpose.xlu0.b32.cont [10/16] (narrow) %v3790_v55, 8  ;;  %v4043_v55 = vand.u32 127, %v8465_v53  ;;  %v3953_v47 = vld [vmem:[%s8292_s10] sm:$0x1] }
 0x95c   : > { %v3760_v32 = vpop.f32.mrf.mxu0 }
 0x95d   : > { %v3791_v51 = vmax.f32 %v3759_v23, 0.0  ;;  %vm4044_vm3 = vcmp.lt.s32.totalorder %v4043_v55, 10 }
 0x95e   : > { %v3761_v54 = vpop.f32.mrf.mxu0 }
 0x95f   : > { %v3762_v60 = vadd.f32 %v3761_v54, %v3665_v9  ;;  %3807 = vxpose.xlu0.b32.cont [11/16] (narrow) %v3791_v51, 8 }
 0x960   : > { %v3763_v41 = vpop.f32.mrf.mxu0 }
 0x961   : > { %v3792_v63 = vmax.f32 %v3762_v60, 0.0 }
 0x962   : > { %v3766_v38 = vpop.f32.mrf.mxu0 }
 0x963   : > { %v3767_v21 = vadd.f32 %v3766_v38, %v3670_v18  ;;  %3808 = vxpose.xlu0.b32.cont [12/16] (narrow) %v3792_v63, 8 }
 0x964   : > { %v3768_v26 = vpop.f32.mrf.mxu0 }
 0x965   : > { %v3793_v10 = vmax.f32 %v3767_v21, 0.0 }
 0x966   : > { %v3769_v43 = vpop.f32.mrf.mxu0 }
 0x967   : > { %v3770_v42 = vadd.f32 %v3769_v43, %v3673_v59  ;;  %3809 = vxpose.xlu0.b32.cont [13/16] (narrow) %v3793_v10, 8 }
 0x968   : > { %v3771_v58 = vpop.f32.mrf.mxu0 }
 0x969   : > { %v3794_v17 = vmax.f32 %v3770_v42, 0.0 }
 0x96a   : > { %v3774_v3 = vpop.f32.mrf.mxu0 }
 0x96b   : > { %v3775_v11 = vadd.f32 %v3774_v3, %v3678_v1  ;;  %3810 = vxpose.xlu0.b32.cont [14/16] (narrow) %v3794_v17, 8 }
 0x96c   : > { %v3776_v25 = vpop.f32.mrf.mxu0 }
 0x96d   : > { %v3795_v37 = vmax.f32 %v3775_v11, 0.0 }
 0x96e   : > { %v3777_v62 = vpop.f32.mrf.mxu0 }
 0x96f   : > { %v3778_v20 = vadd.f32 %v3777_v62, %v3681_v2  ;;  %3811 = vxpose.xlu0.b32.cont [15/16] (narrow) %v3795_v37, 8 }
 0x970   : > { %v3779_v12 = vpop.f32.mrf.mxu0 }
 0x971   : > { %v3796_v61 = vmax.f32 %v3778_v20, 0.0 }
 0x973   : > { %3812 = vxpose.xlu0.b32.end [16/16] (narrow) %v3796_v61, 8 }
 0x9b3   : > { %v3813_v44 = vpop.trf.xlu0 }
 0x9b4   : > { %v3829_v57 = vpack.c.bf16 %v3813_v44, %v3813_v44 }
 0x9b6   : > { %4385 = vmatmul.mubr.bf16.vlgmr.msra.gmra.mxu1 %v3829_v57 }
 0x9b7   : > { %4389 = vmatpush3.bf16.msra.mxu1 %v5541_v30  ;;  %4404 = vmatprep.mubr.msk.bf16.mxu1 %vm5643_vm14, %v8414_v7 }
 0x9b8   : > { %4390 = vmatprep.subr.bf16.mxu1 %v8414_v7 }
 0x9bb   : > { %4391 = vmatpush3.bf16.msra.mxu1 %v5542_v13 }
 0x9bc   : > { %4392 = vmatprep.subr.bf16.mxu1 %v8414_v7 }
 0x9bf   : > { %4393 = vmatpush3.bf16.msra.mxu1 %v5543_v6 }
 0x9c0   : > { %4394 = vmatprep.subr.bf16.mxu1 %v8414_v7 }
 0x9c3   : > { %4395 = vmatpush3.bf16.msra.mxu1 %v5544_v49 }
 0x9c4   : > { %4396 = vmatprep.subr.bf16.mxu1 %v8414_v7 }
 0x9c7   : > { %4397 = vmatpush3.bf16.msra.mxu1 %v5545_v14 }
 0x9c8   : > { %4398 = vmatprep.subr.bf16.mxu1 %v8414_v7 }
 0x9cb   : > { %4399 = vmatpush3.bf16.msra.mxu1 %v5546_v31 }
 0x9cc   : > { %4400 = vmatprep.subr.bf16.mxu1 %v8414_v7 }
 0x9cf   : > { %4401 = vmatpush3.bf16.msra.mxu1 %v5547_v48 }
 0x9d0   : > { %4402 = vmatprep.subr.bf16.mxu1 %v8414_v7 }
 0x9d3   : > { %4403 = vmatpush3.bf16.msra.mxu1 %v5548_v22 }
 0xa76   : > { %v3929_v33 = vpop.f32.mrf.mxu1 }
 0xa77   : > { %v3930_v46 = vadd.f32 %v3929_v33, %v3846_v29 }
 0xa78   : > { %v4386_v28 = vpop.f32.mrf.mxu1 }
 0xa79   : > { %v3935_v27 = vmax.f32 %v3930_v46, 0.0 }
 0xa7a   : > { %v3932_v39 = vpop.f32.mrf.mxu1 }
 0xa7b   : > { %v3936_v52 = vpack.c.bf16 %v3935_v27, %v3935_v27 }
 0xa7c   : > { %v4387_v50 = vpop.f32.mrf.mxu1 }
 0xa7d   : > { %4405 = vmatmul.mubr.bf16.vlgmr.msra.gmra.mxu1 %v3936_v52 }
 0xb3d   : > { %v4036_v7 = vpop.f32.mrf.mxu1 }
 0xb3e   : > { %v4037_v24 = vadd.f32 %v4036_v7, %v3953_v47 }
 0xb3f   : > { %v4406_v5 = vpop.f32.mrf.mxu1 }
 0xb40   : > { %v4045_v23 = vsel %vm4044_vm3, %v4037_v24, -inf }
 0xb41   : > { %v4047_v15 = vsel %vm4046_vm6, %v4045_v23, -inf  ;;  %v4039_v32 = vpop.f32.mrf.mxu1 }
 0xb42   : > { %4048 = vmax.xlane.f32.xlu1 %v4047_v15 }
 0xb43   : > { %v4407_v35 = vpop.f32.mrf.mxu1 }
 0xbcb   : > { %v4049_v51 = vpop.xlane.xlu1 %4048 }
 0xbcc   : > { %v4050_v9 = vsub.f32 %v4045_v23, %v4049_v51 }
 0xbce   : > { %v4051_v56 = vmul.f32 1.442695, %v4050_v9 }
 0xbd0   : > { %5549 = vpow2.f32 %v4051_v56 }
 0xbdd   : > { %v5550_v54 = vpop.eup %5549 }
 0xbde   : > { %v4053_v60 = vsel %vm4046_vm6, %v5550_v54, 0.0 }
 0xbdf   : > { %4054 = vadd.xlane.f32.xlu1 %v4053_v60 }
 0xc68   : > { %v4055_v45 = vpop.xlane.xlu1 %4054 }
 0xc69   : > { %5551 = vlog2.f32 %v4055_v45 }
 0xc76   : > { %v5552_v41 = vpop.eup %5551 }
 0xc77   : > { %v4057_v8 = vmul.f32 0.6931472, %v5552_v41 }
 0xc79   : > { %v4058_v63 = vsub.f32 %v4050_v9, %v4057_v8 }
 0xc7b   : > { %v4059_v18 = vsel %vm4044_vm3, %v4058_v63, 0.0 }
 0xc7c   : > { %4060 = vst [vmem:[%s376_s30] sm:$0x1] %v4059_v18 }
 0xc7d   : > { %5567 = shalt.err (!%p5564_p3)
}
 0xc7e   : > { %s5568_s14 = scalar_lea.hbm %s8246_s12, 16  ;;  %s5572_s15 = scalar_lea.hbm %s8293_s11, 32 }
 0xc7f   : > { %p5569_p4 = scmp.ne.s32.totalorder %s8246_s12, %s5568_s14  ;;  %p5573_p9 = scmp.lt.s32.totalorder %s8246_s12, %s8293_s11 }
 0xc80   : > { %p5574_p10 = scmp.lt.s32.totalorder %s5572_s15, %s5568_s14 }
 0xc81   : > { %p5570_p7 = pnand %p5569_p4, %p5743_p5 }
 0xc82   : > { %p5575_p11 = por %p5574_p10, %p5573_p9 }
 0xc83   : > { %p5571_p8 = pneg %p5570_p7 }
 0xc85   : > { %p5576_p12 = pnand %p5575_p11, %p5571_p8 }
 0xc87   : > { %5579 = shalt.err (!%p5576_p12)
}
 0xc88   : > { %4408 = dma.vmem_to_hbm [thread:$0]  (%p5743_p5), %s4075_s29, 16, %s8246_s12, %s4062_s13  }
 0xc89 PF: > { %p4414_p13 = scmp.ge.s32.totalorder %s5614_s20, 2  ;;  %s4086_s24 = sand.u32 1, %s5602_s17  }
 0xc8a   : > { %s4087_s21 = scalar_lea.sflag [#allocation3], %s4086_s24 }
 0xc8b   : > { %p4411_p0 = pnand %p4414_p13, %p5747_p6 }
 0xc8d   : > { %p4412_p1 = pneg %p4411_p0 }
 0xc8f   : > { %5597 = dma.done.wait (%p4412_p1), %s4087_s21, 16  }
 0xc90   : > { %5599 = vsyncadd (%p4412_p1), %s4087_s21, 4294967280  ;;  %p21_p2 = scmp.ge.s32.totalorder %s5730_s23, 4   ;;  %s8466_s17 = smov %s5606_s18 }
 0xc91   : > { %s8467_s18 = smov %s5610_s19  ;;  %s8468_s19 = smov %s5741_s26 }
 0xc92   : > { %s8469_s20 = smov %s5730_s23  ;;  %23 = sbr.rel (!%p21_p2) target bundleno = 5 (0x5), region = 99 }
 0xc97   :  { %4091 = vsyncpa [#allocation3], 1 }
 0xc98   :  { %4093 = vsyncpa [#allocation3 + $0x1], 1 }

</bundles_post_ra>
